<compile_context>
chip_gen: v5e
topology: v5e:2x2
jax: 0.10.0
libtpu: 0.0.40
codegen_flags: <defaults>
</compile_context>

<pallas_src>
from typing import Dict, List, Set, Tuple

import jax
import jax.numpy as jnp
from jax import lax
from jax.experimental import pallas as pl
from jax.experimental.pallas import tpu as pltpu

LayerIndex = Tuple[int, int]
FeatureDict = Dict[LayerIndex, jnp.ndarray]

_VMEM_LIMIT = 32 * 1024 * 1024  # explicit scoped-VMEM budget (safe on v5e/v6e/v7x)


# ----------------------------------------------------------------------------
# Pallas kernels
# ----------------------------------------------------------------------------


def _conv_core(x_ref, w_ref, b_ref, xpad_ref, col_ref):
    """Shared conv3x3(pad=1) + bias + ReLU body; returns (H*W, Cout) f32 activations."""
    H, W, Cin = x_ref.shape
    # 1) zero-padded halo built in VMEM.  The scratch is re-zeroed every grid step:
    #    a pl.when(program_id==0) init would break when the "parallel" batch axis is
    #    split across TensorCores (v7x megacore).
    xpad_ref[...] = jnp.zeros_like(xpad_ref)
    xpad_ref[1:H + 1, 1:W + 1, :] = x_ref[...]
    # 2) im2col slab: 9 shifted views written side by side -> (H*W, 9*Cin).
    for k in range(9):
        dy, dx = k // 3, k % 3
        col_ref[:, k * Cin:(k + 1) * Cin] = (
            xpad_ref[dy:dy + H, dx:dx + W, :].reshape(H * W, Cin))
    # 3) one MXU matmul with K = 9*Cin, f32 accumulation, fused bias + ReLU (VPU).
    acc = jnp.dot(col_ref[...], w_ref[...], preferred_element_type=jnp.float32)
    return jnp.maximum(acc + b_ref[...], 0.0)


def _conv3x3_relu_kernel(x_ref, w_ref, b_ref, o_ref, xpad_ref, col_ref):
    # x_ref: (H, W, Cin); w_ref: (9*Cin, Cout); b_ref: (1, Cout); o_ref: (H, W, Cout)
    H, W, Cout = o_ref.shape
    a = _conv_core(x_ref, w_ref, b_ref, xpad_ref, col_ref)
    o_ref[...] = a.reshape(H, W, Cout).astype(o_ref.dtype)


def _conv3x3_relu_gram_kernel(x_ref, w_ref, b_ref, o_ref, g_ref, xpad_ref, col_ref):
    # Fused style path: activation + gram in one pass (no HBM re-read of the act).
    H, W, Cout = o_ref.shape
    a = _conv_core(x_ref, w_ref, b_ref, xpad_ref, col_ref)        # (H*W, Cout) f32
    o_ref[...] = a.reshape(H, W, Cout).astype(o_ref.dtype)
    # gram[c, d] = sum_hw a[hw, c] * a[hw, d]; contract rows directly (no transpose).
    g_ref[...] = lax.dot_general(
        a, a, dimension_numbers=(((0,), (0,)), ((), ())),
        preferred_element_type=jnp.float32).astype(g_ref.dtype)


def _avgpool2x2_kernel(x_ref, pw_ref, o_ref):
    # x_ref: (2, W, C) two input rows; pw_ref: (Wo, W) with 0.25 at the two taps of
    # each output column; o_ref: (1, Wo, C).
    xh = x_ref[0] + x_ref[1]                                           # VPU H-pool
    y = jnp.dot(pw_ref[...], xh, preferred_element_type=jnp.float32)   # tiny W-pool
    o_ref[0] = y.astype(o_ref.dtype)


# ----------------------------------------------------------------------------
# Wrappers around pallas_call
# ----------------------------------------------------------------------------


def conv3x3_relu(x, w, b, *, with_gram=False):
    """x: (N,H,W,Cin) NHWC; w: (3,3,Cin,Cout) HWIO; b: (1,Cout).

    Returns activations (N,H,W,Cout); if with_gram also returns grams (N,Cout,Cout).
    """
    N, H, W, Cin = x.shape
    Cout = w.shape[-1]
    w2d = w.reshape(9 * Cin, Cout)        # tap-major (dy, dx, cin) == im2col order
    flops = 2 * N * H * W * 9 * Cin * Cout
    out_bytes = 4 * N * H * W * Cout
    if with_gram:
        flops += 2 * N * H * W * Cout * Cout
        out_bytes += 4 * N * Cout * Cout
    cost = pl.CostEstimate(flops=flops, transcendentals=0,
                           bytes_accessed=4 * (x.size + w2d.size + b.size) + out_bytes)
    in_specs = [
        pl.BlockSpec((None, H, W, Cin), lambda n: (n, 0, 0, 0)),
        pl.BlockSpec((9 * Cin, Cout), lambda n: (0, 0)),
        pl.BlockSpec((1, Cout), lambda n: (0, 0)),
    ]
    scratch = [pltpu.VMEM((H + 2, W + 2, Cin), jnp.float32),   # zero-padded halo
               pltpu.VMEM((H * W, 9 * Cin), jnp.float32)]      # im2col slab
    # TODO(synk): for large images add a row-tiled "parallel" grid axis with a 2-row
    # halo so per-step VMEM stays well under v7x's 64 MiB and both TCs are fed.
    cparams = pltpu.CompilerParams(dimension_semantics=("parallel",),
                                   vmem_limit_bytes=_VMEM_LIMIT)
    if with_gram:
        return pl.pallas_call(
            _conv3x3_relu_gram_kernel,
            out_shape=(jax.ShapeDtypeStruct((N, H, W, Cout), x.dtype),
                       jax.ShapeDtypeStruct((N, Cout, Cout), jnp.float32)),
            grid=(N,),
            in_specs=in_specs,
            out_specs=(pl.BlockSpec((None, H, W, Cout), lambda n: (n, 0, 0, 0)),
                       pl.BlockSpec((None, Cout, Cout), lambda n: (n, 0, 0))),
            scratch_shapes=scratch,
            compiler_params=cparams,
            cost_estimate=cost,
        )(x, w2d, b)
    return pl.pallas_call(
        _conv3x3_relu_kernel,
        out_shape=jax.ShapeDtypeStruct((N, H, W, Cout), x.dtype),
        grid=(N,),
        in_specs=in_specs,
        out_specs=pl.BlockSpec((None, H, W, Cout), lambda n: (n, 0, 0, 0)),
        scratch_shapes=scratch,
        compiler_params=cparams,
        cost_estimate=cost,
    )(x, w2d, b)


def avg_pool2x2(x):
    """x: (N,H,W,C) -> (N,H//2,W//2,C); matches F.avg_pool2d(kernel=2, stride=2)."""
    N, H, W, C = x.shape
    Ho, Wo = H // 2, W // 2
    cols = jnp.arange(Wo)
    pw = jnp.zeros((Wo, W), jnp.float32)
    pw = pw.at[cols, 2 * cols].set(0.25).at[cols, 2 * cols + 1].set(0.25)
    cost = pl.CostEstimate(flops=6 * N * Ho * Wo * C, transcendentals=0,
                           bytes_accessed=4 * (x.size + pw.size + N * Ho * Wo * C))
    return pl.pallas_call(
        _avgpool2x2_kernel,
        out_shape=jax.ShapeDtypeStruct((N, Ho, Wo, C), x.dtype),
        grid=(N, Ho),
        in_specs=[pl.BlockSpec((None, 2, W, C), lambda n, ho: (n, ho, 0, 0)),
                  pl.BlockSpec((Wo, W), lambda n, ho: (0, 0))],
        out_specs=pl.BlockSpec((None, 1, Wo, C), lambda n, ho: (n, ho, 0, 0)),
        compiler_params=pltpu.CompilerParams(
            dimension_semantics=("parallel", "parallel"),
            vmem_limit_bytes=_VMEM_LIMIT),
        cost_estimate=cost,
    )(x, pw)


# ----------------------------------------------------------------------------
# Model construction (mirrors StyleContentModel.__init__) and forward pass
# ----------------------------------------------------------------------------

_VGG19_CFG = [64, 64, "M", 128, 128, "M", 256, 256, 256, 256, "M",
              512, 512, 512, 512, "M", 512, 512, 512, 512, "M"]
# Synthetic, lane-aligned channel widths (multiples of 128 -> unmasked lane-dense
# stores + MXU-friendly K/N).  This is a synthetic trunk, not the VGG checkpoint.
# TODO(synk): load real torchvision VGG-19 pretrained weights (needs network/file I/O).
_CH_SCALE = {64: 128, 128: 128, 256: 256, 512: 256}


def build_style_content_model(content_layers: List[LayerIndex],
                              style_layers: List[LayerIndex],
                              in_channels: int = 3,
                              key=None):
    """Builds the truncated conv trunk: layer list + deterministic random params."""
    max_layer = max(max(content_layers), max(style_layers))
    layers: List[LayerIndex] = []
    params: Dict[LayerIndex, Tuple[jnp.ndarray, jnp.ndarray]] = {}
    block_idx, layer_idx = 1, 1
    cin = in_channels
    for v in _VGG19_CFG:
        if v == "M":
            block_idx += 1
            layer_idx = 1
            continue
        cout = _CH_SCALE[v]
        layer = (block_idx, layer_idx)
        key, wk, bk = jax.random.split(key, 3)
        w = 0.05 * jax.random.normal(wk, (3, 3, cin, cout), jnp.float32)   # HWIO
        b = 0.01 * jax.random.normal(bk, (1, cout), jnp.float32)
        params[layer] = (w, b)
        layers.append(layer)
        cin = cout
        if layer == max_layer:
            break
        layer_idx += 1
    return layers, params


def style_content_forward(x_nchw, params, layers,
                          content_layers: Set[LayerIndex],
                          style_layers: Set[LayerIndex]):
    """Mirrors StyleContentModel.forward; returns (content_features, style_features)."""
    x = jnp.transpose(x_nchw, (0, 2, 3, 1))   # NCHW -> NHWC for the kernels
    content_features: FeatureDict = {}
    style_features: FeatureDict = {}
    block = 1
    for layer in layers:
        block_idx, _ = layer
        if block_idx > block:
            x = avg_pool2x2(x)
            block += 1
        w, b = params[layer]
        if layer in style_layers:
            x, gram = conv3x3_relu(x, w, b, with_gram=True)   # gram fused, no re-read
            style_features[layer] = gram
        else:
            x = conv3x3_relu(x, w, b)
        if layer in content_layers:
            content_features[layer] = jnp.transpose(x, (0, 3, 1, 2))  # back to NCHW
    return content_features, style_features


# ----------------------------------------------------------------------------
# Plain-JAX reference (numerical check)
# ----------------------------------------------------------------------------


def _reference_forward(x_nchw, params, layers, content_layers, style_layers):
    x = jnp.transpose(x_nchw, (0, 2, 3, 1))
    content, style = {}, {}
    block = 1
    for layer in layers:
        block_idx, _ = layer
        if block_idx > block:
            N, H, W, C = x.shape
            x = x.reshape(N, H // 2, 2, W // 2, 2, C).mean(axis=(2, 4))
            block += 1
        w, b = params[layer]
        y = lax.conv_general_dilated(
            x, w, window_strides=(1, 1), padding="SAME",
            dimension_numbers=("NHWC", "HWIO", "NHWC"),
            precision=lax.Precision.HIGHEST)
        x = jnp.maximum(y + b.reshape(1, 1, 1, -1), 0.0)
        if layer in content_layers:
            content[layer] = jnp.transpose(x, (0, 3, 1, 2))
        if layer in style_layers:
            style[layer] = jnp.einsum("nhwc,nhwd->ncd", x, x,
                                      precision=lax.Precision.HIGHEST)
    return content, style


# ----------------------------------------------------------------------------

if __name__ == "__main__":
    key = jax.random.PRNGKey(0)
    pkey, xkey = jax.random.split(key)

    content_layers = [(3, 2)]
    style_layers = [(1, 1), (2, 1), (3, 1)]

    layers, params = build_style_content_model(
        content_layers, style_layers, in_channels=3, key=pkey)

    # NCHW input, like the PyTorch module (batch=2, RGB, 16x16).
    x = jax.random.normal(xkey, (2, 3, 16, 16), jnp.float32)

    content, style = style_content_forward(
        x, params, layers, set(content_layers), set(style_layers))
    jax.block_until_ready((content, style))

    # Numerical sanity check against a plain-JAX reference (f32 path -> tight tol).
    ref_content, ref_style = _reference_forward(
        x, params, layers, set(content_layers), set(style_layers))
    for k in content:
        assert content[k].shape == ref_content[k].shape
        assert bool(jnp.allclose(content[k], ref_content[k], rtol=2e-3, atol=2e-3)), k
    for k in style:
        assert style[k].shape == ref_style[k].shape
        assert bool(jnp.allclose(style[k], ref_style[k], rtol=2e-3, atol=2e-3)), k

    print("KERNEL_OK")
</pallas_src>

<mosaic_0001>
module attributes {stable_mosaic.version = 11 : i64} {
  func.func @_conv3x3_relu_gram_kernel(%arg0: i32, %arg1: memref<1x16x16x3xf32, #tpu.memory_space<vmem>>, %arg2: memref<27x128xf32, #tpu.memory_space<vmem>>, %arg3: memref<1x128xf32, #tpu.memory_space<vmem>>, %arg4: memref<1x16x16x128xf32, #tpu.memory_space<vmem>>, %arg5: memref<1x128x128xf32, #tpu.memory_space<vmem>>, %arg6: memref<18x18x3xf32, #tpu.memory_space<vmem>>, %arg7: memref<256x27xf32, #tpu.memory_space<vmem>>) attributes {dimension_semantics = [#tpu.dimension_semantics<parallel>], iteration_bounds = array<i64: 2>, scalar_prefetch = 0 : i64, scratch_operands = 2 : i64, tpu.core_type = #tpu.core_type<tc>, window_params = [{transform_indices = @transform_0, window_bounds = array<i64: 1, 16, 16, 3>}, {pipeline_mode = #tpu.pipeline_mode<synchronous>, transform_indices = @transform_1, window_bounds = array<i64: 27, 128>}, {pipeline_mode = #tpu.pipeline_mode<synchronous>, transform_indices = @transform_2, window_bounds = array<i64: 1, 128>}, {transform_indices = @transform_3, window_bounds = array<i64: 1, 16, 16, 128>}, {transform_indices = @transform_4, window_bounds = array<i64: 1, 128, 128>}]} {
    %cst = arith.constant 0.000000e+00 : f32
    %0 = vector.broadcast %cst : f32 to vector<18x18x3xf32>
    %c0 = arith.constant 0 : index
    %c0_0 = arith.constant 0 : index
    %c0_1 = arith.constant 0 : index
    %1 = vector.load %arg6[%c0, %c0_0, %c0_1] : memref<18x18x3xf32, #tpu.memory_space<vmem>>, vector<18x18x3xf32>
    tpu.vector_store %arg6[%c0, %c0_0, %c0_1], %0 {strides = array<i32>} : memref<18x18x3xf32, #tpu.memory_space<vmem>>, vector<18x18x3xf32>,
    %c0_2 = arith.constant 0 : index
    %c0_3 = arith.constant 0 : index
    %c0_4 = arith.constant 0 : index
    %c0_5 = arith.constant 0 : index
    %2 = vector.load %arg1[%c0_2, %c0_3, %c0_4, %c0_5] : memref<1x16x16x3xf32, #tpu.memory_space<vmem>>, vector<1x16x16x3xf32>
    %3 = vector.shape_cast %2 : vector<1x16x16x3xf32> to vector<16x16x3xf32>
    %c1 = arith.constant 1 : index
    %c1_6 = arith.constant 1 : index
    %c0_7 = arith.constant 0 : index
    %4 = vector.load %arg6[%c1, %c1_6, %c0_7] : memref<18x18x3xf32, #tpu.memory_space<vmem>>, vector<16x16x3xf32>
    tpu.vector_store %arg6[%c1, %c1_6, %c0_7], %3 {strides = array<i32>} : memref<18x18x3xf32, #tpu.memory_space<vmem>>, vector<16x16x3xf32>,
    %c0_8 = arith.constant 0 : index
    %c0_9 = arith.constant 0 : index
    %c0_10 = arith.constant 0 : index
    %5 = vector.load %arg6[%c0_8, %c0_9, %c0_10] : memref<18x18x3xf32, #tpu.memory_space<vmem>>, vector<16x16x3xf32>
    %6 = vector.shape_cast %5 : vector<16x16x3xf32> to vector<256x3xf32>
    %c0_11 = arith.constant 0 : index
    %c0_12 = arith.constant 0 : index
    %7 = vector.load %arg7[%c0_11, %c0_12] : memref<256x27xf32, #tpu.memory_space<vmem>>, vector<256x3xf32>
    tpu.vector_store %arg7[%c0_11, %c0_12], %6 {strides = array<i32>} : memref<256x27xf32, #tpu.memory_space<vmem>>, vector<256x3xf32>,
    %c0_13 = arith.constant 0 : index
    %c1_14 = arith.constant 1 : index
    %c0_15 = arith.constant 0 : index
    %8 = vector.load %arg6[%c0_13, %c1_14, %c0_15] : memref<18x18x3xf32, #tpu.memory_space<vmem>>, vector<16x16x3xf32>
    %9 = vector.shape_cast %8 : vector<16x16x3xf32> to vector<256x3xf32>
    %c0_16 = arith.constant 0 : index
    %c3 = arith.constant 3 : index
    %10 = vector.load %arg7[%c0_16, %c3] : memref<256x27xf32, #tpu.memory_space<vmem>>, vector<256x3xf32>
    tpu.vector_store %arg7[%c0_16, %c3], %9 {strides = array<i32>} : memref<256x27xf32, #tpu.memory_space<vmem>>, vector<256x3xf32>,
    %c0_17 = arith.constant 0 : index
    %c2 = arith.constant 2 : index
    %c0_18 = arith.constant 0 : index
    %11 = vector.load %arg6[%c0_17, %c2, %c0_18] : memref<18x18x3xf32, #tpu.memory_space<vmem>>, vector<16x16x3xf32>
    %12 = vector.shape_cast %11 : vector<16x16x3xf32> to vector<256x3xf32>
    %c0_19 = arith.constant 0 : index
    %c6 = arith.constant 6 : index
    %13 = vector.load %arg7[%c0_19, %c6] : memref<256x27xf32, #tpu.memory_space<vmem>>, vector<256x3xf32>
    tpu.vector_store %arg7[%c0_19, %c6], %12 {strides = array<i32>} : memref<256x27xf32, #tpu.memory_space<vmem>>, vector<256x3xf32>,
    %c1_20 = arith.constant 1 : index
    %c0_21 = arith.constant 0 : index
    %c0_22 = arith.constant 0 : index
    %14 = vector.load %arg6[%c1_20, %c0_21, %c0_22] : memref<18x18x3xf32, #tpu.memory_space<vmem>>, vector<16x16x3xf32>
    %15 = vector.shape_cast %14 : vector<16x16x3xf32> to vector<256x3xf32>
    %c0_23 = arith.constant 0 : index
    %c9 = arith.constant 9 : index
    %16 = vector.load %arg7[%c0_23, %c9] : memref<256x27xf32, #tpu.memory_space<vmem>>, vector<256x3xf32>
    tpu.vector_store %arg7[%c0_23, %c9], %15 {strides = array<i32>} : memref<256x27xf32, #tpu.memory_space<vmem>>, vector<256x3xf32>,
    %c1_24 = arith.constant 1 : index
    %c1_25 = arith.constant 1 : index
    %c0_26 = arith.constant 0 : index
    %17 = vector.load %arg6[%c1_24, %c1_25, %c0_26] : memref<18x18x3xf32, #tpu.memory_space<vmem>>, vector<16x16x3xf32>
    %18 = vector.shape_cast %17 : vector<16x16x3xf32> to vector<256x3xf32>
    %c0_27 = arith.constant 0 : index
    %c12 = arith.constant 12 : index
    %19 = vector.load %arg7[%c0_27, %c12] : memref<256x27xf32, #tpu.memory_space<vmem>>, vector<256x3xf32>
    tpu.vector_store %arg7[%c0_27, %c12], %18 {strides = array<i32>} : memref<256x27xf32, #tpu.memory_space<vmem>>, vector<256x3xf32>,
    %c1_28 = arith.constant 1 : index
    %c2_29 = arith.constant 2 : index
    %c0_30 = arith.constant 0 : index
    %20 = vector.load %arg6[%c1_28, %c2_29, %c0_30] : memref<18x18x3xf32, #tpu.memory_space<vmem>>, vector<16x16x3xf32>
    %21 = vector.shape_cast %20 : vector<16x16x3xf32> to vector<256x3xf32>
    %c0_31 = arith.constant 0 : index
    %c15 = arith.constant 15 : index
    %22 = vector.load %arg7[%c0_31, %c15] : memref<256x27xf32, #tpu.memory_space<vmem>>, vector<256x3xf32>
    tpu.vector_store %arg7[%c0_31, %c15], %21 {strides = array<i32>} : memref<256x27xf32, #tpu.memory_space<vmem>>, vector<256x3xf32>,
    %c2_32 = arith.constant 2 : index
    %c0_33 = arith.constant 0 : index
    %c0_34 = arith.constant 0 : index
    %23 = vector.load %arg6[%c2_32, %c0_33, %c0_34] : memref<18x18x3xf32, #tpu.memory_space<vmem>>, vector<16x16x3xf32>
    %24 = vector.shape_cast %23 : vector<16x16x3xf32> to vector<256x3xf32>
    %c0_35 = arith.constant 0 : index
    %c18 = arith.constant 18 : index
    %25 = vector.load %arg7[%c0_35, %c18] : memref<256x27xf32, #tpu.memory_space<vmem>>, vector<256x3xf32>
    tpu.vector_store %arg7[%c0_35, %c18], %24 {strides = array<i32>} : memref<256x27xf32, #tpu.memory_space<vmem>>, vector<256x3xf32>,
    %c2_36 = arith.constant 2 : index
    %c1_37 = arith.constant 1 : index
    %c0_38 = arith.constant 0 : index
    %26 = vector.load %arg6[%c2_36, %c1_37, %c0_38] : memref<18x18x3xf32, #tpu.memory_space<vmem>>, vector<16x16x3xf32>
    %27 = vector.shape_cast %26 : vector<16x16x3xf32> to vector<256x3xf32>
    %c0_39 = arith.constant 0 : index
    %c21 = arith.constant 21 : index
    %28 = vector.load %arg7[%c0_39, %c21] : memref<256x27xf32, #tpu.memory_space<vmem>>, vector<256x3xf32>
    tpu.vector_store %arg7[%c0_39, %c21], %27 {strides = array<i32>} : memref<256x27xf32, #tpu.memory_space<vmem>>, vector<256x3xf32>,
    %c2_40 = arith.constant 2 : index
    %c2_41 = arith.constant 2 : index
    %c0_42 = arith.constant 0 : index
    %29 = vector.load %arg6[%c2_40, %c2_41, %c0_42] : memref<18x18x3xf32, #tpu.memory_space<vmem>>, vector<16x16x3xf32>
    %30 = vector.shape_cast %29 : vector<16x16x3xf32> to vector<256x3xf32>
    %c0_43 = arith.constant 0 : index
    %c24 = arith.constant 24 : index
    %31 = vector.load %arg7[%c0_43, %c24] : memref<256x27xf32, #tpu.memory_space<vmem>>, vector<256x3xf32>
    tpu.vector_store %arg7[%c0_43, %c24], %30 {strides = array<i32>} : memref<256x27xf32, #tpu.memory_space<vmem>>, vector<256x3xf32>,
    %c0_44 = arith.constant 0 : index
    %c0_45 = arith.constant 0 : index
    %32 = vector.load %arg7[%c0_44, %c0_45] : memref<256x27xf32, #tpu.memory_space<vmem>>, vector<256x27xf32>
    %c0_46 = arith.constant 0 : index
    %c0_47 = arith.constant 0 : index
    %33 = vector.load %arg2[%c0_46, %c0_47] : memref<27x128xf32, #tpu.memory_space<vmem>>, vector<27x128xf32>
    %cst_48 = arith.constant dense<0.000000e+00> : vector<256x128xf32>
    %34 = tpu.matmul %32, %33, %cst_48 {dimension_numbers = #tpu.dot_dimension_numbers<[1], [0], [0], [1], [0, 0, 1, 1], [], []>} : vector<256x27xf32>, vector<27x128xf32>, vector<256x128xf32> -> vector<256x128xf32>
    %c0_49 = arith.constant 0 : index
    %c0_50 = arith.constant 0 : index
    %35 = vector.load %arg3[%c0_49, %c0_50] : memref<1x128xf32, #tpu.memory_space<vmem>>, vector<1x128xf32>
    %36 = vector.broadcast %35 : vector<1x128xf32> to vector<256x128xf32>
    %37 = arith.addf %34, %36 : vector<256x128xf32>
    %cst_51 = arith.constant 0.000000e+00 : f32
    %38 = vector.broadcast %cst_51 : f32 to vector<256x128xf32>
    %39 = arith.maximumf %37, %38 : vector<256x128xf32>
    %40 = vector.shape_cast %39 : vector<256x128xf32> to vector<16x16x128xf32>
    %c0_52 = arith.constant 0 : index
    %c0_53 = arith.constant 0 : index
    %c0_54 = arith.constant 0 : index
    %c0_55 = arith.constant 0 : index
    %41 = vector.load %arg4[%c0_52, %c0_53, %c0_54, %c0_55] : memref<1x16x16x128xf32, #tpu.memory_space<vmem>>, vector<1x16x16x128xf32>
    %42 = vector.shape_cast %41 : vector<1x16x16x128xf32> to vector<16x16x128xf32>
    %43 = vector.shape_cast %40 : vector<16x16x128xf32> to vector<1x16x16x128xf32>
    tpu.vector_store %arg4[%c0_52, %c0_53, %c0_54, %c0_55], %43 {strides = array<i32>} : memref<1x16x16x128xf32, #tpu.memory_space<vmem>>, vector<1x16x16x128xf32>,
    %cst_56 = arith.constant dense<0.000000e+00> : vector<128x128xf32>
    %44 = tpu.matmul %39, %39, %cst_56 {dimension_numbers = #tpu.dot_dimension_numbers<[0], [0], [1], [1], [0, 1, 1, 1], [], []>} : vector<256x128xf32>, vector<256x128xf32>, vector<128x128xf32> -> vector<128x128xf32>
    %c0_57 = arith.constant 0 : index
    %c0_58 = arith.constant 0 : index
    %c0_59 = arith.constant 0 : index
    %45 = vector.load %arg5[%c0_57, %c0_58, %c0_59] : memref<1x128x128xf32, #tpu.memory_space<vmem>>, vector<1x128x128xf32>
    %46 = vector.shape_cast %45 : vector<1x128x128xf32> to vector<128x128xf32>
    %47 = vector.shape_cast %44 : vector<128x128xf32> to vector<1x128x128xf32>
    tpu.vector_store %arg5[%c0_57, %c0_58, %c0_59], %47 {strides = array<i32>} : memref<1x128x128xf32, #tpu.memory_space<vmem>>, vector<1x128x128xf32>,
    return
  }
  func.func @transform_0(%arg0: i32) -> (i32, i32, i32, i32) {
    %c0_i32 = arith.constant 0 : i32
    %c0_i32_0 = arith.constant 0 : i32
    %c0_i32_1 = arith.constant 0 : i32
    %c0_i32_2 = arith.constant 0 : i32
    return %arg0, %c0_i32, %c0_i32_0, %c0_i32_1 : i32, i32, i32, i32
  }
  func.func @transform_1(%arg0: i32) -> (i32, i32) {
    %c0_i32 = arith.constant 0 : i32
    %c0_i32_0 = arith.constant 0 : i32
    %c0_i32_1 = arith.constant 0 : i32
    return %c0_i32, %c0_i32_0 : i32, i32
  }
  func.func @transform_2(%arg0: i32) -> (i32, i32) {
    %c0_i32 = arith.constant 0 : i32
    %c0_i32_0 = arith.constant 0 : i32
    %c0_i32_1 = arith.constant 0 : i32
    return %c0_i32, %c0_i32_0 : i32, i32
  }
  func.func @transform_3(%arg0: i32) -> (i32, i32, i32, i32) {
    %c0_i32 = arith.constant 0 : i32
    %c0_i32_0 = arith.constant 0 : i32
    %c0_i32_1 = arith.constant 0 : i32
    %c0_i32_2 = arith.constant 0 : i32
    return %arg0, %c0_i32, %c0_i32_0, %c0_i32_1 : i32, i32, i32, i32
  }
  func.func @transform_4(%arg0: i32) -> (i32, i32, i32) {
    %c0_i32 = arith.constant 0 : i32
    %c0_i32_0 = arith.constant 0 : i32
    %c0_i32_1 = arith.constant 0 : i32
    return %arg0, %c0_i32, %c0_i32_0 : i32, i32, i32
  }
}

</mosaic_0001>

<bundles_post_ra>
// kernel: tpu_custom_call.1
= control target key start
LH: loop header
LB: loop body
LE: loop exit
PB: predicated region body
PF: predicated region fallthrough
CT: control target
= control target key end

     0   :  { %10 = vsyncpa [#allocation5], 0  ;;  %s4448_s0 = inlined_call_operand.vmem [shape: f32[2,16,16,3], index: 0, kind: input, shape index: {}]   ;;  %s4449_s1 = inlined_call_operand.vmem [shape: f32[27,128], index: 1, kind: input, shape index: {}]   ;;  %s4450_s2 = inlined_call_operand.vmem [shape: f32[1,128], index: 2, kind: input, shape index: {}]   ;;  %s4451_s3 = inlined_call_operand.hbm [shape: f32[2,16,16,128], index: 3, kind: output, shape index: {0}]   ;;  %s4452_s4 = inlined_call_operand.hbm [shape: f32[2,128,128], index: 4, kind: output, shape index: {1}]  }
   0x1   :  { %12 = vsyncpa [#allocation5 + $0x1], 0 }
   0x2   :  { %13 = vsyncpa [#allocation7], 0 }
   0x3   :  { %15 = vsyncpa [#allocation7 + $0x1], 0  ;;  %s2976_s15 = smov 0   ;;  %s2978_s16 = smov 0  }
   0x4   :  { %s2980_s17 = smov 0   ;;  %s2982_s18 = smov 0  }
   0x5 LB: > { %s2997_s19 = sadd.s32 4294967295, %s2938_s18   ;;  %s2598_s20 = sadd.s32 4294967294, %s2938_s18   ;;  %s2938_s18 = sphi %s2982_s18, %s4458_s18   ;;  %s2934_s17 = sphi %s2980_s17, %s4457_s17   ;;  %s2930_s16 = sphi %s2978_s16, %s4456_s16   ;;  %s2926_s15 = sphi %s2976_s15, %s4455_s15  }
   0x6   : > { %s3001_s21 = sadd.s32 1, %s2938_s18   ;;  %s96_s22 = sadd.s32 1, %s2934_s17 }
   0x7   : > { %s93_s23 = ssub.s32 %s2938_s18, %s3001_s21  ;;  %p106_p0 = scmp.ne.s32.totalorder %s2934_s17, %s2930_s16 }
   0x8   : > { %p94_p1 = scmp.eq.s32.totalorder %s93_s23, 0  ;;  %p107_p2 = scmp.eq.s32.totalorder %s2997_s19, 1 }
   0x9   : > { %p112_p3 = scmp.ne.s32.totalorder %s2930_s16, %s2926_s15  ;;  %p113_p4 = scmp.eq.s32.totalorder %s2598_s20, 1 }
   0xa   : > { %s3012_s24 = scalar_select %p94_p1, %s2934_s17, %s96_s22  }
   0xb   : > { %p3014_p5 = por %p107_p2, %p106_p0  ;;  %p3018_p6 = por %p113_p4, %p112_p3 }
   0xc   : > { %p2601_p7 = scmp.ge.s32.totalorder %s2938_s18, 1  ;;  %p171_p8 = scmp.lt.s32.totalorder %s2938_s18, 3 }
   0xe   : > { %p172_p9 = pnand %p2601_p7, %p171_p8 }
   0xf   : > { %s2941_s27 = smov (!%p172_p9), 3   ;;  %p202_p10 = scmp.lt.s32.totalorder (!%p172_p9), %s2997_s19, 1 }
  0x10   : > { %175 = sbr.rel (%p172_p9) target bundleno = 1380 (0x564), region = 32  ;;  %s2942_s7 = smov (!%p172_p9), 6  }
  0x11   : > { %s2943_s8 = smov (!%p172_p9), 9   ;;  %s2944_s9 = smov (!%p172_p9), 12  }
  0x12   : > { %s2945_s10 = smov (!%p172_p9), 15   ;;  %s2946_s11 = smov (!%p172_p9), 21  }
  0x13   : > { %s2947_s12 = smov (!%p172_p9), 24   ;;  %s2948_s13 = smov (!%p172_p9), 18  }
  0x14   : > { %s3842_s5 = sand.u32 (!%p172_p9), 1, %s2930_s16  }
  0x15   : > { %vm207_vm0 = vcmask 23552   ;;  %v2940_v0 = vmov 0.0   ;;  %s203_s28 = scalar_select %p202_p10, %s2997_s19, 1  ;;  %vm210_vm1 = vcmask 17408   ;;  %vm552_vm2 = vcmask 48152  }
  0x16   : > { %208 = vst.msk [vmem:[#allocation2] sm:$0xff] %vm207_vm0, %v2940_v0  ;;  %vm745_vm3 = vcmask 72752   ;;  %vm938_vm4 = vcmask 97352   ;;  %vm2074_vm5 = vcmask 1042432   ;;  %vm1131_vm6 = vcmask 121952   ;;  %s2602_s20 = sshll.u32 %s3842_s5, 8 }
  0x17   : > { %209 = vst.msk [vmem:[#allocation2 + $0x8] sm:$0xff] %vm207_vm0, %v2940_v0  ;;  %s2647_s29 = sshll.u32 %s203_s28, 8  ;;  %vm1324_vm7 = vcmask 146552   ;;  %vm1518_vm8 = vcmask 171152   ;;  %vm1711_vm9 = vcmask 195752   ;;  %vm1904_vm10 = vcmask 220352  }
  0x18   : > { %212 = vst.msk [vmem:[#allocation2 + $0x18] sm:$0xff] %vm207_vm0, %v2940_v0  ;;  %s3092_s6 = scalar_lea.vmem %s4448_s0, %s2647_s29  ;;  %vm1977_vm11 = vcmask 220160   ;;  %s3865_s22 = scalar_lea.vmem [#allocation4], %s2602_s20 }
  0x19   : > { %213 = vst.msk [vmem:[#allocation2 + $0x20] sm:$0xff] %vm207_vm0, %v2940_v0  ;;  %v263_v2 = vld [vmem:[%s3092_s6] sm:$0xff]  ;;  %v264_v5 = vld [vmem:[%s3092_s6 + $0x8] sm:$0xff]  ;;  %v270_v8 = vld [vmem:[%s3092_s6 + $0x38] sm:$0xff]  ;;  %s2483_s23 = sshll.u32 %s3865_s22, 4  ;;  %s2466_s28 = scalar_lea.sflag [#allocation5], %s3842_s5  ;;  %s2484_s23 = int_to_ptr.vmem [resolvable:$true] %s2483_s23 }
  0x1a   : > { %215 = vst.msk [vmem:[#allocation2 + $0x30] sm:$0xff] %vm207_vm0, %v2940_v0  ;;  %v267_v6 = vld [vmem:[%s3092_s6 + $0x20] sm:$0xff]  ;;  %v268_v7 = vld [vmem:[%s3092_s6 + $0x28] sm:$0xff]  ;;  %v265_v9 = vld [vmem:[%s3092_s6 + $0x10] sm:$0xff]  ;;  %s2864_s20 = scalar_lea.hbm %s4451_s3, 512 }
  0x1b   : > { %216 = vst.msk [vmem:[#allocation2 + $0x38] sm:$0xff] %vm207_vm0, %v2940_v0  ;;  %v271_v10 = vld [vmem:[%s3092_s6 + $0x40] sm:$0xff]  ;;  %v273_v11 = vld [vmem:[%s3092_s6 + $0x50] sm:$0xff]  ;;  %v266_v12 = vld [vmem:[%s3092_s6 + $0x18] sm:$0xff] }
  0x1c   : > { %218 = vst.msk [vmem:[#allocation2 + $0x48] sm:$0xff] %vm207_vm0, %v2940_v0  ;;  %v274_v13 = vld [vmem:[%s3092_s6 + $0x58] sm:$0xff]  ;;  %v276_v14 = vld [vmem:[%s3092_s6 + $0x68] sm:$0xff]  ;;  %v269_v16 = vld [vmem:[%s3092_s6 + $0x30] sm:$0xff] }
  0x1d   : > { %219 = vst.msk [vmem:[#allocation2 + $0x50] sm:$0xff] %vm207_vm0, %v2940_v0  ;;  %v277_v18 = vld [vmem:[%s3092_s6 + $0x70] sm:$0xff]  ;;  %v279_v19 = vld [vmem:[%s3092_s6 + $0x80] sm:$0xff]  ;;  %v272_v20 = vld [vmem:[%s3092_s6 + $0x48] sm:$0xff] }
  0x1e   : > { %v392_v1 = vld [vmem:[#allocation2 + $0x1] sm:$0xff]  ;;  %221 = vst.msk [vmem:[#allocation2 + $0x60] sm:$0xff] %vm207_vm0, %v2940_v0  ;;  %v282_v23 = vld [vmem:[%s3092_s6 + $0x98] sm:$0xff]  ;;  %v285_v29 = vld [vmem:[%s3092_s6 + $0xb0] sm:$0xff] }
  0x1f   : > { %456 = vrot.lane.b32.xlu0 %v392_v1, %s2941_s27  ;;  %222 = vst.msk [vmem:[#allocation2 + $0x68] sm:$0xff] %vm207_vm0, %v2940_v0  ;;  %v280_v22 = vld [vmem:[%s3092_s6 + $0x88] sm:$0xff]  ;;  %v275_v25 = vld [vmem:[%s3092_s6 + $0x60] sm:$0xff]  ;;  %v278_v30 = vld [vmem:[%s3092_s6 + $0x78] sm:$0xff] }
  0x20   : > { %224 = vst.msk [vmem:[#allocation2 + $0x78] sm:$0xff] %vm207_vm0, %v2940_v0  ;;  %v283_v27 = vld [vmem:[%s3092_s6 + $0xa0] sm:$0xff]  ;;  %v286_v33 = vld [vmem:[%s3092_s6 + $0xb8] sm:$0xff]  ;;  %v288_v35 = vld [vmem:[%s3092_s6 + $0xc8] sm:$0xff] }
  0x21   : > { %225 = vst.msk [vmem:[#allocation2 + $0x80] sm:$0xff] %vm207_vm0, %v2940_v0  ;;  %v281_v36 = vld [vmem:[%s3092_s6 + $0x90] sm:$0xff]  ;;  %v291_v41 = vld [vmem:[%s3092_s6 + $0xe0] sm:$0xff]  ;;  %v284_v42 = vld [vmem:[%s3092_s6 + $0xa8] sm:$0xff] }
  0x22   : > { %227 = vst.msk [vmem:[#allocation2 + $0x90] sm:$0xff] %vm207_vm0, %v2940_v0  ;;  %v289_v39 = vld [vmem:[%s3092_s6 + $0xd0] sm:$0xff]  ;;  %v292_v45 = vld [vmem:[%s3092_s6 + $0xe8] sm:$0xff]  ;;  %v287_v47 = vld [vmem:[%s3092_s6 + $0xc0] sm:$0xff] }
  0x23   : > { %228 = vst.msk [vmem:[#allocation2 + $0x98] sm:$0xff] %vm207_vm0, %v2940_v0  ;;  %v290_v51 = vld [vmem:[%s3092_s6 + $0xd8] sm:$0xff]  ;;  %v328_v61 = vld [vmem:[#allocation2] sm:$0xff] }
  0x24   : > { %230 = vst.msk [vmem:[#allocation2 + $0xa8] sm:$0xff] %vm207_vm0, %v2940_v0 }
  0x25   : > { %231 = vst.msk [vmem:[#allocation2 + $0xb0] sm:$0xff] %vm207_vm0, %v2940_v0 }
  0x26   : > { %233 = vst.msk [vmem:[#allocation2 + $0xc0] sm:$0xff] %vm207_vm0, %v2940_v0 }
  0x27   : > { %234 = vst.msk [vmem:[#allocation2 + $0xc8] sm:$0xff] %vm207_vm0, %v2940_v0 }
  0x28   : > { %236 = vst.msk [vmem:[#allocation2 + $0xd8] sm:$0xff] %vm207_vm0, %v2940_v0 }
  0x29   : > { %237 = vst.msk [vmem:[#allocation2 + $0xe0] sm:$0xff] %vm207_vm0, %v2940_v0 }
  0x2a   : > { %239 = vst.msk [vmem:[#allocation2 + $0xf0] sm:$0xff] %vm207_vm0, %v2940_v0 }
  0x2b   : > { %240 = vst.msk [vmem:[#allocation2 + $0xf8] sm:$0xff] %vm207_vm0, %v2940_v0 }
  0x2c   : > { %242 = vst.msk [vmem:[#allocation2 + $0x108] sm:$0xff] %vm207_vm0, %v2940_v0 }
  0x2d   : > { %243 = vst.msk [vmem:[#allocation2 + $0x110] sm:$0xff] %vm207_vm0, %v2940_v0 }
  0x2e   : > { %245 = vst.msk [vmem:[#allocation2 + $0x120] sm:$0xff] %vm207_vm0, %v2940_v0 }
  0x2f   : > { %246 = vst.msk [vmem:[#allocation2 + $0x128] sm:$0xff] %vm207_vm0, %v2940_v0 }
  0x30   : > { %248 = vst.msk [vmem:[#allocation2 + $0x138] sm:$0xff] %vm207_vm0, %v2940_v0 }
  0x31   : > { %249 = vst.msk [vmem:[#allocation2 + $0x140] sm:$0xff] %vm207_vm0, %v2940_v0 }
  0x32   : > { %251 = vst.msk [vmem:[#allocation2 + $0x150] sm:$0xff] %vm207_vm0, %v2940_v0 }
  0x33   : > { %252 = vst.msk [vmem:[#allocation2 + $0x158] sm:$0xff] %vm207_vm0, %v2940_v0 }
  0x34   : > { %254 = vst.msk [vmem:[#allocation2 + $0x168] sm:$0xff] %vm207_vm0, %v2940_v0 }
  0x35   : > { %255 = vst.msk [vmem:[#allocation2 + $0x170] sm:$0xff] %vm207_vm0, %v2940_v0 }
  0x36   : > { %257 = vst.msk [vmem:[#allocation2 + $0x180] sm:$0xff] %vm207_vm0, %v2940_v0 }
  0x37   : > { %258 = vst.msk [vmem:[#allocation2 + $0x188] sm:$0xff] %vm207_vm0, %v2940_v0 }
  0x38   : > { %260 = vst.msk [vmem:[#allocation2 + $0x198] sm:$0xff] %vm207_vm0, %v2940_v0 }
  0x39   : > { %261 = vst.msk [vmem:[#allocation2 + $0x1a0] sm:$0xff] %vm207_vm0, %v2940_v0 }
  0x3a   : > { %296 = vst.msk [vmem:[#allocation2 + $0x19] sm:$0xff] %vm207_vm0, %v263_v2 }
  0x3b   : > { %211 = vst.msk [vmem:[#allocation2 + $0x10] sm:$0x3] %vm210_vm1, %v2940_v0 }
  0x3c   : > { %214 = vst.msk [vmem:[#allocation2 + $0x28] sm:$0x3] %vm210_vm1, %v2940_v0 }
  0x3d   : > { %217 = vst.msk [vmem:[#allocation2 + $0x40] sm:$0x3] %vm210_vm1, %v2940_v0 }
  0x3e   : > { %220 = vst.msk [vmem:[#allocation2 + $0x58] sm:$0x3] %vm210_vm1, %v2940_v0 }
  0x3f   : > { %223 = vst.msk [vmem:[#allocation2 + $0x70] sm:$0x3] %vm210_vm1, %v2940_v0 }
  0x40   : > { %226 = vst.msk [vmem:[#allocation2 + $0x88] sm:$0x3] %vm210_vm1, %v2940_v0 }
  0x41   : > { %v3118_v3 = vld [vmem:[#allocation2 + $0x19] sm:$0xff]  ;;  %229 = vst.msk [vmem:[#allocation2 + $0xa0] sm:$0x3] %vm210_vm1, %v2940_v0 }
  0x42   : > { %460 = vrot.lane.b32.xlu1 %v3118_v3, %s2941_s27  ;;  %v393_v4 = vld [vmem:[#allocation2 + $0x9] sm:$0xff]  ;;  %232 = vst.msk [vmem:[#allocation2 + $0xb8] sm:$0x3] %vm210_vm1, %v2940_v0 }
  0x43   : > { %458 = vrot.lane.b32.xlu0 %v393_v4, %s2941_s27  ;;  %235 = vst.msk [vmem:[#allocation2 + $0xd0] sm:$0x3] %vm210_vm1, %v2940_v0  ;;  %v586_v1 = vld [vmem:[#allocation2 + $0xa] sm:$0xff]  ;;  %v3273_v4 = vld [vmem:[#allocation2 + $0x18] sm:$0xff] }
  0x44   : > { %238 = vst.msk [vmem:[#allocation2 + $0xe8] sm:$0x3] %vm210_vm1, %v2940_v0 }
  0x45   : > { %241 = vst.msk [vmem:[#allocation2 + $0x100] sm:$0x3] %vm210_vm1, %v2940_v0 }
  0x46   : > { %244 = vst.msk [vmem:[#allocation2 + $0x118] sm:$0x3] %vm210_vm1, %v2940_v0 }
  0x47   : > { %247 = vst.msk [vmem:[#allocation2 + $0x130] sm:$0x3] %vm210_vm1, %v2940_v0 }
  0x48   : > { %250 = vst.msk [vmem:[#allocation2 + $0x148] sm:$0x3] %vm210_vm1, %v2940_v0 }
  0x49   : > { %253 = vst.msk [vmem:[#allocation2 + $0x160] sm:$0x3] %vm210_vm1, %v2940_v0 }
  0x4a   : > { %256 = vst.msk [vmem:[#allocation2 + $0x178] sm:$0x3] %vm210_vm1, %v2940_v0 }
  0x4b   : > { %259 = vst.msk [vmem:[#allocation2 + $0x190] sm:$0x3] %vm210_vm1, %v2940_v0 }
  0x4c   : > { %262 = vst.msk [vmem:[#allocation2 + $0x1a8] sm:$0x3] %vm210_vm1, %v2940_v0 }
  0x4d   : > { %297 = vst.msk [vmem:[#allocation2 + $0x21] sm:$0xff] %vm207_vm0, %v264_v5  ;;  %v329_v5 = vld [vmem:[#allocation2 + $0x8] sm:$0xff] }
  0x4e   : > { %300 = vst.msk [vmem:[#allocation2 + $0x49] sm:$0xff] %vm207_vm0, %v267_v6 }
  0x4f   : > { %301 = vst.msk [vmem:[#allocation2 + $0x51] sm:$0xff] %vm207_vm0, %v268_v7 }
  0x50   : > { %303 = vst.msk [vmem:[#allocation2 + $0x69] sm:$0xff] %vm207_vm0, %v270_v8 }
  0x51   : > { %298 = vst.msk [vmem:[#allocation2 + $0x31] sm:$0xff] %vm207_vm0, %v265_v9  ;;  %v585_v9 = vld [vmem:[#allocation2 + $0x2] sm:$0xff] }
  0x52   : > { %304 = vst.msk [vmem:[#allocation2 + $0x79] sm:$0xff] %vm207_vm0, %v271_v10 }
  0x53   : > { %306 = vst.msk [vmem:[#allocation2 + $0x91] sm:$0xff] %vm207_vm0, %v273_v11 }
  0x54   : > { %v3164_v15 = vld [vmem:[#allocation2 + $0x21] sm:$0xff]  ;;  %299 = vst.msk [vmem:[#allocation2 + $0x39] sm:$0xff] %vm207_vm0, %v266_v12 }
  0x55   : > { %462 = vrot.lane.b32.xlu1 %v3164_v15, %s2941_s27  ;;  %v3170_v17 = vld [vmem:[#allocation2 + $0x49] sm:$0xff]  ;;  %307 = vst.msk [vmem:[#allocation2 + $0x99] sm:$0xff] %vm207_vm0, %v274_v13  ;;  %v3283_v7 = vld [vmem:[#allocation2 + $0x1a] sm:$0xff] }
  0x56   : > { %468 = vrot.lane.b32.xlu0 %v3170_v17, %s2941_s27  ;;  %309 = vst.msk [vmem:[#allocation2 + $0xb1] sm:$0xff] %vm207_vm0, %v276_v14  ;;  %v3188_v24 = vld [vmem:[#allocation2 + $0x51] sm:$0xff]  ;;  %v3291_v10 = vld [vmem:[#allocation2 + $0x20] sm:$0xff]  ;;  %v3295_v11 = vld [vmem:[#allocation2 + $0x48] sm:$0xff] }
  0x57   : > { %302 = vst.msk [vmem:[#allocation2 + $0x61] sm:$0xff] %vm207_vm0, %v269_v16  ;;  %v3192_v26 = vld [vmem:[#allocation2 + $0x69] sm:$0xff]  ;;  %v3306_v14 = vld [vmem:[#allocation2 + $0x52] sm:$0xff] }
  0x58   : > { %v3180_v21 = vld [vmem:[#allocation2 + $0x31] sm:$0xff]  ;;  %310 = vst.msk [vmem:[#allocation2 + $0xc1] sm:$0xff] %vm207_vm0, %v277_v18  ;;  %v3312_v16 = vld [vmem:[#allocation2 + $0x22] sm:$0xff] }
  0x59   : > { %464 = vrot.lane.b32.xlu2 %v3180_v21, %s2941_s27  ;;  %312 = vst.msk [vmem:[#allocation2 + $0xd9] sm:$0xff] %vm207_vm0, %v279_v19  ;;  %v3211_v31 = vld [vmem:[#allocation2 + $0x79] sm:$0xff]  ;;  %v3264_v62 = vld [vmem:[#allocation2 + $0x30] sm:$0xff] }
  0x5a   : > { %305 = vst.msk [vmem:[#allocation2 + $0x81] sm:$0xff] %vm207_vm0, %v272_v20  ;;  %v404_v32 = vld [vmem:[#allocation2 + $0x91] sm:$0xff] }
  0x5b   : > { %313 = vst.msk [vmem:[#allocation2 + $0xe1] sm:$0xff] %vm207_vm0, %v280_v22  ;;  %v3202_v28 = vld [vmem:[#allocation2 + $0x39] sm:$0xff]  ;;  %v3314_v18 = vld [vmem:[#allocation2 + $0x50] sm:$0xff] }
  0x5c   : > { %315 = vst.msk [vmem:[#allocation2 + $0xf9] sm:$0xff] %vm207_vm0, %v282_v23  ;;  %v405_v37 = vld [vmem:[#allocation2 + $0x99] sm:$0xff] }
  0x5d   : > { %470 = vrot.lane.b32.xlu1 %v3188_v24, %s2941_s27  ;;  %308 = vst.msk [vmem:[#allocation2 + $0xa9] sm:$0xff] %vm207_vm0, %v275_v25  ;;  %v407_v38 = vld [vmem:[#allocation2 + $0xb1] sm:$0xff]  ;;  %v3302_v13 = vld [vmem:[#allocation2 + $0x3a] sm:$0xff] }
  0x5e   : > { %474 = vrot.lane.b32.xlu0 %v3192_v26, %s2941_s27  ;;  %316 = vst.msk [vmem:[#allocation2 + $0x109] sm:$0xff] %vm207_vm0, %v283_v27  ;;  %v3218_v34 = vld [vmem:[#allocation2 + $0x61] sm:$0xff]  ;;  %v3277_v6 = vld [vmem:[#allocation2 + $0x38] sm:$0xff] }
  0x5f   : > { %318 = vst.msk [vmem:[#allocation2 + $0x121] sm:$0xff] %vm207_vm0, %v285_v29  ;;  %v408_v43 = vld [vmem:[#allocation2 + $0xc1] sm:$0xff]  ;;  %v3285_v8 = vld [vmem:[#allocation2 + $0x32] sm:$0xff] }
  0x60   : > { %311 = vst.msk [vmem:[#allocation2 + $0xc9] sm:$0xff] %vm207_vm0, %v278_v30  ;;  %v410_v44 = vld [vmem:[#allocation2 + $0xd9] sm:$0xff]  ;;  %v3318_v19 = vld [vmem:[#allocation2 + $0x68] sm:$0xff] }
  0x61   : > { %466 = vrot.lane.b32.xlu2 %v3202_v28, %s2941_s27  ;;  %319 = vst.msk [vmem:[#allocation2 + $0x129] sm:$0xff] %vm207_vm0, %v286_v33  ;;  %v403_v40 = vld [vmem:[#allocation2 + $0x81] sm:$0xff]  ;;  %v3338_v30 = vld [vmem:[#allocation2 + $0x4a] sm:$0xff] }
  0x62   : > { %321 = vst.msk [vmem:[#allocation2 + $0x141] sm:$0xff] %vm207_vm0, %v288_v35  ;;  %v411_v48 = vld [vmem:[#allocation2 + $0xe1] sm:$0xff]  ;;  %v3345_v33 = vld [vmem:[#allocation2 + $0x90] sm:$0xff] }
  0x63   : > { %314 = vst.msk [vmem:[#allocation2 + $0xf1] sm:$0xff] %vm207_vm0, %v281_v36  ;;  %v413_v49 = vld [vmem:[#allocation2 + $0xf9] sm:$0xff]  ;;  %v3326_v22 = vld [vmem:[#allocation2 + $0x62] sm:$0xff] }
  0x64   : > { %322 = vst.msk [vmem:[#allocation2 + $0x151] sm:$0xff] %vm207_vm0, %v289_v39  ;;  %v406_v46 = vld [vmem:[#allocation2 + $0xa9] sm:$0xff]  ;;  %v3300_v12 = vld [vmem:[#allocation2 + $0x60] sm:$0xff] }
  0x65   : > { %476 = vrot.lane.b32.xlu1 %v3211_v31, %s2941_s27  ;;  %324 = vst.msk [vmem:[#allocation2 + $0x169] sm:$0xff] %vm207_vm0, %v291_v41  ;;  %v3247_v52 = vld [vmem:[#allocation2 + $0x109] sm:$0xff]  ;;  %v3324_v20 = vld [vmem:[#allocation2 + $0x80] sm:$0xff] }
  0x66   : > { %480 = vrot.lane.b32.xlu0 %v404_v32, %s2941_s27  ;;  %317 = vst.msk [vmem:[#allocation2 + $0x111] sm:$0xff] %vm207_vm0, %v284_v42  ;;  %v416_v53 = vld [vmem:[#allocation2 + $0x121] sm:$0xff]  ;;  %v3341_v32 = vld [vmem:[#allocation2 + $0x78] sm:$0xff]  ;;  %v3361_v39 = vld [vmem:[#allocation2 + $0x6a] sm:$0xff] }
  0x67   : > { %325 = vst.msk [vmem:[#allocation2 + $0x171] sm:$0xff] %vm207_vm0, %v292_v45  ;;  %v409_v50 = vld [vmem:[#allocation2 + $0xc9] sm:$0xff]  ;;  %v3330_v23 = vld [vmem:[#allocation2 + $0x7a] sm:$0xff] }
  0x68   : > { %320 = vst.msk [vmem:[#allocation2 + $0x139] sm:$0xff] %vm207_vm0, %v287_v47  ;;  %v417_v55 = vld [vmem:[#allocation2 + $0x129] sm:$0xff]  ;;  %v3382_v47 = vld [vmem:[#allocation2 + $0xc0] sm:$0xff] }
  0x69   : > { %472 = vrot.lane.b32.xlu2 %v3218_v34, %s2941_s27  ;;  %323 = vst.msk [vmem:[#allocation2 + $0x159] sm:$0xff] %vm207_vm0, %v290_v51  ;;  %v419_v56 = vld [vmem:[#allocation2 + $0x141] sm:$0xff]  ;;  %v3367_v41 = vld [vmem:[#allocation2 + $0xb0] sm:$0xff] }
  0x6a   : > { %v3252_v54 = vld [vmem:[#allocation2 + $0xf1] sm:$0xff]  ;;  %360 = vst.msk [vmem:[#allocation3] sm:$0xff] %vm207_vm0, %v328_v61  ;;  %v3351_v35 = vld [vmem:[#allocation2 + $0xa8] sm:$0xff] }
  0x6b   : > { %v420_v58 = vld [vmem:[#allocation2 + $0x151] sm:$0xff]  ;;  %364 = vst.msk [vmem:[#allocation3 + $0x20] sm:$0xff] %vm207_vm0, %v3264_v62  ;;  %v3353_v36 = vld [vmem:[#allocation2 + $0x82] sm:$0xff] }
  0x6c   : > { %v422_v59 = vld [vmem:[#allocation2 + $0x169] sm:$0xff]  ;;  %362 = vst.msk [vmem:[#allocation3 + $0x10] sm:$0xff] %vm207_vm0, %v3273_v4 }
  0x6d   : > { %482 = vrot.lane.b32.xlu1 %v405_v37, %s2941_s27  ;;  %v3258_v57 = vld [vmem:[#allocation2 + $0x111] sm:$0xff]  ;;  %361 = vst.msk [vmem:[#allocation3 + $0x8] sm:$0xff] %vm207_vm0, %v329_v5  ;;  %v598_v37 = vld [vmem:[#allocation2 + $0x9a] sm:$0xff]  ;;  %v3373_v42 = vld [vmem:[#allocation2 + $0xc8] sm:$0xff] }
  0x6e   : > { %486 = vrot.lane.b32.xlu0 %v407_v38, %s2941_s27  ;;  %v423_v0 = vld [vmem:[#allocation2 + $0x171] sm:$0xff]  ;;  %365 = vst.msk [vmem:[#allocation3 + $0x28] sm:$0xff] %vm207_vm0, %v3277_v6 }
  0x6f   : > { %v418_v60 = vld [vmem:[#allocation2 + $0x139] sm:$0xff]  ;;  %363 = vst.msk [vmem:[#allocation3 + $0x18] sm:$0xff] %vm207_vm0, %v3291_v10  ;;  %v3392_v51 = vld [vmem:[#allocation2 + $0xf0] sm:$0xff] }
  0x70   : > { %v421_v2 = vld [vmem:[#allocation2 + $0x159] sm:$0xff]  ;;  %366 = vst.msk [vmem:[#allocation3 + $0x30] sm:$0xff] %vm207_vm0, %v3295_v11 }
  0x71   : > { %478 = vrot.lane.b32.xlu2 %v403_v40, %s2941_s27  ;;  %368 = vst.msk [vmem:[#allocation3 + $0x40] sm:$0xff] %vm207_vm0, %v3300_v12  ;;  %v3363_v40 = vld [vmem:[#allocation2 + $0x98] sm:$0xff] }
  0x72   : > { %367 = vst.msk [vmem:[#allocation3 + $0x38] sm:$0xff] %vm207_vm0, %v3314_v18 }
  0x73   : > { %369 = vst.msk [vmem:[#allocation3 + $0x48] sm:$0xff] %vm207_vm0, %v3318_v19 }
  0x74   : > { %371 = vst.msk [vmem:[#allocation3 + $0x58] sm:$0xff] %vm207_vm0, %v3324_v20 }
  0x75   : > { %488 = vrot.lane.b32.xlu1 %v408_v43, %s2941_s27  ;;  %370 = vst.msk [vmem:[#allocation3 + $0x50] sm:$0xff] %vm207_vm0, %v3341_v32  ;;  %v599_v43 = vld [vmem:[#allocation2 + $0xaa] sm:$0xff] }
  0x76   : > { %492 = vrot.lane.b32.xlu0 %v410_v44, %s2941_s27  ;;  %372 = vst.msk [vmem:[#allocation3 + $0x60] sm:$0xff] %vm207_vm0, %v3345_v33  ;;  %v601_v44 = vld [vmem:[#allocation2 + $0xc2] sm:$0xff] }
  0x77   : > { %374 = vst.msk [vmem:[#allocation3 + $0x70] sm:$0xff] %vm207_vm0, %v3351_v35 }
  0x78   : > { %373 = vst.msk [vmem:[#allocation3 + $0x68] sm:$0xff] %vm207_vm0, %v3363_v40 }
  0x79   : > { %484 = vrot.lane.b32.xlu2 %v406_v46, %s2941_s27  ;;  %375 = vst.msk [vmem:[#allocation3 + $0x78] sm:$0xff] %vm207_vm0, %v3367_v41  ;;  %v3380_v46 = vld [vmem:[#allocation2 + $0x92] sm:$0xff] }
  0x7a   : > { %377 = vst.msk [vmem:[#allocation3 + $0x88] sm:$0xff] %vm207_vm0, %v3373_v42 }
  0x7b   : > { %376 = vst.msk [vmem:[#allocation3 + $0x80] sm:$0xff] %vm207_vm0, %v3382_v47 }
  0x7c   : > { %380 = vst.msk [vmem:[#allocation3 + $0xa0] sm:$0xff] %vm207_vm0, %v3392_v51 }
  0x7d   : > { %494 = vrot.lane.b32.xlu1 %v411_v48, %s2941_s27 }
  0x7e   : > { %498 = vrot.lane.b32.xlu0 %v413_v49, %s2941_s27 }
  0x81   : > { %490 = vrot.lane.b32.xlu2 %v409_v50, %s2941_s27  ;;  %v3387_v50 = vld [vmem:[#allocation2 + $0xd8] sm:$0xff] }
  0x82   : > { %378 = vst.msk [vmem:[#allocation3 + $0x90] sm:$0xff] %vm207_vm0, %v3387_v50 }
  0x85   : > { %500 = vrot.lane.b32.xlu1 %v3247_v52, %s2941_s27 }
  0x86   : > { %504 = vrot.lane.b32.xlu0 %v416_v53, %s2941_s27  ;;  %v602_v53 = vld [vmem:[#allocation2 + $0xca] sm:$0xff] }
  0x89   : > { %496 = vrot.lane.b32.xlu2 %v3252_v54, %s2941_s27 }
  0x8d   : > { %506 = vrot.lane.b32.xlu1 %v417_v55, %s2941_s27  ;;  %v604_v55 = vld [vmem:[#allocation2 + $0xe2] sm:$0xff] }
  0x8e   : > { %510 = vrot.lane.b32.xlu0 %v419_v56, %s2941_s27 }
  0x91   : > { %502 = vrot.lane.b32.xlu2 %v3258_v57, %s2941_s27  ;;  %v457_v63 = vpop.permute.xlu0 %456 }
  0x92   : > { %553 = vst.msk [vmem:[#allocation3] sm:$0xff] %vm552_vm2, %v457_v63  ;;  %v3403_v63 = vld [vmem:[#allocation2 + $0xf8] sm:$0xff] }
  0x93   : > { %381 = vst.msk [vmem:[#allocation3 + $0xa8] sm:$0xff] %vm207_vm0, %v3403_v63 }
  0x95   : > { %512 = vrot.lane.b32.xlu1 %v420_v58, %s2941_s27  ;;  %v600_v58 = vld [vmem:[#allocation2 + $0xb2] sm:$0xff] }
  0x96   : > { %516 = vrot.lane.b32.xlu0 %v422_v59, %s2941_s27  ;;  %v347_v59 = vld [vmem:[#allocation2 + $0xe0] sm:$0xff] }
  0x97   : > { %379 = vst.msk [vmem:[#allocation3 + $0x98] sm:$0xff] %vm207_vm0, %v347_v59  ;;  %v611_v59 = vld [vmem:[#allocation2 + $0x13a] sm:$0xff] }
  0x99   : > { %508 = vrot.lane.b32.xlu2 %v418_v60, %s2941_s27 }
  0x9d   : > { %518 = vrot.lane.b32.xlu1 %v423_v0, %s2941_s27  ;;  %v3407_v0 = vld [vmem:[#allocation2 + $0x110] sm:$0xff] }
  0x9e   : > { %651 = vrot.lane.b32.xlu0 %v586_v1, %s2942_s7  ;;  %v3409_v1 = vld [vmem:[#allocation2 + $0xf2] sm:$0xff]  ;;  %383 = vst.msk [vmem:[#allocation3 + $0xb8] sm:$0xff] %vm207_vm0, %v3407_v0 }
  0xa1   : > { %514 = vrot.lane.b32.xlu2 %v421_v2, %s2941_s27  ;;  %v3413_v2 = vld [vmem:[#allocation2 + $0x10a] sm:$0xff] }
  0xa5   : > { %653 = vrot.lane.b32.xlu1 %v3283_v7, %s2942_s7 }
  0xa6   : > { %657 = vrot.lane.b32.xlu0 %v3285_v8, %s2942_s7 }
  0xa9   : > { %649 = vrot.lane.b32.xlu2 %v585_v9, %s2942_s7  ;;  %v603_v9 = vld [vmem:[#allocation2 + $0xda] sm:$0xff] }
  0xad   : > { %659 = vrot.lane.b32.xlu1 %v3302_v13, %s2942_s7 }
  0xae   : > { %663 = vrot.lane.b32.xlu0 %v3306_v14, %s2942_s7 }
  0xb1   : > { %655 = vrot.lane.b32.xlu2 %v3312_v16, %s2942_s7 }
  0xb3   : > { %v465_v25 = vpop.permute.xlu2 %464 }
  0xb4   : > { %557 = vst.msk [vmem:[#allocation3 + $0x20] sm:$0xff] %vm552_vm2, %v465_v25  ;;  %v461_v27 = vpop.permute.xlu1 %460  ;;  %v3422_v25 = vld [vmem:[#allocation2 + $0x108] sm:$0xff] }
  0xb5   : > { %665 = vrot.lane.b32.xlu1 %v3326_v22, %s2942_s7  ;;  %555 = vst.msk [vmem:[#allocation3 + $0x10] sm:$0xff] %vm552_vm2, %v461_v27  ;;  %v459_v29 = vpop.permute.xlu0 %458 }
  0xb6   : > { %669 = vrot.lane.b32.xlu0 %v3330_v23, %s2942_s7  ;;  %554 = vst.msk [vmem:[#allocation3 + $0x8] sm:$0xff] %vm552_vm2, %v459_v29 }
  0xb7   : > { %382 = vst.msk [vmem:[#allocation3 + $0xb0] sm:$0xff] %vm207_vm0, %v3422_v25 }
  0xb9   : > { %661 = vrot.lane.b32.xlu2 %v3338_v30, %s2942_s7 }
  0xbb   : > { %v467_v38 = vpop.permute.xlu2 %466 }
  0xbc   : > { %558 = vst.msk [vmem:[#allocation3 + $0x28] sm:$0xff] %vm552_vm2, %v467_v38  ;;  %v3431_v38 = vld [vmem:[#allocation2 + $0x138] sm:$0xff] }
  0xbd   : > { %671 = vrot.lane.b32.xlu1 %v3353_v36, %s2942_s7  ;;  %386 = vst.msk [vmem:[#allocation3 + $0xd0] sm:$0xff] %vm207_vm0, %v3431_v38 }
  0xbe   : > { %675 = vrot.lane.b32.xlu0 %v598_v37, %s2942_s7  ;;  %v3427_v37 = vld [vmem:[#allocation2 + $0x120] sm:$0xff] }
  0xbf   : > { %384 = vst.msk [vmem:[#allocation3 + $0xc0] sm:$0xff] %vm207_vm0, %v3427_v37 }
  0xc1   : > { %667 = vrot.lane.b32.xlu2 %v3361_v39, %s2942_s7 }
  0xc3   : > { %v473_v45 = vpop.permute.xlu2 %472 }
  0xc4   : > { %561 = vst.msk [vmem:[#allocation3 + $0x40] sm:$0xff] %vm552_vm2, %v473_v45 }
  0xc5   : > { %677 = vrot.lane.b32.xlu1 %v599_v43, %s2942_s7  ;;  %v3433_v43 = vld [vmem:[#allocation2 + $0x112] sm:$0xff] }
  0xc6   : > { %681 = vrot.lane.b32.xlu0 %v601_v44, %s2942_s7  ;;  %v3437_v44 = vld [vmem:[#allocation2 + $0x12a] sm:$0xff] }
  0xc7   : > { %v463_v48 = vpop.permute.xlu1 %462 }
  0xc8   : > { %556 = vst.msk [vmem:[#allocation3 + $0x18] sm:$0xff] %vm552_vm2, %v463_v48  ;;  %v469_v49 = vpop.permute.xlu0 %468  ;;  %v3446_v48 = vld [vmem:[#allocation2 + $0xfa] sm:$0xff] }
  0xc9   : > { %559 = vst.msk [vmem:[#allocation3 + $0x30] sm:$0xff] %vm552_vm2, %v469_v49  ;;  %673 = vrot.lane.b32.xlu2 %v3380_v46, %s2942_s7  ;;  %v3448_v49 = vld [vmem:[#allocation2 + $0x128] sm:$0xff] }
  0xca   : > { %385 = vst.msk [vmem:[#allocation3 + $0xc8] sm:$0xff] %vm207_vm0, %v3448_v49 }
  0xcb   : > { %v479_v56 = vpop.permute.xlu2 %478 }
  0xcc   : > { %564 = vst.msk [vmem:[#allocation3 + $0x58] sm:$0xff] %vm552_vm2, %v479_v56  ;;  %v3453_v56 = vld [vmem:[#allocation2 + $0x140] sm:$0xff] }
  0xcd   : > { %683 = vrot.lane.b32.xlu1 %v602_v53, %s2942_s7  ;;  %387 = vst.msk [vmem:[#allocation3 + $0xd8] sm:$0xff] %vm207_vm0, %v3453_v56 }
  0xce   : > { %687 = vrot.lane.b32.xlu0 %v604_v55, %s2942_s7 }
  0xcf   : > { %v471_v60 = vpop.permute.xlu1 %470 }
  0xd0   : > { %560 = vst.msk [vmem:[#allocation3 + $0x38] sm:$0xff] %vm552_vm2, %v471_v60  ;;  %v475_v61 = vpop.permute.xlu0 %474  ;;  %v613_v60 = vld [vmem:[#allocation2 + $0x152] sm:$0xff] }
  0xd1   : > { %562 = vst.msk [vmem:[#allocation3 + $0x48] sm:$0xff] %vm552_vm2, %v475_v61  ;;  %679 = vrot.lane.b32.xlu2 %v600_v58, %s2942_s7  ;;  %v357_v58 = vld [vmem:[#allocation2 + $0x158] sm:$0xff] }
  0xd2   : > { %389 = vst.msk [vmem:[#allocation3 + $0xe8] sm:$0xff] %vm207_vm0, %v357_v58 }
  0xd3   : > { %v485_v5 = vpop.permute.xlu2 %484 }
  0xd4   : > { %567 = vst.msk [vmem:[#allocation3 + $0x70] sm:$0xff] %vm552_vm2, %v485_v5  ;;  %v3464_v5 = vld [vmem:[#allocation2 + $0x122] sm:$0xff] }
  0xd5   : > { %689 = vrot.lane.b32.xlu1 %v3409_v1, %s2942_s7 }
  0xd6   : > { %693 = vrot.lane.b32.xlu0 %v3413_v2, %s2942_s7 }
  0xd7   : > { %v477_v27 = vpop.permute.xlu1 %476 }
  0xd8   : > { %563 = vst.msk [vmem:[#allocation3 + $0x50] sm:$0xff] %vm552_vm2, %v477_v27  ;;  %v481_v29 = vpop.permute.xlu0 %480 }
  0xd9   : > { %565 = vst.msk [vmem:[#allocation3 + $0x60] sm:$0xff] %vm552_vm2, %v481_v29  ;;  %685 = vrot.lane.b32.xlu2 %v603_v9, %s2942_s7  ;;  %v356_v9 = vld [vmem:[#allocation2 + $0x150] sm:$0xff] }
  0xda   : > { %388 = vst.msk [vmem:[#allocation3 + $0xe0] sm:$0xff] %vm207_vm0, %v356_v9 }
  0xdb   : > { %v491_v45 = vpop.permute.xlu2 %490 }
  0xdc   : > { %570 = vst.msk [vmem:[#allocation3 + $0x88] sm:$0xff] %vm552_vm2, %v491_v45  ;;  %v358_v45 = vld [vmem:[#allocation2 + $0x168] sm:$0xff] }
  0xdd   : > { %695 = vrot.lane.b32.xlu1 %v3433_v43, %s2942_s7  ;;  %390 = vst.msk [vmem:[#allocation3 + $0xf0] sm:$0xff] %vm207_vm0, %v358_v45 }
  0xde   : > { %699 = vrot.lane.b32.xlu0 %v3437_v44, %s2942_s7 }
  0xdf   : > { %v483_v53 = vpop.permute.xlu1 %482 }
  0xe0   : > { %566 = vst.msk [vmem:[#allocation3 + $0x68] sm:$0xff] %vm552_vm2, %v483_v53  ;;  %v487_v55 = vpop.permute.xlu0 %486  ;;  %v614_v53 = vld [vmem:[#allocation2 + $0x15a] sm:$0xff] }
  0xe1   : > { %568 = vst.msk [vmem:[#allocation3 + $0x78] sm:$0xff] %vm552_vm2, %v487_v55  ;;  %691 = vrot.lane.b32.xlu2 %v3446_v48, %s2942_s7  ;;  %v616_v55 = vld [vmem:[#allocation2 + $0x172] sm:$0xff] }
  0xe3   : > { %v497_v61 = vpop.permute.xlu2 %496 }
  0xe4   : > { %573 = vst.msk [vmem:[#allocation3 + $0xa0] sm:$0xff] %vm552_vm2, %v497_v61 }
  0xe5   : > { %701 = vrot.lane.b32.xlu1 %v611_v59, %s2942_s7  ;;  %v3475_v59 = vld [vmem:[#allocation2 + $0x142] sm:$0xff] }
  0xe6   : > { %705 = vrot.lane.b32.xlu0 %v613_v60, %s2942_s7  ;;  %v359_v60 = vld [vmem:[#allocation2 + $0x170] sm:$0xff] }
  0xe7   : > { %v489_v27 = vpop.permute.xlu1 %488  ;;  %391 = vst.msk [vmem:[#allocation3 + $0xf8] sm:$0xff] %vm207_vm0, %v359_v60 }
  0xe8   : > { %569 = vst.msk [vmem:[#allocation3 + $0x80] sm:$0xff] %vm552_vm2, %v489_v27  ;;  %v493_v29 = vpop.permute.xlu0 %492 }
  0xe9   : > { %571 = vst.msk [vmem:[#allocation3 + $0x90] sm:$0xff] %vm552_vm2, %v493_v29  ;;  %697 = vrot.lane.b32.xlu2 %v3464_v5, %s2942_s7  ;;  %v615_v29 = vld [vmem:[#allocation2 + $0x16a] sm:$0xff] }
  0xeb   : > { %v503_v58 = vpop.permute.xlu2 %502 }
  0xec   : > { %576 = vst.msk [vmem:[#allocation3 + $0xb8] sm:$0xff] %vm552_vm2, %v503_v58 }
  0xed   : > { %707 = vrot.lane.b32.xlu1 %v614_v53, %s2942_s7 }
  0xee   : > { %711 = vrot.lane.b32.xlu0 %v616_v55, %s2942_s7 }
  0xef   : > { %v495_v61 = vpop.permute.xlu1 %494 }
  0xf0   : > { %572 = vst.msk [vmem:[#allocation3 + $0x98] sm:$0xff] %vm552_vm2, %v495_v61  ;;  %v499_v9 = vpop.permute.xlu0 %498 }
  0xf1   : > { %574 = vst.msk [vmem:[#allocation3 + $0xa8] sm:$0xff] %vm552_vm2, %v499_v9  ;;  %703 = vrot.lane.b32.xlu2 %v3475_v59, %s2942_s7 }
  0xf3   : > { %v509_v27 = vpop.permute.xlu2 %508 }
  0xf4   : > { %579 = vst.msk [vmem:[#allocation3 + $0xd0] sm:$0xff] %vm552_vm2, %v509_v27 }
  0xf5   : > { %842 = vrot.lane.b32.xlu1 %v3273_v4, %s2943_s8 }
  0xf6   : > { %846 = vrot.lane.b32.xlu0 %v3264_v62, %s2943_s8 }
  0xf7   : > { %v501_v45 = vpop.permute.xlu1 %500 }
  0xf8   : > { %575 = vst.msk [vmem:[#allocation3 + $0xb0] sm:$0xff] %vm552_vm2, %v501_v45  ;;  %v505_v53 = vpop.permute.xlu0 %504 }
  0xf9   : > { %577 = vst.msk [vmem:[#allocation3 + $0xc0] sm:$0xff] %vm552_vm2, %v505_v53  ;;  %709 = vrot.lane.b32.xlu2 %v615_v29, %s2942_s7 }
  0xfb   : > { %v515_v55 = vpop.permute.xlu2 %514 }
  0xfc   : > { %582 = vst.msk [vmem:[#allocation3 + $0xe8] sm:$0xff] %vm552_vm2, %v515_v55 }
  0xfd   : > { %848 = vrot.lane.b32.xlu1 %v3277_v6, %s2943_s8 }
  0xfe   : > { %852 = vrot.lane.b32.xlu0 %v3314_v18, %s2943_s8 }
  0xff   : > { %v507_v4 = vpop.permute.xlu1 %506 }
 0x100   : > { %578 = vst.msk [vmem:[#allocation3 + $0xc8] sm:$0xff] %vm552_vm2, %v507_v4  ;;  %v511_v58 = vpop.permute.xlu0 %510 }
 0x101   : > { %580 = vst.msk [vmem:[#allocation3 + $0xd8] sm:$0xff] %vm552_vm2, %v511_v58  ;;  %844 = vrot.lane.b32.xlu2 %v3291_v10, %s2943_s8 }
 0x103   : > { %v650_v60 = vpop.permute.xlu2 %649 }
 0x104   : > { %746 = vst.msk [vmem:[#allocation3] sm:$0xff] %vm745_vm3, %v650_v60 }
 0x105   : > { %854 = vrot.lane.b32.xlu1 %v3300_v12, %s2943_s8 }
 0x106   : > { %858 = vrot.lane.b32.xlu0 %v3341_v32, %s2943_s8 }
 0x107   : > { %v513_v61 = vpop.permute.xlu1 %512 }
 0x108   : > { %581 = vst.msk [vmem:[#allocation3 + $0xe0] sm:$0xff] %vm552_vm2, %v513_v61  ;;  %v517_v9 = vpop.permute.xlu0 %516 }
 0x109   : > { %583 = vst.msk [vmem:[#allocation3 + $0xf0] sm:$0xff] %vm552_vm2, %v517_v9  ;;  %850 = vrot.lane.b32.xlu2 %v3295_v11, %s2943_s8 }
 0x10b   : > { %v656_v10 = vpop.permute.xlu2 %655 }
 0x10c   : > { %749 = vst.msk [vmem:[#allocation3 + $0x18] sm:$0xff] %vm745_vm3, %v656_v10 }
 0x10d   : > { %860 = vrot.lane.b32.xlu1 %v3324_v20, %s2943_s8 }
 0x10e   : > { %864 = vrot.lane.b32.xlu0 %v3363_v40, %s2943_s8 }
 0x10f   : > { %v519_v27 = vpop.permute.xlu1 %518 }
 0x110   : > { %584 = vst.msk [vmem:[#allocation3 + $0xf8] sm:$0xff] %vm552_vm2, %v519_v27  ;;  %v652_v29 = vpop.permute.xlu0 %651 }
 0x111   : > { %747 = vst.msk [vmem:[#allocation3 + $0x8] sm:$0xff] %vm745_vm3, %v652_v29  ;;  %856 = vrot.lane.b32.xlu2 %v3318_v19, %s2943_s8 }
 0x113   : > { %v662_v45 = vpop.permute.xlu2 %661 }
 0x114   : > { %752 = vst.msk [vmem:[#allocation3 + $0x30] sm:$0xff] %vm745_vm3, %v662_v45 }
 0x115   : > { %866 = vrot.lane.b32.xlu1 %v3351_v35, %s2943_s8 }
 0x116   : > { %870 = vrot.lane.b32.xlu0 %v3382_v47, %s2943_s8 }
 0x117   : > { %v654_v53 = vpop.permute.xlu1 %653 }
 0x118   : > { %748 = vst.msk [vmem:[#allocation3 + $0x10] sm:$0xff] %vm745_vm3, %v654_v53  ;;  %v658_v55 = vpop.permute.xlu0 %657 }
 0x119   : > { %750 = vst.msk [vmem:[#allocation3 + $0x20] sm:$0xff] %vm745_vm3, %v658_v55  ;;  %862 = vrot.lane.b32.xlu2 %v3345_v33, %s2943_s8 }
 0x11b   : > { %v668_v4 = vpop.permute.xlu2 %667 }
 0x11c   : > { %755 = vst.msk [vmem:[#allocation3 + $0x48] sm:$0xff] %vm745_vm3, %v668_v4 }
 0x11d   : > { %872 = vrot.lane.b32.xlu1 %v3373_v42, %s2943_s8 }
 0x11e   : > { %1035 = vrot.lane.b32.xlu0 %v3118_v3, %s2944_s9 }
 0x11f   : > { %v660_v47 = vpop.permute.xlu1 %659 }
 0x120   : > { %751 = vst.msk [vmem:[#allocation3 + $0x28] sm:$0xff] %vm745_vm3, %v660_v47  ;;  %v664_v58 = vpop.permute.xlu0 %663 }
 0x121   : > { %753 = vst.msk [vmem:[#allocation3 + $0x38] sm:$0xff] %vm745_vm3, %v664_v58  ;;  %868 = vrot.lane.b32.xlu2 %v3367_v41, %s2943_s8 }
 0x123   : > { %v674_v60 = vpop.permute.xlu2 %673 }
 0x124   : > { %758 = vst.msk [vmem:[#allocation3 + $0x60] sm:$0xff] %vm745_vm3, %v674_v60 }
 0x125   : > { %1228 = vrot.lane.b32.xlu1 %v3283_v7, %s2945_s10 }
 0x126   : > { %1615 = vrot.lane.b32.xlu0 %v3180_v21, %s2946_s11 }
 0x127   : > { %v666_v3 = vpop.permute.xlu1 %665 }
 0x128   : > { %754 = vst.msk [vmem:[#allocation3 + $0x40] sm:$0xff] %vm745_vm3, %v666_v3  ;;  %v670_v42 = vpop.permute.xlu0 %669 }
 0x129   : > { %756 = vst.msk [vmem:[#allocation3 + $0x50] sm:$0xff] %vm745_vm3, %v670_v42  ;;  %874 = vrot.lane.b32.xlu2 %v3387_v50, %s2943_s8 }
 0x12b   : > { %v680_v61 = vpop.permute.xlu2 %679 }
 0x12c   : > { %761 = vst.msk [vmem:[#allocation3 + $0x78] sm:$0xff] %vm745_vm3, %v680_v61 }
 0x12d   : > { %1808 = vrot.lane.b32.xlu1 %v3285_v8, %s2947_s12 }
 0x12e   : > { %1230 = vrot.lane.b32.xlu0 %v3312_v16, %s2945_s10 }
 0x12f   : > { %v672_v7 = vpop.permute.xlu1 %671 }
 0x130   : > { %757 = vst.msk [vmem:[#allocation3 + $0x58] sm:$0xff] %vm745_vm3, %v672_v7  ;;  %v676_v9 = vpop.permute.xlu0 %675 }
 0x131   : > { %759 = vst.msk [vmem:[#allocation3 + $0x68] sm:$0xff] %vm745_vm3, %v676_v9  ;;  %1422 = vrot.lane.b32.xlu2 %v3264_v62, %s2948_s13 }
 0x133   : > { %v686_v50 = vpop.permute.xlu2 %685 }
 0x134   : > { %764 = vst.msk [vmem:[#allocation3 + $0x90] sm:$0xff] %vm745_vm3, %v686_v50 }
 0x135   : > { %1424 = vrot.lane.b32.xlu1 %v3277_v6, %s2948_s13 }
 0x136   : > { %1810 = vrot.lane.b32.xlu0 %v3302_v13, %s2947_s12 }
 0x137   : > { %v678_v16 = vpop.permute.xlu1 %677 }
 0x138   : > { %760 = vst.msk [vmem:[#allocation3 + $0x70] sm:$0xff] %vm745_vm3, %v678_v16  ;;  %v682_v10 = vpop.permute.xlu0 %681 }
 0x139   : > { %762 = vst.msk [vmem:[#allocation3 + $0x80] sm:$0xff] %vm745_vm3, %v682_v10  ;;  %1037 = vrot.lane.b32.xlu2 %v3164_v15, %s2944_s9 }
 0x13b   : > { %v692_v27 = vpop.permute.xlu2 %691 }
 0x13c   : > { %767 = vst.msk [vmem:[#allocation3 + $0xa8] sm:$0xff] %vm745_vm3, %v692_v27 }
 0x13d   : > { %1039 = vrot.lane.b32.xlu1 %v3180_v21, %s2944_s9 }
 0x13e   : > { %1426 = vrot.lane.b32.xlu0 %v3295_v11, %s2948_s13 }
 0x13f   : > { %v684_v62 = vpop.permute.xlu1 %683 }
 0x140   : > { %763 = vst.msk [vmem:[#allocation3 + $0x88] sm:$0xff] %vm745_vm3, %v684_v62  ;;  %v688_v6 = vpop.permute.xlu0 %687  ;;  %v990_v62 = vld [vmem:[#allocation2 + $0xf9] sm:$0xff] }
 0x141   : > { %765 = vst.msk [vmem:[#allocation3 + $0x98] sm:$0xff] %vm745_vm3, %v688_v6  ;;  %1617 = vrot.lane.b32.xlu2 %v3202_v28, %s2946_s11 }
 0x143   : > { %v698_v29 = vpop.permute.xlu2 %697 }
 0x144   : > { %770 = vst.msk [vmem:[#allocation3 + $0xc0] sm:$0xff] %vm745_vm3, %v698_v29 }
 0x145   : > { %1619 = vrot.lane.b32.xlu1 %v3170_v17, %s2946_s11 }
 0x146   : > { %1041 = vrot.lane.b32.xlu0 %v3202_v28, %s2944_s9 }
 0x147   : > { %v690_v15 = vpop.permute.xlu1 %689 }
 0x148   : > { %766 = vst.msk [vmem:[#allocation3 + $0xa0] sm:$0xff] %vm745_vm3, %v690_v15  ;;  %v694_v21 = vpop.permute.xlu0 %693 }
 0x149   : > { %768 = vst.msk [vmem:[#allocation3 + $0xb0] sm:$0xff] %vm745_vm3, %v694_v21  ;;  %1232 = vrot.lane.b32.xlu2 %v3285_v8, %s2945_s10 }
 0x14b   : > { %v704_v11 = vpop.permute.xlu2 %703 }
 0x14c   : > { %773 = vst.msk [vmem:[#allocation3 + $0xd8] sm:$0xff] %vm745_vm3, %v704_v11 }
 0x14d   : > { %1234 = vrot.lane.b32.xlu1 %v3302_v13, %s2945_s10 }
 0x14e   : > { %1621 = vrot.lane.b32.xlu0 %v3188_v24, %s2946_s11 }
 0x14f   : > { %v696_v45 = vpop.permute.xlu1 %695 }
 0x150   : > { %769 = vst.msk [vmem:[#allocation3 + $0xb8] sm:$0xff] %vm745_vm3, %v696_v45  ;;  %v700_v28 = vpop.permute.xlu0 %699 }
 0x151   : > { %771 = vst.msk [vmem:[#allocation3 + $0xc8] sm:$0xff] %vm745_vm3, %v700_v28  ;;  %1812 = vrot.lane.b32.xlu2 %v3338_v30, %s2947_s12  ;;  %v1559_v28 = vld [vmem:[#allocation2 + $0x91] sm:$0xff] }
 0x153   : > { %v710_v53 = vpop.permute.xlu2 %709 }
 0x154   : > { %776 = vst.msk [vmem:[#allocation3 + $0xf0] sm:$0xff] %vm745_vm3, %v710_v53 }
 0x155   : > { %1814 = vrot.lane.b32.xlu1 %v3306_v14, %s2947_s12 }
 0x156   : > { %1236 = vrot.lane.b32.xlu0 %v3338_v30, %s2945_s10 }
 0x157   : > { %v702_v8 = vpop.permute.xlu1 %701 }
 0x158   : > { %772 = vst.msk [vmem:[#allocation3 + $0xd0] sm:$0xff] %vm745_vm3, %v702_v8  ;;  %v706_v13 = vpop.permute.xlu0 %705  ;;  %v991_v8 = vld [vmem:[#allocation2 + $0x109] sm:$0xff] }
 0x159   : > { %774 = vst.msk [vmem:[#allocation3 + $0xe0] sm:$0xff] %vm745_vm3, %v706_v13  ;;  %1428 = vrot.lane.b32.xlu2 %v3314_v18, %s2948_s13 }
 0x15b   : > { %v845_v55 = vpop.permute.xlu2 %844 }
 0x15c   : > { %940 = vst.msk [vmem:[#allocation3 + $0x8] sm:$0xff] %vm938_vm4, %v845_v55 }
 0x15d   : > { %1430 = vrot.lane.b32.xlu1 %v3300_v12, %s2948_s13 }
 0x15e   : > { %1816 = vrot.lane.b32.xlu0 %v3326_v22, %s2947_s12 }
 0x15f   : > { %v708_v30 = vpop.permute.xlu1 %707 }
 0x160   : > { %775 = vst.msk [vmem:[#allocation3 + $0xe8] sm:$0xff] %vm745_vm3, %v708_v30  ;;  %v712_v4 = vpop.permute.xlu0 %711 }
 0x161   : > { %777 = vst.msk [vmem:[#allocation3 + $0xf8] sm:$0xff] %vm745_vm3, %v712_v4  ;;  %1043 = vrot.lane.b32.xlu2 %v3170_v17, %s2944_s9 }
 0x163   : > { %v851_v18 = vpop.permute.xlu2 %850 }
 0x164   : > { %943 = vst.msk [vmem:[#allocation3 + $0x20] sm:$0xff] %vm938_vm4, %v851_v18 }
 0x165   : > { %1045 = vrot.lane.b32.xlu1 %v3188_v24, %s2944_s9 }
 0x166   : > { %1432 = vrot.lane.b32.xlu0 %v3318_v19, %s2948_s13 }
 0x167   : > { %v843_v12 = vpop.permute.xlu1 %842 }
 0x168   : > { %939 = vst.msk [vmem:[#allocation3] sm:$0xff] %vm938_vm4, %v843_v12  ;;  %v847_v47 = vpop.permute.xlu0 %846 }
 0x169   : > { %941 = vst.msk [vmem:[#allocation3 + $0x10] sm:$0xff] %vm938_vm4, %v847_v47  ;;  %1623 = vrot.lane.b32.xlu2 %v3218_v34, %s2946_s11  ;;  %v3732_v47 = vld [vmem:[#allocation2 + $0x99] sm:$0xff] }
 0x16b   : > { %v857_v58 = vpop.permute.xlu2 %856 }
 0x16c   : > { %946 = vst.msk [vmem:[#allocation3 + $0x38] sm:$0xff] %vm938_vm4, %v857_v58  ;;  %v3738_v58 = vld [vmem:[#allocation2 + $0x121] sm:$0xff] }
 0x16d   : > { %1625 = vrot.lane.b32.xlu1 %v3192_v26, %s2946_s11 }
 0x16e   : > { %1047 = vrot.lane.b32.xlu0 %v3218_v34, %s2944_s9 }
 0x16f   : > { %v849_v17 = vpop.permute.xlu1 %848 }
 0x170   : > { %942 = vst.msk [vmem:[#allocation3 + $0x18] sm:$0xff] %vm938_vm4, %v849_v17  ;;  %v853_v24 = vpop.permute.xlu0 %852 }
 0x171   : > { %944 = vst.msk [vmem:[#allocation3 + $0x28] sm:$0xff] %vm938_vm4, %v853_v24  ;;  %1238 = vrot.lane.b32.xlu2 %v3306_v14, %s2945_s10 }
 0x173   : > { %v863_v19 = vpop.permute.xlu2 %862 }
 0x174   : > { %949 = vst.msk [vmem:[#allocation3 + $0x50] sm:$0xff] %vm938_vm4, %v863_v19 }
 0x175   : > { %1240 = vrot.lane.b32.xlu1 %v3326_v22, %s2945_s10  ;;  %v1972_v22 = vld [vmem:[%s4449_s1 + $0x18] sm:$0x7] }
 0x176   : > { %1627 = vrot.lane.b32.xlu0 %v3211_v31, %s2946_s11  ;;  %2606 = vmatpush.msk.msra.mxu0 %vm2074_vm5, %v1972_v22 }
 0x177   : > { %v855_v60 = vpop.permute.xlu1 %854  ;;  %2650 = vmatpush.msk.msra.mxu3 %vm2074_vm5, %v1972_v22 }
 0x178   : > { %945 = vst.msk [vmem:[#allocation3 + $0x30] sm:$0xff] %vm938_vm4, %v855_v60  ;;  %v859_v34 = vpop.permute.xlu0 %858 }
 0x179   : > { %947 = vst.msk [vmem:[#allocation3 + $0x40] sm:$0xff] %vm938_vm4, %v859_v34  ;;  %1818 = vrot.lane.b32.xlu2 %v3361_v39, %s2947_s12 }
 0x17b   : > { %v869_v3 = vpop.permute.xlu2 %868 }
 0x17c   : > { %952 = vst.msk [vmem:[#allocation3 + $0x68] sm:$0xff] %vm938_vm4, %v869_v3 }
 0x17d   : > { %878 = vrot.lane.b32.xlu1 %v3392_v51, %s2943_s8  ;;  %v1971_v51 = vld [vmem:[%s4449_s1 + $0x10] sm:$0xff] }
 0x17e   : > { %1071 = vrot.lane.b32.xlu0 %v3252_v54, %s2944_s9  ;;  %v1970_v54 = vld [vmem:[%s4449_s1 + $0x8] sm:$0xff]  ;;  %2091 = vmatpush.msra.mxu0 %v1971_v51 }
 0x17f   : > { %v861_v14 = vpop.permute.xlu1 %860  ;;  %2651 = vmatpush.msra.mxu3 %v1971_v51 }
 0x180   : > { %948 = vst.msk [vmem:[#allocation3 + $0x48] sm:$0xff] %vm938_vm4, %v861_v14  ;;  %v865_v31 = vpop.permute.xlu0 %864  ;;  %2092 = vmatpush.msra.mxu0 %v1970_v54 }
 0x181   : > { %950 = vst.msk [vmem:[#allocation3 + $0x58] sm:$0xff] %vm938_vm4, %v865_v31  ;;  %1434 = vrot.lane.b32.xlu2 %v3341_v32, %s2948_s13  ;;  %v1969_v32 = vld [vmem:[%s4449_s1] sm:$0xff]  ;;  %2652 = vmatpush.msra.mxu3 %v1970_v54 }
 0x182   : > { %2093 = vmatpush.msra.mxu0 %v1969_v32 }
 0x183   : > { %v875_v42 = vpop.permute.xlu2 %874  ;;  %2653 = vmatpush.msra.mxu3 %v1969_v32 }
 0x184   : > { %955 = vst.msk [vmem:[#allocation3 + $0x80] sm:$0xff] %vm938_vm4, %v875_v42 }
 0x185   : > { %1264 = vrot.lane.b32.xlu1 %v3409_v1, %s2945_s10 }
 0x186   : > { %1049 = vrot.lane.b32.xlu0 %v3192_v26, %s2944_s9 }
 0x187   : > { %v867_v61 = vpop.permute.xlu1 %866 }
 0x188   : > { %951 = vst.msk [vmem:[#allocation3 + $0x60] sm:$0xff] %vm938_vm4, %v867_v61  ;;  %v871_v7 = vpop.permute.xlu0 %870 }
 0x189   : > { %953 = vst.msk [vmem:[#allocation3 + $0x70] sm:$0xff] %vm938_vm4, %v871_v7  ;;  %1820 = vrot.lane.b32.xlu2 %v3330_v23, %s2947_s12 }
 0x18b   : > { %v1423_v1 = vpop.permute.xlu2 %1422 }
 0x18d   : > { %1651 = vrot.lane.b32.xlu1 %v3247_v52, %s2946_s11 }
 0x18e   : > { %1844 = vrot.lane.b32.xlu0 %v3413_v2, %s2947_s12 }
 0x18f   : > { %v873_v26 = vpop.permute.xlu1 %872 }
 0x190   : > { %954 = vst.msk [vmem:[#allocation3 + $0x78] sm:$0xff] %vm938_vm4, %v873_v26  ;;  %v1036_v9 = vpop.permute.xlu0 %1035 }
 0x191   : > { %1132 = vst.msk [vmem:[#allocation3] sm:$0xff] %vm1131_vm6, %v1036_v9  ;;  %1458 = vrot.lane.b32.xlu2 %v3422_v25, %s2948_s13 }
 0x193   : > { %v1038_v50 = vpop.permute.xlu2 %1037 }
 0x194   : > { %1133 = vst.msk [vmem:[#allocation3 + $0x8] sm:$0xff] %vm1131_vm6, %v1038_v50 }
 0x195   : > { %1436 = vrot.lane.b32.xlu1 %v3324_v20, %s2948_s13  ;;  %v1558_v20 = vld [vmem:[#allocation2 + $0x81] sm:$0xff] }
 0x196   : > { %880 = vrot.lane.b32.xlu0 %v3403_v63, %s2943_s8 }
 0x197   : > { %v1229_v52 = vpop.permute.xlu1 %1228 }
 0x198   : > { %1325 = vst.msk [vmem:[#allocation3] sm:$0xff] %vm1324_vm7, %v1229_v52  ;;  %v1616_v16 = vpop.permute.xlu0 %1615  ;;  %v3791_v52 = vld [vmem:[#allocation2 + $0x139] sm:$0xff] }
 0x199   : > { %1519 = vst.msk [vmem:[#allocation3] sm:$0xff] %vm1518_vm8, %v1423_v1  ;;  %1242 = vrot.lane.b32.xlu2 %v3361_v39, %s2945_s10  ;;  %v1754_v1 = vld [vmem:[#allocation2 + $0xaa] sm:$0xff] }
 0x19a   : > { %1712 = vst.msk [vmem:[#allocation3] sm:$0xff] %vm1711_vm9, %v1616_v16 }
 0x19b   : > { %v1618_v10 = vpop.permute.xlu2 %1617 }
 0x19d   : > { %1822 = vrot.lane.b32.xlu1 %v3353_v36, %s2947_s12 }
 0x19e   : > { %1266 = vrot.lane.b32.xlu0 %v3446_v48, %s2945_s10 }
 0x19f   : > { %v1809_v63 = vpop.permute.xlu1 %1808 }
 0x1a0   : > { %1905 = vst.msk [vmem:[#allocation3] sm:$0xff] %vm1904_vm10, %v1809_v63  ;;  %v1231_v27 = vpop.permute.xlu0 %1230 }
 0x1a1   : > { %1326 = vst.msk [vmem:[#allocation3 + $0x8] sm:$0xff] %vm1324_vm7, %v1231_v27  ;;  %1629 = vrot.lane.b32.xlu2 %v1558_v20, %s2946_s11 }
 0x1a3   : > { %v1233_v39 = vpop.permute.xlu2 %1232 }
 0x1a5   : > { %1460 = vrot.lane.b32.xlu1 %v3407_v0, %s2948_s13 }
 0x1a6   : > { %1653 = vrot.lane.b32.xlu0 %v3258_v57, %s2946_s11  ;;  %v979_v57 = vld [vmem:[#allocation2 + $0x79] sm:$0xff] }
 0x1a7   : > { %v1425_v6 = vpop.permute.xlu1 %1424  ;;  %v1937_v48 = vld [vmem:[#allocation3] sm:$0xff] }
 0x1a8   : > { %1520 = vst.msk [vmem:[#allocation3 + $0x8] sm:$0xff] %vm1518_vm8, %v1425_v6  ;;  %2607 = vmatmul.msk.f32.vlgmr.msra.gmra.mxu0 %vm1977_vm11, %v1937_v48  ;;  %v1811_v29 = vpop.permute.xlu0 %1810  ;;  %v3820_v6 = vld [vmem:[#allocation2 + $0x13a] sm:$0xff] }
 0x1a9   : > { %1713 = vst.msk [vmem:[#allocation3 + $0x8] sm:$0xff] %vm1711_vm9, %v1618_v10  ;;  %1073 = vrot.lane.b32.xlu2 %v990_v62, %s2944_s9  ;;  %v3813_v62 = vld [vmem:[#allocation2 + $0xb2] sm:$0xff] }
 0x1aa   : > { %1906 = vst.msk [vmem:[#allocation3 + $0x8] sm:$0xff] %vm1904_vm10, %v1811_v29 }
 0x1ab   : > { %v1813_v15 = vpop.permute.xlu2 %1812 }
 0x1ad   : > { %1244 = vrot.lane.b32.xlu1 %v3330_v23, %s2945_s10 }
 0x1ae   : > { %1438 = vrot.lane.b32.xlu0 %v3345_v33, %s2948_s13 }
 0x1af   : > { %v1040_v21 = vpop.permute.xlu1 %1039 }
 0x1b0   : > { %1134 = vst.msk [vmem:[#allocation3 + $0x10] sm:$0xff] %vm1131_vm6, %v1040_v21  ;;  %v1427_v11 = vpop.permute.xlu0 %1426 }
 0x1b1   : > { %1327 = vst.msk [vmem:[#allocation3 + $0x10] sm:$0xff] %vm1324_vm7, %v1233_v39  ;;  %1051 = vrot.lane.b32.xlu2 %v979_v57, %s2944_s9  ;;  %v1938_v45 = vld [vmem:[#allocation3 + $0x8] sm:$0xff] }
 0x1b2   : > { %1521 = vst.msk [vmem:[#allocation3 + $0x10] sm:$0xff] %vm1518_vm8, %v1427_v11  ;;  %2608 = vmatmul.msk.f32.gmra.mxu0 %vm1977_vm11, %v1938_v45  ;;  %v3810_v39 = vld [vmem:[#allocation2 + $0xb1] sm:$0xff] }
 0x1b3   : > { %v1429_v53 = vpop.permute.xlu2 %1428 }
 0x1b5   : > { %1631 = vrot.lane.b32.xlu1 %v1559_v28, %s2946_s11 }
 0x1b6   : > { %1824 = vrot.lane.b32.xlu0 %v3380_v46, %s2947_s12 }
 0x1b7   : > { %v1620_v23 = vpop.permute.xlu1 %1619 }
 0x1b8   : > { %1714 = vst.msk [vmem:[#allocation3 + $0x10] sm:$0xff] %vm1711_vm9, %v1620_v23  ;;  %v1042_v33 = vpop.permute.xlu0 %1041 }
 0x1b9   : > { %1907 = vst.msk [vmem:[#allocation3 + $0x10] sm:$0xff] %vm1904_vm10, %v1813_v15  ;;  %1846 = vrot.lane.b32.xlu2 %v3433_v43, %s2947_s12 }
 0x1ba   : > { %1135 = vst.msk [vmem:[#allocation3 + $0x18] sm:$0xff] %vm1131_vm6, %v1042_v33  ;;  %v3851_v33 = vld [vmem:[#allocation2 + $0xc1] sm:$0xff] }
 0x1bb   : > { %v1044_v13 = vpop.permute.xlu2 %1043 }
 0x1bc   : > { %1136 = vst.msk [vmem:[#allocation3 + $0x20] sm:$0xff] %vm1131_vm6, %v1044_v13 }
 0x1bd   : > { %1075 = vrot.lane.b32.xlu1 %v991_v8, %s2944_s9 }
 0x1be   : > { %1462 = vrot.lane.b32.xlu0 %v3427_v37, %s2948_s13 }
 0x1bf   : > { %v1235_v46 = vpop.permute.xlu1 %1234 }
 0x1c0   : > { %1328 = vst.msk [vmem:[#allocation3 + $0x18] sm:$0xff] %vm1324_vm7, %v1235_v46  ;;  %v1622_v55 = vpop.permute.xlu0 %1621  ;;  %v1939_v30 = vld [vmem:[#allocation3 + $0x10] sm:$0xff] }
 0x1c1   : > { %1522 = vst.msk [vmem:[#allocation3 + $0x18] sm:$0xff] %vm1518_vm8, %v1429_v53  ;;  %2609 = vmatmul.msk.f32.gmra.mxu0 %vm1977_vm11, %v1939_v30  ;;  %882 = vrot.lane.b32.xlu2 %v3422_v25, %s2943_s8 }
 0x1c2   : > { %1715 = vst.msk [vmem:[#allocation3 + $0x18] sm:$0xff] %vm1711_vm9, %v1622_v55  ;;  %v3859_v55 = vld [vmem:[#allocation2 + $0x141] sm:$0xff] }
 0x1c3   : > { %v1624_v4 = vpop.permute.xlu2 %1623 }
 0x1c5   : > { %1053 = vrot.lane.b32.xlu1 %v1558_v20, %s2944_s9 }
 0x1c6   : > { %1246 = vrot.lane.b32.xlu0 %v3353_v36, %s2945_s10 }
 0x1c7   : > { %v1815_v18 = vpop.permute.xlu1 %1814 }
 0x1c8   : > { %1908 = vst.msk [vmem:[#allocation3 + $0x18] sm:$0xff] %vm1904_vm10, %v1815_v18  ;;  %v1237_v12 = vpop.permute.xlu0 %1236 }
 0x1c9   : > { %1329 = vst.msk [vmem:[#allocation3 + $0x20] sm:$0xff] %vm1324_vm7, %v1237_v12  ;;  %1268 = vrot.lane.b32.xlu2 %v3413_v2, %s2945_s10  ;;  %v992_v2 = vld [vmem:[#allocation2 + $0x111] sm:$0xff] }
 0x1cb   : > { %v1239_v25 = vpop.permute.xlu2 %1238 }
 0x1cd   : > { %1848 = vrot.lane.b32.xlu1 %v3464_v5, %s2947_s12 }
 0x1ce   : > { %1633 = vrot.lane.b32.xlu0 %v3732_v47, %s2946_s11 }
 0x1cf   : > { %v1431_v36 = vpop.permute.xlu1 %1430  ;;  %v1940_v17 = vld [vmem:[#allocation3 + $0x18] sm:$0xff] }
 0x1d0   : > { %1523 = vst.msk [vmem:[#allocation3 + $0x20] sm:$0xff] %vm1518_vm8, %v1431_v36  ;;  %2610 = vmatmul.msk.f32.gmra.mxu0 %vm1977_vm11, %v1940_v17  ;;  %v1817_v24 = vpop.permute.xlu0 %1816 }
 0x1d1   : > { %1716 = vst.msk [vmem:[#allocation3 + $0x20] sm:$0xff] %vm1711_vm9, %v1624_v4  ;;  %1655 = vrot.lane.b32.xlu2 %v3738_v58, %s2946_s11 }
 0x1d2   : > { %1909 = vst.msk [vmem:[#allocation3 + $0x20] sm:$0xff] %vm1904_vm10, %v1817_v24 }
 0x1d3   : > { %v1819_v19 = vpop.permute.xlu2 %1818 }
 0x1d5   : > { %884 = vrot.lane.b32.xlu1 %v3407_v0, %s2943_s8  ;;  %v1753_v0 = vld [vmem:[#allocation2 + $0x9a] sm:$0xff] }
 0x1d6   : > { %1077 = vrot.lane.b32.xlu0 %v992_v2, %s2944_s9 }
 0x1d7   : > { %v1046_v60 = vpop.permute.xlu1 %1045 }
 0x1d8   : > { %1137 = vst.msk [vmem:[#allocation3 + $0x28] sm:$0xff] %vm1131_vm6, %v1046_v60  ;;  %v1433_v34 = vpop.permute.xlu0 %1432  ;;  %v3888_v60 = vld [vmem:[#allocation2 + $0xc2] sm:$0xff] }
 0x1d9   : > { %1330 = vst.msk [vmem:[#allocation3 + $0x28] sm:$0xff] %vm1324_vm7, %v1239_v25  ;;  %1440 = vrot.lane.b32.xlu2 %v3363_v40, %s2948_s13  ;;  %v1941_v3 = vld [vmem:[#allocation3 + $0x20] sm:$0xff] }
 0x1da   : > { %1524 = vst.msk [vmem:[#allocation3 + $0x28] sm:$0xff] %vm1518_vm8, %v1433_v34  ;;  %2611 = vmatmul.msk.f32.gmra.mxu0 %vm1977_vm11, %v1941_v3  ;;  %v3762_v40 = vld [vmem:[#allocation2 + $0x129] sm:$0xff] }
 0x1db   : > { %v1435_v14 = vpop.permute.xlu2 %1434 }
 0x1dd   : > { %1270 = vrot.lane.b32.xlu1 %v3433_v43, %s2945_s10 }
 0x1de   : > { %1055 = vrot.lane.b32.xlu0 %v1559_v28, %s2944_s9 }
 0x1df   : > { %v1626_v31 = vpop.permute.xlu1 %1625 }
 0x1e0   : > { %1717 = vst.msk [vmem:[#allocation3 + $0x28] sm:$0xff] %vm1711_vm9, %v1626_v31  ;;  %v1048_v22 = vpop.permute.xlu0 %1047 }
 0x1e1   : > { %1910 = vst.msk [vmem:[#allocation3 + $0x28] sm:$0xff] %vm1904_vm10, %v1819_v19  ;;  %1826 = vrot.lane.b32.xlu2 %v1753_v0, %s2947_s12 }
 0x1e2   : > { %1138 = vst.msk [vmem:[#allocation3 + $0x30] sm:$0xff] %vm1131_vm6, %v1048_v22 }
 0x1e3   : > { %v1821_v51 = vpop.permute.xlu2 %1820 }
 0x1e5   : > { %1657 = vrot.lane.b32.xlu1 %v3762_v40, %s2946_s11 }
 0x1e6   : > { %1850 = vrot.lane.b32.xlu0 %v3437_v44, %s2947_s12  ;;  %v1174_v44 = vld [vmem:[#allocation2 + $0x92] sm:$0xff] }
 0x1e7   : > { %v1241_v43 = vpop.permute.xlu1 %1240 }
 0x1e8   : > { %1331 = vst.msk [vmem:[#allocation3 + $0x30] sm:$0xff] %vm1324_vm7, %v1241_v43  ;;  %v1628_v54 = vpop.permute.xlu0 %1627  ;;  %v1942_v42 = vld [vmem:[#allocation3 + $0x28] sm:$0xff] }
 0x1e9   : > { %1525 = vst.msk [vmem:[#allocation3 + $0x30] sm:$0xff] %vm1518_vm8, %v1435_v14  ;;  %2612 = vmatmul.msk.f32.gmra.mxu0 %vm1977_vm11, %v1942_v42  ;;  %1464 = vrot.lane.b32.xlu2 %v3448_v49, %s2948_s13  ;;  %v3895_v14 = vld [vmem:[#allocation2 + $0x151] sm:$0xff] }
 0x1ea   : > { %1718 = vst.msk [vmem:[#allocation3 + $0x30] sm:$0xff] %vm1711_vm9, %v1628_v54 }
 0x1eb   : > { %1911 = vst.msk [vmem:[#allocation3 + $0x30] sm:$0xff] %vm1904_vm10, %v1821_v51  ;;  %v1459_v32 = vpop.permute.xlu2 %1458 }
 0x1ed   : > { %1442 = vrot.lane.b32.xlu1 %v3351_v35, %s2948_s13  ;;  %v1561_v35 = vld [vmem:[#allocation2 + $0xa9] sm:$0xff] }
 0x1ee   : > { %886 = vrot.lane.b32.xlu0 %v3427_v37, %s2943_s8 }
 0x1ef   : > { %v879_v61 = vpop.permute.xlu1 %878 }
 0x1f0   : > { %957 = vst.msk [vmem:[#allocation3 + $0x90] sm:$0xff] %vm938_vm4, %v879_v61  ;;  %v1072_v7 = vpop.permute.xlu0 %1071 }
 0x1f1   : > { %1150 = vst.msk [vmem:[#allocation3 + $0x90] sm:$0xff] %vm1131_vm6, %v1072_v7  ;;  %1248 = vrot.lane.b32.xlu2 %v1174_v44, %s2945_s10  ;;  %v803_v44 = vld [vmem:[#allocation2 + $0x140] sm:$0xff] }
 0x1f2   : > { %v1943_v26 = vld [vmem:[#allocation3 + $0x30] sm:$0xff] }
 0x1f3   : > { %v1243_v9 = vpop.permute.xlu2 %1242  ;;  %2613 = vmatmul.msk.f32.gmra.mxu0 %vm1977_vm11, %v1943_v26 }
 0x1f5   : > { %1828 = vrot.lane.b32.xlu1 %v1754_v1, %s2947_s12 }
 0x1f6   : > { %1272 = vrot.lane.b32.xlu0 %v3464_v5, %s2945_s10 }
 0x1f7   : > { %v1265_v37 = vpop.permute.xlu1 %1264 }
 0x1f8   : > { %1343 = vst.msk [vmem:[#allocation3 + $0x90] sm:$0xff] %vm1324_vm7, %v1265_v37  ;;  %v1050_v50 = vpop.permute.xlu0 %1049  ;;  %v1189_v37 = vld [vmem:[#allocation2 + $0x142] sm:$0xff] }
 0x1f9   : > { %1537 = vst.msk [vmem:[#allocation3 + $0x90] sm:$0xff] %vm1518_vm8, %v1459_v32  ;;  %1635 = vrot.lane.b32.xlu2 %v1561_v35, %s2946_s11  ;;  %v1371_v32 = vld [vmem:[#allocation2 + $0xc8] sm:$0xff] }
 0x1fa   : > { %1139 = vst.msk [vmem:[#allocation3 + $0x38] sm:$0xff] %vm1131_vm6, %v1050_v50 }
 0x1fb   : > { %1332 = vst.msk [vmem:[#allocation3 + $0x38] sm:$0xff] %vm1324_vm7, %v1243_v9  ;;  %v1630_v16 = vpop.permute.xlu2 %1629 }
 0x1fd   : > { %1466 = vrot.lane.b32.xlu1 %v3431_v38, %s2948_s13 }
 0x1fe   : > { %1659 = vrot.lane.b32.xlu0 %v3791_v52, %s2946_s11 }
 0x1ff   : > { %v1652_v5 = vpop.permute.xlu1 %1651 }
 0x200   : > { %1730 = vst.msk [vmem:[#allocation3 + $0x90] sm:$0xff] %vm1711_vm9, %v1652_v5  ;;  %v1845_v10 = vpop.permute.xlu0 %1844  ;;  %v3929_v5 = vld [vmem:[#allocation2 + $0xc9] sm:$0xff] }
 0x201   : > { %1923 = vst.msk [vmem:[#allocation3 + $0x90] sm:$0xff] %vm1904_vm10, %v1845_v10  ;;  %1079 = vrot.lane.b32.xlu2 %v3738_v58, %s2944_s9 }
 0x203   : > { %v1074_v20 = vpop.permute.xlu2 %1073 }
 0x205   : > { %1250 = vrot.lane.b32.xlu1 %v1753_v0, %s2945_s10  ;;  %v3897_v0 = vld [vmem:[#allocation2 + $0x152] sm:$0xff] }
 0x206   : > { %1444 = vrot.lane.b32.xlu0 %v3367_v41, %s2948_s13 }
 0x207   : > { %v1437_v63 = vpop.permute.xlu1 %1436 }
 0x208   : > { %1526 = vst.msk [vmem:[#allocation3 + $0x38] sm:$0xff] %vm1518_vm8, %v1437_v63  ;;  %v881_v38 = vpop.permute.xlu0 %880  ;;  %v1955_v27 = vld [vmem:[#allocation3 + $0x90] sm:$0xff] }
 0x209   : > { %1719 = vst.msk [vmem:[#allocation3 + $0x38] sm:$0xff] %vm1711_vm9, %v1630_v16  ;;  %2625 = vmatmul.msk.f32.vlgmr.msra.gmra.mxu3 %vm1977_vm11, %v1955_v27  ;;  %1057 = vrot.lane.b32.xlu2 %v3732_v47, %s2944_s9  ;;  %v1370_v47 = vld [vmem:[#allocation2 + $0xc0] sm:$0xff] }
 0x20a   : > { %958 = vst.msk [vmem:[#allocation3 + $0x98] sm:$0xff] %vm938_vm4, %v881_v38  ;;  %v3939_v38 = vld [vmem:[#allocation2 + $0x158] sm:$0xff] }
 0x20b   : > { %1151 = vst.msk [vmem:[#allocation3 + $0x98] sm:$0xff] %vm1131_vm6, %v1074_v20  ;;  %v1052_v41 = vpop.permute.xlu2 %1051  ;;  %v3942_v27 = vld [vmem:[#allocation2 + $0x159] sm:$0xff] }
 0x20c   : > { %1140 = vst.msk [vmem:[#allocation3 + $0x40] sm:$0xff] %vm1131_vm6, %v1052_v41 }
 0x20d   : > { %1637 = vrot.lane.b32.xlu1 %v3810_v39, %s2946_s11 }
 0x20e   : > { %1830 = vrot.lane.b32.xlu0 %v3813_v62, %s2947_s12 }
 0x20f   : > { %v1823_v48 = vpop.permute.xlu1 %1822 }
 0x210   : > { %1912 = vst.msk [vmem:[#allocation3 + $0x38] sm:$0xff] %vm1904_vm10, %v1823_v48  ;;  %v1267_v29 = vpop.permute.xlu0 %1266 }
 0x211   : > { %1344 = vst.msk [vmem:[#allocation3 + $0x98] sm:$0xff] %vm1324_vm7, %v1267_v29  ;;  %1852 = vrot.lane.b32.xlu2 %v3820_v6, %s2947_s12 }
 0x213   : > { %v1847_v15 = vpop.permute.xlu2 %1846 }
 0x215   : > { %1081 = vrot.lane.b32.xlu1 %v3762_v40, %s2944_s9  ;;  %v3903_v40 = vld [vmem:[#allocation2 + $0x150] sm:$0xff] }
 0x216   : > { %1468 = vrot.lane.b32.xlu0 %v3453_v56, %s2948_s13  ;;  %v1187_v56 = vld [vmem:[#allocation2 + $0x12a] sm:$0xff] }
 0x217   : > { %v1461_v57 = vpop.permute.xlu1 %1460  ;;  %v1944_v21 = vld [vmem:[#allocation3 + $0x38] sm:$0xff] }
 0x218   : > { %1538 = vst.msk [vmem:[#allocation3 + $0x98] sm:$0xff] %vm1518_vm8, %v1461_v57  ;;  %2614 = vmatmul.msk.f32.gmra.mxu0 %vm1977_vm11, %v1944_v21  ;;  %v1654_v11 = vpop.permute.xlu0 %1653 }
 0x219   : > { %1731 = vst.msk [vmem:[#allocation3 + $0x98] sm:$0xff] %vm1711_vm9, %v1654_v11  ;;  %888 = vrot.lane.b32.xlu2 %v3448_v49, %s2943_s8  ;;  %v3849_v49 = vld [vmem:[%s4450_s2] ss:$0 sm:$0xff] }
 0x21a   : > { %1924 = vst.msk [vmem:[#allocation3 + $0x98] sm:$0xff] %vm1904_vm10, %v1847_v15  ;;  %v1372_v15 = vld [vmem:[#allocation2 + $0xd8] sm:$0xff] }
 0x21b   : > { %v883_v45 = vpop.permute.xlu2 %882 }
 0x21c   : > { %959 = vst.msk [vmem:[#allocation3 + $0xa0] sm:$0xff] %vm938_vm4, %v883_v45 }
 0x21d   : > { %1059 = vrot.lane.b32.xlu1 %v1561_v35, %s2944_s9  ;;  %v3922_v35 = vld [vmem:[#allocation2 + $0xca] sm:$0xff] }
 0x21e   : > { %1252 = vrot.lane.b32.xlu0 %v1754_v1, %s2945_s10 }
 0x21f   : > { %v1245_v28 = vpop.permute.xlu1 %1244 }
 0x220   : > { %1333 = vst.msk [vmem:[#allocation3 + $0x40] sm:$0xff] %vm1324_vm7, %v1245_v28  ;;  %v1439_v53 = vpop.permute.xlu0 %1438  ;;  %v3970_v28 = vld [vmem:[#allocation2 + $0xda] sm:$0xff] }
 0x221   : > { %1527 = vst.msk [vmem:[#allocation3 + $0x40] sm:$0xff] %vm1518_vm8, %v1439_v53  ;;  %v1956_v23 = vld [vmem:[#allocation3 + $0x98] sm:$0xff]  ;;  %1274 = vrot.lane.b32.xlu2 %v1187_v56, %s2945_s10  ;;  %v3967_v56 = vld [vmem:[#allocation2 + $0xd9] sm:$0xff] }
 0x222   : > { %2626 = vmatmul.msk.f32.gmra.mxu3 %vm1977_vm11, %v1956_v23 }
 0x223   : > { %v1269_v8 = vpop.permute.xlu2 %1268 }
 0x225   : > { %1854 = vrot.lane.b32.xlu1 %v3475_v59, %s2947_s12  ;;  %v2095_v13 = vpop.f32.mrf.mxu0  ;;  %v802_v59 = vld [vmem:[#allocation2 + $0x138] sm:$0xff] }
 0x226   : > { %v2096_v46 = vadd.f32 %v3849_v49, %v2095_v13  ;;  %1639 = vrot.lane.b32.xlu0 %v3851_v33, %s2946_s11 }
 0x227   : > { %v1632_v30 = vpop.permute.xlu1 %1631 }
 0x228   : > { %v2191_v4 = vmax.f32 %v2096_v46, 0.0  ;;  %1720 = vst.msk [vmem:[#allocation3 + $0x40] sm:$0xff] %vm1711_vm9, %v1632_v30  ;;  %v1825_v18 = vpop.permute.xlu0 %1824  ;;  %v3985_v30 = vld [vmem:[#allocation2 + $0x168] sm:$0xff] }
 0x229   : > { %1913 = vst.msk [vmem:[#allocation3 + $0x40] sm:$0xff] %vm1904_vm10, %v1825_v18  ;;  %1661 = vrot.lane.b32.xlu2 %v3859_v55, %s2946_s11 }
 0x22a   : > { %2223 = vst [vmem:[%s3865_s22] sm:$0xff] %v2191_v4 }
 0x22b   : > { %v1656_v12 = vpop.permute.xlu2 %1655 }
 0x22d   : > { %890 = vrot.lane.b32.xlu1 %v802_v59, %s2943_s8 }
 0x22e   : > { %1083 = vrot.lane.b32.xlu0 %v3791_v52, %s2944_s9 }
 0x22f   : > { %v1076_v25 = vpop.permute.xlu1 %1075  ;;  %v2098_v58 = vpop.f32.mrf.mxu0 }
 0x230   : > { %1152 = vst.msk [vmem:[#allocation3 + $0xa0] sm:$0xff] %vm1131_vm6, %v1076_v25  ;;  %v1463_v36 = vpop.permute.xlu0 %1462  ;;  %v3873_v17 = vadd.f32 %v3849_v49, %v2098_v58  ;;  %v1945_v24 = vld [vmem:[#allocation3 + $0x40] sm:$0xff] }
 0x231   : > { %1345 = vst.msk [vmem:[#allocation3 + $0xa0] sm:$0xff] %vm1324_vm7, %v1269_v8  ;;  %1446 = vrot.lane.b32.xlu2 %v1370_v47, %s2948_s13  ;;  %2615 = vmatmul.msk.f32.gmra.mxu0 %vm1977_vm11, %v1945_v24 }
 0x232   : > { %1539 = vst.msk [vmem:[#allocation3 + $0xa0] sm:$0xff] %vm1518_vm8, %v1463_v36  ;;  %v2192_v2 = vmax.f32 %v3873_v17, 0.0 }
 0x233   : > { %1732 = vst.msk [vmem:[#allocation3 + $0xa0] sm:$0xff] %vm1711_vm9, %v1656_v12  ;;  %v1441_v19 = vpop.permute.xlu2 %1440 }
 0x234   : > { %2224 = vst [vmem:[%s3865_s22 + $0x8] sm:$0xff] %v2192_v2 }
 0x235   : > { %1276 = vrot.lane.b32.xlu1 %v3820_v6, %s2945_s10 }
 0x236   : > { %1061 = vrot.lane.b32.xlu0 %v3810_v39, %s2944_s9 }
 0x237   : > { %v1054_v34 = vpop.permute.xlu1 %1053 }
 0x238   : > { %1141 = vst.msk [vmem:[#allocation3 + $0x48] sm:$0xff] %vm1131_vm6, %v1054_v34  ;;  %v1247_v3 = vpop.permute.xlu0 %1246  ;;  %v4012_v34 = vld [vmem:[#allocation2 + $0x16a] sm:$0xff] }
 0x239   : > { %1334 = vst.msk [vmem:[#allocation3 + $0x48] sm:$0xff] %vm1324_vm7, %v1247_v3  ;;  %1832 = vrot.lane.b32.xlu2 %v3888_v60, %s2947_s12  ;;  %v4014_v3 = vld [vmem:[#allocation2 + $0xe1] sm:$0xff] }
 0x23a   : > { %1528 = vst.msk [vmem:[#allocation3 + $0x48] sm:$0xff] %vm1518_vm8, %v1441_v19 }
 0x23b   : > { %v1827_v31 = vpop.permute.xlu2 %1826 }
 0x23d   : > { %1663 = vrot.lane.b32.xlu1 %v3895_v14, %s2946_s11 }
 0x23e   : > { %1856 = vrot.lane.b32.xlu0 %v3897_v0, %s2947_s12  ;;  %v2101_v22 = vpop.f32.mrf.mxu0 }
 0x23f   : > { %v1849_v51 = vpop.permute.xlu1 %1848  ;;  %v2102_v43 = vadd.f32 %v3849_v49, %v2101_v22 }
 0x240   : > { %1925 = vst.msk [vmem:[#allocation3 + $0xa0] sm:$0xff] %vm1904_vm10, %v1849_v51  ;;  %v1634_v54 = vpop.permute.xlu0 %1633  ;;  %v4030_v51 = vld [vmem:[#allocation2 + $0xe0] sm:$0xff] }
 0x241   : > { %1721 = vst.msk [vmem:[#allocation3 + $0x48] sm:$0xff] %vm1711_vm9, %v1634_v54  ;;  %v3908_v42 = vmax.f32 %v2102_v43, 0.0  ;;  %1470 = vrot.lane.b32.xlu2 %v3903_v40, %s2948_s13 }
 0x242   : > { %1914 = vst.msk [vmem:[#allocation3 + $0x48] sm:$0xff] %vm1904_vm10, %v1827_v31  ;;  %v4020_v31 = vld [vmem:[#allocation2 + $0x169] sm:$0xff] }
 0x243   : > { %2225 = vst [vmem:[%s3865_s22 + $0x10] sm:$0xff] %v3908_v42  ;;  %v1465_v61 = vpop.permute.xlu2 %1464 }
 0x245   : > { %1448 = vrot.lane.b32.xlu1 %v1371_v32, %s2948_s13 }
 0x246   : > { %892 = vrot.lane.b32.xlu0 %v803_v44, %s2943_s8 }
 0x247   : > { %v885_v7 = vpop.permute.xlu1 %884  ;;  %v1957_v1 = vld [vmem:[#allocation3 + $0xa0] sm:$0xff] }
 0x248   : > { %960 = vst.msk [vmem:[#allocation3 + $0xa8] sm:$0xff] %vm938_vm4, %v885_v7  ;;  %2627 = vmatmul.msk.f32.gmra.mxu3 %vm1977_vm11, %v1957_v1  ;;  %v1078_v26 = vpop.permute.xlu0 %1077  ;;  %v293_v7 = vld [vmem:[%s3092_s6 + $0xf0] sm:$0xff] }
 0x249   : > { %1153 = vst.msk [vmem:[#allocation3 + $0xa8] sm:$0xff] %vm1131_vm6, %v1078_v26  ;;  %1254 = vrot.lane.b32.xlu2 %v3813_v62, %s2945_s10  ;;  %v1946_v9 = vld [vmem:[#allocation3 + $0x48] sm:$0xff]  ;;  %v4045_v26 = vld [vmem:[#allocation2 + $0xe2] sm:$0xff] }
 0x24a   : > { %2616 = vmatmul.msk.f32.gmra.mxu0 %vm1977_vm11, %v1946_v9  ;;  %326 = vst.msk [vmem:[#allocation2 + $0x181] sm:$0xff] %vm207_vm0, %v293_v7  ;;  %v294_v9 = vld [vmem:[%s3092_s6 + $0xf8] sm:$0xff] }
 0x24b   : > { %v1249_v50 = vpop.permute.xlu2 %1248  ;;  %327 = vst.msk [vmem:[#allocation2 + $0x189] sm:$0xff] %vm207_vm0, %v294_v9 }
 0x24d   : > { %1834 = vrot.lane.b32.xlu1 %v3922_v35, %s2947_s12  ;;  %v2104_v52 = vpop.f32.mrf.mxu0 }
 0x24e   : > { %v2105_v16 = vadd.f32 %v3849_v49, %v2104_v52  ;;  %1278 = vrot.lane.b32.xlu0 %v1189_v37, %s2945_s10  ;;  %v4057_v52 = vld [vmem:[#allocation2 + $0x171] sm:$0xff] }
 0x24f   : > { %v1271_v10 = vpop.permute.xlu1 %1270 }
 0x250   : > { %v3931_v20 = vmax.f32 %v2105_v16, 0.0  ;;  %1346 = vst.msk [vmem:[#allocation3 + $0xa8] sm:$0xff] %vm1324_vm7, %v1271_v10  ;;  %v1056_v63 = vpop.permute.xlu0 %1055  ;;  %v4060_v16 = vld [vmem:[#allocation2 + $0x172] sm:$0xff] }
 0x251   : > { %1540 = vst.msk [vmem:[#allocation3 + $0xa8] sm:$0xff] %vm1518_vm8, %v1465_v61  ;;  %1641 = vrot.lane.b32.xlu2 %v3929_v5, %s2946_s11 }
 0x252   : > { %2226 = vst [vmem:[%s3865_s22 + $0x18] sm:$0xff] %v3931_v20 }
 0x253   : > { %1142 = vst.msk [vmem:[#allocation3 + $0x50] sm:$0xff] %vm1131_vm6, %v1056_v63  ;;  %v1636_v39 = vpop.permute.xlu2 %1635 }
 0x254   : > { %1335 = vst.msk [vmem:[#allocation3 + $0x50] sm:$0xff] %vm1324_vm7, %v1249_v50 }
 0x255   : > { %1472 = vrot.lane.b32.xlu1 %v3939_v38, %s2948_s13 }
 0x256   : > { %1665 = vrot.lane.b32.xlu0 %v3942_v27, %s2946_s11 }
 0x257   : > { %v1658_v62 = vpop.permute.xlu1 %1657  ;;  %v2107_v41 = vpop.f32.mrf.mxu0 }
 0x258   : > { %1733 = vst.msk [vmem:[#allocation3 + $0xa8] sm:$0xff] %vm1711_vm9, %v1658_v62  ;;  %v1851_v6 = vpop.permute.xlu0 %1850  ;;  %v2108_v48 = vadd.f32 %v3849_v49, %v2107_v41  ;;  %v1374_v41 = vld [vmem:[#allocation2 + $0xf0] sm:$0xff] }
 0x259   : > { %1926 = vst.msk [vmem:[#allocation3 + $0xa8] sm:$0xff] %vm1904_vm10, %v1851_v6  ;;  %1085 = vrot.lane.b32.xlu2 %v3859_v55, %s2944_s9 }
 0x25a   : > { %v3954_v29 = vmax.f32 %v2108_v48, 0.0 }
 0x25b   : > { %v1080_v57 = vpop.permute.xlu2 %1079 }
 0x25c   : > { %2227 = vst [vmem:[%s3865_s22 + $0x20] sm:$0xff] %v3954_v29 }
 0x25d   : > { %1256 = vrot.lane.b32.xlu1 %v3888_v60, %s2945_s10 }
 0x25e   : > { %1450 = vrot.lane.b32.xlu0 %v1372_v15, %s2948_s13 }
 0x25f   : > { %v1443_v21 = vpop.permute.xlu1 %1442 }
 0x260   : > { %1529 = vst.msk [vmem:[#allocation3 + $0x50] sm:$0xff] %vm1518_vm8, %v1443_v21  ;;  %v887_v11 = vpop.permute.xlu0 %886  ;;  %v1958_v45 = vld [vmem:[#allocation3 + $0xa8] sm:$0xff] }
 0x261   : > { %1722 = vst.msk [vmem:[#allocation3 + $0x50] sm:$0xff] %vm1711_vm9, %v1636_v39  ;;  %2628 = vmatmul.msk.f32.gmra.mxu3 %vm1977_vm11, %v1958_v45  ;;  %1063 = vrot.lane.b32.xlu2 %v3851_v33, %s2944_s9  ;;  %v1769_v33 = vld [vmem:[#allocation2 + $0x15a] sm:$0xff]  ;;  %v1760_v21 = vld [vmem:[#allocation2 + $0xf2] sm:$0xff] }
 0x262   : > { %961 = vst.msk [vmem:[#allocation3 + $0xb0] sm:$0xff] %vm938_vm4, %v887_v11 }
 0x263   : > { %1154 = vst.msk [vmem:[#allocation3 + $0xb0] sm:$0xff] %vm1131_vm6, %v1080_v57  ;;  %v1058_v53 = vpop.permute.xlu2 %1057 }
 0x264   : > { %1143 = vst.msk [vmem:[#allocation3 + $0x58] sm:$0xff] %vm1131_vm6, %v1058_v53 }
 0x265   : > { %1643 = vrot.lane.b32.xlu1 %v3967_v56, %s2946_s11 }
 0x266   : > { %1836 = vrot.lane.b32.xlu0 %v3970_v28, %s2947_s12  ;;  %v2110_v23 = vpop.f32.mrf.mxu0 }
 0x267   : > { %v1829_v8 = vpop.permute.xlu1 %1828  ;;  %v2111_v13 = vadd.f32 %v3849_v49, %v2110_v23  ;;  %v1567_v23 = vld [vmem:[#allocation2 + $0xf1] sm:$0xff] }
 0x268   : > { %1915 = vst.msk [vmem:[#allocation3 + $0x50] sm:$0xff] %vm1904_vm10, %v1829_v8  ;;  %v1273_v46 = vpop.permute.xlu0 %1272 }
 0x269   : > { %1347 = vst.msk [vmem:[#allocation3 + $0xb0] sm:$0xff] %vm1324_vm7, %v1273_v46  ;;  %v3980_v55 = vmax.f32 %v2111_v13, 0.0  ;;  %1858 = vrot.lane.b32.xlu2 %v1769_v33, %s2947_s12 }
 0x26b   : > { %2228 = vst [vmem:[%s3865_s22 + $0x28] sm:$0xff] %v3980_v55  ;;  %v1853_v4 = vpop.permute.xlu2 %1852 }
 0x26d   : > { %1087 = vrot.lane.b32.xlu1 %v3895_v14, %s2944_s9 }
 0x26e   : > { %1474 = vrot.lane.b32.xlu0 %v3985_v30, %s2948_s13 }
 0x26f   : > { %v1467_v18 = vpop.permute.xlu1 %1466  ;;  %v1947_v59 = vld [vmem:[#allocation3 + $0x50] sm:$0xff] }
 0x270   : > { %1541 = vst.msk [vmem:[#allocation3 + $0xb0] sm:$0xff] %vm1518_vm8, %v1467_v18  ;;  %2617 = vmatmul.msk.f32.gmra.mxu0 %vm1977_vm11, %v1947_v59  ;;  %v1660_v12 = vpop.permute.xlu0 %1659  ;;  %v2113_v47 = vpop.f32.mrf.mxu0 }
 0x271   : > { %1734 = vst.msk [vmem:[#allocation3 + $0xb0] sm:$0xff] %vm1711_vm9, %v1660_v12  ;;  %894 = vrot.lane.b32.xlu2 %v3903_v40, %s2943_s8  ;;  %v2114_v25 = vadd.f32 %v3849_v49, %v2113_v47  ;;  %v4111_v12 = vld [vmem:[#allocation2 + $0x181] sm:$0xff] }
 0x272   : > { %1927 = vst.msk [vmem:[#allocation3 + $0xb0] sm:$0xff] %vm1904_vm10, %v1853_v4  ;;  %v1772_v47 = vld [vmem:[#allocation2 + $0x182] sm:$0xff] }
 0x273   : > { %v889_v58 = vpop.permute.xlu2 %888  ;;  %v3998_v36 = vmax.f32 %v2114_v25, 0.0 }
 0x274   : > { %962 = vst.msk [vmem:[#allocation3 + $0xb8] sm:$0xff] %vm938_vm4, %v889_v58  ;;  %v1386_v58 = vld [vmem:[#allocation2 + $0x180] sm:$0xff] }
 0x275   : > { %1065 = vrot.lane.b32.xlu1 %v3929_v5, %s2944_s9  ;;  %2229 = vst [vmem:[%s3865_s22 + $0x30] sm:$0xff] %v3998_v36 }
 0x276   : > { %1258 = vrot.lane.b32.xlu0 %v3922_v35, %s2945_s10 }
 0x277   : > { %v1251_v24 = vpop.permute.xlu1 %1250 }
 0x278   : > { %1336 = vst.msk [vmem:[#allocation3 + $0x58] sm:$0xff] %vm1324_vm7, %v1251_v24  ;;  %v1445_v19 = vpop.permute.xlu0 %1444 }
 0x279   : > { %1530 = vst.msk [vmem:[#allocation3 + $0x58] sm:$0xff] %vm1518_vm8, %v1445_v19  ;;  %v1959_v60 = vld [vmem:[#allocation3 + $0xb0] sm:$0xff]  ;;  %1280 = vrot.lane.b32.xlu2 %v3897_v0, %s2945_s10 }
 0x27a   : > { %2629 = vmatmul.msk.f32.gmra.mxu3 %vm1977_vm11, %v1959_v60 }
 0x27b   : > { %v1275_v14 = vpop.permute.xlu2 %1274 }
 0x27d   : > { %1860 = vrot.lane.b32.xlu1 %v4012_v34, %s2947_s12 }
 0x27e   : > { %1645 = vrot.lane.b32.xlu0 %v4014_v3, %s2946_s11 }
 0x27f   : > { %v1638_v22 = vpop.permute.xlu1 %1637 }
 0x280   : > { %1723 = vst.msk [vmem:[#allocation3 + $0x58] sm:$0xff] %vm1711_vm9, %v1638_v22  ;;  %v1831_v40 = vpop.permute.xlu0 %1830  ;;  %v1761_v22 = vld [vmem:[#allocation2 + $0xfa] sm:$0xff] }
 0x281   : > { %1916 = vst.msk [vmem:[#allocation3 + $0x58] sm:$0xff] %vm1904_vm10, %v1831_v40  ;;  %1667 = vrot.lane.b32.xlu2 %v4020_v31, %s2946_s11 }
 0x283   : > { %v1662_v0 = vpop.permute.xlu2 %1661 }
 0x285   : > { %896 = vrot.lane.b32.xlu1 %v3939_v38, %s2943_s8  ;;  %v4067_v38 = vld [vmem:[#allocation2 + $0x170] sm:$0xff] }
 0x286   : > { %1089 = vrot.lane.b32.xlu0 %v3942_v27, %s2944_s9 }
 0x287   : > { %v1082_v43 = vpop.permute.xlu1 %1081 }
 0x288   : > { %1155 = vst.msk [vmem:[#allocation3 + $0xb8] sm:$0xff] %vm1131_vm6, %v1082_v43  ;;  %v1469_v54 = vpop.permute.xlu0 %1468  ;;  %v1948_v32 = vld [vmem:[#allocation3 + $0x58] sm:$0xff] }
 0x289   : > { %1348 = vst.msk [vmem:[#allocation3 + $0xb8] sm:$0xff] %vm1324_vm7, %v1275_v14  ;;  %1452 = vrot.lane.b32.xlu2 %v4030_v51, %s2948_s13  ;;  %2618 = vmatmul.msk.f32.gmra.mxu0 %vm1977_vm11, %v1948_v32 }
 0x28a   : > { %1542 = vst.msk [vmem:[#allocation3 + $0xb8] sm:$0xff] %vm1518_vm8, %v1469_v54 }
 0x28b   : > { %1735 = vst.msk [vmem:[#allocation3 + $0xb8] sm:$0xff] %vm1711_vm9, %v1662_v0  ;;  %v1447_v44 = vpop.permute.xlu2 %1446  ;;  %v1568_v0 = vld [vmem:[#allocation2 + $0xf9] sm:$0xff] }
 0x28c   : > { %v2149_v61 = vpop.f32.mrf.mxu3 }
 0x28d   : > { %1282 = vrot.lane.b32.xlu1 %v1769_v33, %s2945_s10  ;;  %v2150_v1 = vadd.f32 %v3849_v49, %v2149_v61  ;;  %v1387_v61 = vld [vmem:[#allocation2 + $0x188] sm:$0xff] }
 0x28e   : > { %1067 = vrot.lane.b32.xlu0 %v3967_v56, %s2944_s9 }
 0x28f   : > { %v4048_v35 = vmax.f32 %v2150_v1, 0.0  ;;  %v1060_v37 = vpop.permute.xlu1 %1059 }
 0x290   : > { %1144 = vst.msk [vmem:[#allocation3 + $0x60] sm:$0xff] %vm1131_vm6, %v1060_v37  ;;  %v1253_v50 = vpop.permute.xlu0 %1252 }
 0x291   : > { %2241 = vst [vmem:[%s3865_s22 + $0x90] sm:$0xff] %v4048_v35  ;;  %1838 = vrot.lane.b32.xlu2 %v4045_v26, %s2947_s12 }
 0x292   : > { %1337 = vst.msk [vmem:[#allocation3 + $0x60] sm:$0xff] %vm1324_vm7, %v1253_v50 }
 0x293   : > { %1531 = vst.msk [vmem:[#allocation3 + $0x60] sm:$0xff] %vm1518_vm8, %v1447_v44  ;;  %v1833_v5 = vpop.permute.xlu2 %1832 }
 0x295   : > { %1669 = vrot.lane.b32.xlu1 %v4057_v52, %s2946_s11  ;;  %v2116_v10 = vpop.f32.mrf.mxu0 }
 0x296   : > { %v2117_v63 = vadd.f32 %v3849_v49, %v2116_v10  ;;  %1862 = vrot.lane.b32.xlu0 %v4060_v16, %s2947_s12 }
 0x297   : > { %v1855_v27 = vpop.permute.xlu1 %1854 }
 0x298   : > { %v4069_v39 = vmax.f32 %v2117_v63, 0.0  ;;  %1928 = vst.msk [vmem:[#allocation3 + $0xb8] sm:$0xff] %vm1904_vm10, %v1855_v27  ;;  %v1640_v62 = vpop.permute.xlu0 %1639 }
 0x299   : > { %1724 = vst.msk [vmem:[#allocation3 + $0x60] sm:$0xff] %vm1711_vm9, %v1640_v62  ;;  %1476 = vrot.lane.b32.xlu2 %v4067_v38, %s2948_s13 }
 0x29a   : > { %2230 = vst [vmem:[%s3865_s22 + $0x38] sm:$0xff] %v4069_v39 }
 0x29b   : > { %1917 = vst.msk [vmem:[#allocation3 + $0x60] sm:$0xff] %vm1904_vm10, %v1833_v5  ;;  %v1471_v6 = vpop.permute.xlu2 %1470 }
 0x29d   : > { %1454 = vrot.lane.b32.xlu1 %v1374_v41, %s2948_s13  ;;  %v1388_v41 = vld [vmem:[#allocation2 + $0x198] sm:$0xff] }
 0x29e   : > { %898 = vrot.lane.b32.xlu0 %v3985_v30, %s2943_s8 }
 0x29f   : > { %v891_v48 = vpop.permute.xlu1 %890  ;;  %v1960_v15 = vld [vmem:[#allocation3 + $0xb8] sm:$0xff] }
 0x2a0   : > { %963 = vst.msk [vmem:[#allocation3 + $0xc0] sm:$0xff] %vm938_vm4, %v891_v48  ;;  %2630 = vmatmul.msk.f32.gmra.mxu3 %vm1977_vm11, %v1960_v15  ;;  %v1084_v57 = vpop.permute.xlu0 %1083 }
 0x2a1   : > { %1156 = vst.msk [vmem:[#allocation3 + $0xc0] sm:$0xff] %vm1131_vm6, %v1084_v57  ;;  %1260 = vrot.lane.b32.xlu2 %v3970_v28, %s2945_s10 }
 0x2a2   : > { %v1949_v11 = vld [vmem:[#allocation3 + $0x60] sm:$0xff] }
 0x2a3   : > { %v1255_v45 = vpop.permute.xlu2 %1254  ;;  %2619 = vmatmul.msk.f32.gmra.mxu0 %vm1977_vm11, %v1949_v11 }
 0x2a5   : > { %1840 = vrot.lane.b32.xlu1 %v1760_v21, %s2947_s12  ;;  %v2152_v56 = vpop.f32.mrf.mxu3 }
 0x2a6   : > { %v2153_v53 = vadd.f32 %v3849_v49, %v2152_v56  ;;  %1284 = vrot.lane.b32.xlu0 %v4012_v34, %s2945_s10  ;;  %v1375_v34 = vld [vmem:[#allocation2 + $0xf8] sm:$0xff] }
 0x2a7   : > { %v1277_v33 = vpop.permute.xlu1 %1276  ;;  %v1581_v56 = vld [vmem:[#allocation2 + $0x199] sm:$0xff] }
 0x2a8   : > { %v4091_v8 = vmax.f32 %v2153_v53, 0.0  ;;  %1349 = vst.msk [vmem:[#allocation3 + $0xc0] sm:$0xff] %vm1324_vm7, %v1277_v33  ;;  %v1062_v28 = vpop.permute.xlu0 %1061 }
 0x2a9   : > { %1543 = vst.msk [vmem:[#allocation3 + $0xc0] sm:$0xff] %vm1518_vm8, %v1471_v6  ;;  %1647 = vrot.lane.b32.xlu2 %v1567_v23, %s2946_s11 }
 0x2aa   : > { %2242 = vst [vmem:[%s3865_s22 + $0x98] sm:$0xff] %v4091_v8 }
 0x2ab   : > { %1145 = vst.msk [vmem:[#allocation3 + $0x68] sm:$0xff] %vm1131_vm6, %v1062_v28  ;;  %v1642_v13 = vpop.permute.xlu2 %1641  ;;  %v1389_v28 = vld [vmem:[#allocation2 + $0x1a0] sm:$0xff] }
 0x2ac   : > { %1338 = vst.msk [vmem:[#allocation3 + $0x68] sm:$0xff] %vm1324_vm7, %v1255_v45 }
 0x2ad   : > { %876 = vrot.lane.b32.xlu1 %v4030_v51, %s2943_s8 }
 0x2ae   : > { %1069 = vrot.lane.b32.xlu0 %v4014_v3, %s2944_s9  ;;  %v2119_v46 = vpop.f32.mrf.mxu0 }
 0x2af   : > { %v1664_v30 = vpop.permute.xlu1 %1663  ;;  %v2120_v4 = vadd.f32 %v3849_v49, %v2119_v46 }
 0x2b0   : > { %1736 = vst.msk [vmem:[#allocation3 + $0xc0] sm:$0xff] %vm1711_vm9, %v1664_v30  ;;  %v1857_v18 = vpop.permute.xlu0 %1856 }
 0x2b1   : > { %1929 = vst.msk [vmem:[#allocation3 + $0xc0] sm:$0xff] %vm1904_vm10, %v1857_v18  ;;  %1091 = vrot.lane.b32.xlu2 %v4020_v31, %s2944_s9  ;;  %v4109_v59 = vmax.f32 %v2120_v4, 0.0 }
 0x2b3   : > { %v1086_v25 = vpop.permute.xlu2 %1085  ;;  %2231 = vst [vmem:[%s3865_s22 + $0x40] sm:$0xff] %v4109_v59 }
 0x2b5   : > { %1671 = vrot.lane.b32.xlu1 %v4111_v12, %s2946_s11 }
 0x2b6   : > { %1864 = vrot.lane.b32.xlu0 %v1772_v47, %s2947_s12 }
 0x2b7   : > { %v1449_v24 = vpop.permute.xlu1 %1448 }
 0x2b8   : > { %1532 = vst.msk [vmem:[#allocation3 + $0x68] sm:$0xff] %vm1518_vm8, %v1449_v24  ;;  %v893_v19 = vpop.permute.xlu0 %892  ;;  %v1961_v60 = vld [vmem:[#allocation3 + $0xc0] sm:$0xff] }
 0x2b9   : > { %1725 = vst.msk [vmem:[#allocation3 + $0x68] sm:$0xff] %vm1711_vm9, %v1642_v13  ;;  %2631 = vmatmul.msk.f32.gmra.mxu3 %vm1977_vm11, %v1961_v60  ;;  %1478 = vrot.lane.b32.xlu2 %v1386_v58, %s2948_s13  ;;  %v1775_v13 = vld [vmem:[#allocation2 + $0x1a2] sm:$0xff] }
 0x2ba   : > { %964 = vst.msk [vmem:[#allocation3 + $0xc8] sm:$0xff] %vm938_vm4, %v893_v19 }
 0x2bb   : > { %1157 = vst.msk [vmem:[#allocation3 + $0xc8] sm:$0xff] %vm1131_vm6, %v1086_v25  ;;  %v1064_v3 = vpop.permute.xlu2 %1063 }
 0x2bc   : > { %1146 = vst.msk [vmem:[#allocation3 + $0x70] sm:$0xff] %vm1131_vm6, %v1064_v3 }
 0x2bd   : > { %1456 = vrot.lane.b32.xlu1 %v1375_v34, %s2948_s13 }
 0x2be   : > { %900 = vrot.lane.b32.xlu0 %v4067_v38, %s2943_s8  ;;  %v1580_v38 = vld [vmem:[#allocation2 + $0x189] sm:$0xff] }
 0x2bf   : > { %v1835_v14 = vpop.permute.xlu1 %1834 }
 0x2c0   : > { %1918 = vst.msk [vmem:[#allocation3 + $0x68] sm:$0xff] %vm1904_vm10, %v1835_v14  ;;  %v1279_v31 = vpop.permute.xlu0 %1278 }
 0x2c1   : > { %1350 = vst.msk [vmem:[#allocation3 + $0xc8] sm:$0xff] %vm1324_vm7, %v1279_v31  ;;  %1262 = vrot.lane.b32.xlu2 %v4045_v26, %s2945_s10  ;;  %v1773_v26 = vld [vmem:[#allocation2 + $0x18a] sm:$0xff] }
 0x2c3   : > { %v1859_v40 = vpop.permute.xlu2 %1858 }
 0x2c5   : > { %1842 = vrot.lane.b32.xlu1 %v1761_v22, %s2947_s12 }
 0x2c6   : > { %1286 = vrot.lane.b32.xlu0 %v4060_v16, %s2945_s10 }
 0x2c7   : > { %v1473_v51 = vpop.permute.xlu1 %1472  ;;  %v1950_v43 = vld [vmem:[#allocation3 + $0x68] sm:$0xff]  ;;  %v2122_v54 = vpop.f32.mrf.mxu0 }
 0x2c8   : > { %1544 = vst.msk [vmem:[#allocation3 + $0xc8] sm:$0xff] %vm1518_vm8, %v1473_v51  ;;  %2620 = vmatmul.msk.f32.gmra.mxu0 %vm1977_vm11, %v1950_v43  ;;  %v1666_v32 = vpop.permute.xlu0 %1665  ;;  %v2123_v44 = vadd.f32 %v3849_v49, %v2122_v54 }
 0x2c9   : > { %1737 = vst.msk [vmem:[#allocation3 + $0xc8] sm:$0xff] %vm1711_vm9, %v1666_v32  ;;  %1649 = vrot.lane.b32.xlu2 %v1568_v0, %s2946_s11 }
 0x2ca   : > { %1930 = vst.msk [vmem:[#allocation3 + $0xc8] sm:$0xff] %vm1904_vm10, %v1859_v40  ;;  %v4141_v7 = vmax.f32 %v2123_v44, 0.0 }
 0x2cb   : > { %v2155_v1 = vpop.f32.mrf.mxu3  ;;  %v895_v9 = vpop.permute.xlu2 %894 }
 0x2cc   : > { %v2156_v37 = vadd.f32 %v3849_v49, %v2155_v1  ;;  %965 = vst.msk [vmem:[#allocation3 + $0xd0] sm:$0xff] %vm938_vm4, %v895_v9 }
 0x2cd   : > { %1480 = vrot.lane.b32.xlu1 %v1387_v61, %s2948_s13  ;;  %2232 = vst [vmem:[%s3865_s22 + $0x48] sm:$0xff] %v4141_v7 }
 0x2ce   : > { %v4148_v50 = vmax.f32 %v2156_v37, 0.0  ;;  %1866 = vrot.lane.b32.xlu0 %v1773_v26, %s2947_s12 }
 0x2cf   : > { %v1257_v16 = vpop.permute.xlu1 %1256 }
 0x2d0   : > { %2243 = vst [vmem:[%s3865_s22 + $0xa0] sm:$0xff] %v4148_v50  ;;  %v1451_v5 = vpop.permute.xlu0 %1450 }
 0x2d1   : > { %1339 = vst.msk [vmem:[#allocation3 + $0x70] sm:$0xff] %vm1324_vm7, %v1257_v16  ;;  %v1962_v10 = vld [vmem:[#allocation3 + $0xc8] sm:$0xff]  ;;  %1093 = vrot.lane.b32.xlu2 %v4057_v52, %s2944_s9 }
 0x2d2   : > { %1533 = vst.msk [vmem:[#allocation3 + $0x70] sm:$0xff] %vm1518_vm8, %v1451_v5  ;;  %2632 = vmatmul.msk.f32.gmra.mxu3 %vm1977_vm11, %v1962_v10  ;;  %v1774_v52 = vld [vmem:[#allocation2 + $0x19a] sm:$0xff] }
 0x2d3   : > { %v1281_v63 = vpop.permute.xlu2 %1280 }
 0x2d5   : > { %902 = vrot.lane.b32.xlu1 %v1386_v58, %s2943_s8  ;;  %v1582_v58 = vld [vmem:[#allocation2 + $0x1a1] sm:$0xff] }
 0x2d6   : > { %1288 = vrot.lane.b32.xlu0 %v1772_v47, %s2945_s10 }
 0x2d7   : > { %v1644_v27 = vpop.permute.xlu1 %1643 }
 0x2d8   : > { %1726 = vst.msk [vmem:[#allocation3 + $0x70] sm:$0xff] %vm1711_vm9, %v1644_v27  ;;  %v1837_v62 = vpop.permute.xlu0 %1836 }
 0x2d9   : > { %1919 = vst.msk [vmem:[#allocation3 + $0x70] sm:$0xff] %vm1904_vm10, %v1837_v62  ;;  %1673 = vrot.lane.b32.xlu2 %v1580_v38, %s2946_s11 }
 0x2db   : > { %v1668_v6 = vpop.permute.xlu2 %1667 }
 0x2dd   : > { %1482 = vrot.lane.b32.xlu1 %v1388_v41, %s2948_s13 }
 0x2de   : > { %1868 = vrot.lane.b32.xlu0 %v1774_v52, %s2947_s12 }
 0x2df   : > { %v1088_v48 = vpop.permute.xlu1 %1087 }
 0x2e0   : > { %1158 = vst.msk [vmem:[#allocation3 + $0xd0] sm:$0xff] %vm1131_vm6, %v1088_v48  ;;  %v1475_v15 = vpop.permute.xlu0 %1474  ;;  %v1951_v57 = vld [vmem:[#allocation3 + $0x70] sm:$0xff] }
 0x2e1   : > { %1351 = vst.msk [vmem:[#allocation3 + $0xd0] sm:$0xff] %vm1324_vm7, %v1281_v63  ;;  %1095 = vrot.lane.b32.xlu2 %v4111_v12, %s2944_s9  ;;  %2621 = vmatmul.msk.f32.gmra.mxu0 %vm1977_vm11, %v1951_v57 }
 0x2e2   : > { %1545 = vst.msk [vmem:[#allocation3 + $0xd0] sm:$0xff] %vm1518_vm8, %v1475_v15 }
 0x2e3   : > { %1738 = vst.msk [vmem:[#allocation3 + $0xd0] sm:$0xff] %vm1711_vm9, %v1668_v6  ;;  %v1453_v21 = vpop.permute.xlu2 %1452 }
 0x2e4   : > { %v2158_v11 = vpop.f32.mrf.mxu3 }
 0x2e5   : > { %904 = vrot.lane.b32.xlu1 %v1387_v61, %s2943_s8  ;;  %v2159_v45 = vadd.f32 %v3849_v49, %v2158_v11 }
 0x2e6   : > { %1290 = vrot.lane.b32.xlu0 %v1773_v26, %s2945_s10  ;;  %s2648_s10 = sshll.u32 %s2997_s19, 8 }
 0x2e7   : > { %v4175_v53 = vmax.f32 %v2159_v45, 0.0  ;;  %v1066_v23 = vpop.permute.xlu1 %1065 }
 0x2e8   : > { %1147 = vst.msk [vmem:[#allocation3 + $0x78] sm:$0xff] %vm1131_vm6, %v1066_v23  ;;  %v1259_v33 = vpop.permute.xlu0 %1258 }
 0x2e9   : > { %2244 = vst [vmem:[%s3865_s22 + $0xa8] sm:$0xff] %v4175_v53  ;;  %1675 = vrot.lane.b32.xlu2 %v1581_v56, %s2946_s11 }
 0x2ea   : > { %1340 = vst.msk [vmem:[#allocation3 + $0x78] sm:$0xff] %vm1324_vm7, %v1259_v33 }
 0x2eb   : > { %1534 = vst.msk [vmem:[#allocation3 + $0x78] sm:$0xff] %vm1518_vm8, %v1453_v21  ;;  %v1839_v46 = vpop.permute.xlu2 %1838 }
 0x2ed   : > { %1484 = vrot.lane.b32.xlu1 %v1389_v28, %s2948_s13  ;;  %v2125_v30 = vpop.f32.mrf.mxu0  ;;  %s2482_s13 = scalar_lea.hbm %s4451_s3, %s2648_s10 }
 0x2ee   : > { %v2126_v4 = vadd.f32 %v3849_v49, %v2125_v30  ;;  %1870 = vrot.lane.b32.xlu0 %v1775_v13, %s2947_s12  ;;  %s2485_s27 = sshll.u32 %s2482_s13, 4  ;;  %s2486_s27 = int_to_ptr.hbm [resolvable:$true] %s2485_s27 }
 0x2ef   : > { %v1861_v18 = vpop.permute.xlu1 %1860  ;;  %s2858_s29 = sshra.s32 %s2486_s27, 4  ;;  %s2859_s29 = int_to_ptr.hbm [resolvable:$true] %s2858_s29 }
 0x2f0   : > { %v4186_v12 = vmax.f32 %v2126_v4, 0.0  ;;  %1931 = vst.msk [vmem:[#allocation3 + $0xd0] sm:$0xff] %vm1904_vm10, %v1861_v18  ;;  %v1646_v47 = vpop.permute.xlu0 %1645  ;;  %s2860_s30 = scalar_lea.hbm %s2859_s29, 256  ;;  %p2865_p0 = scmp.lt.s32.totalorder %s2859_s29, %s4451_s3 }
 0x2f1   : > { %1727 = vst.msk [vmem:[#allocation3 + $0x78] sm:$0xff] %vm1711_vm9, %v1646_v47  ;;  %1097 = vrot.lane.b32.xlu2 %v1580_v38, %s2944_s9  ;;  %s2603_s9 = sshll.u32 %s3842_s5, 7  ;;  %p2861_p11 = scmp.ne.s32.totalorder %s2859_s29, %s2860_s30 }
 0x2f2   : > { %2233 = vst [vmem:[%s3865_s22 + $0x50] sm:$0xff] %v4186_v12  ;;  %p2866_p1 = scmp.lt.s32.totalorder %s2864_s20, %s2860_s30 }
 0x2f3   : > { %1920 = vst.msk [vmem:[#allocation3 + $0x78] sm:$0xff] %vm1904_vm10, %v1839_v46  ;;  %v1477_v25 = vpop.permute.xlu2 %1476  ;;  %p2862_p12 = pnand %p2861_p11, %p3014_p5 }
 0x2f4   : > { %p2867_p2 = por %p2866_p1, %p2865_p0 }
 0x2f5   : > { %p2863_p13 = pneg %p2862_p12 }
 0x2f7   : > { %v897_v24 = vpop.permute.xlu1 %896  ;;  %v1963_v19 = vld [vmem:[#allocation3 + $0xd0] sm:$0xff]  ;;  %p2868_p3 = pnand %p2867_p2, %p2863_p13 }
 0x2f8   : > { %966 = vst.msk [vmem:[#allocation3 + $0xd8] sm:$0xff] %vm938_vm4, %v897_v24  ;;  %2633 = vmatmul.msk.f32.gmra.mxu3 %vm1977_vm11, %v1963_v19  ;;  %v1090_v60 = vpop.permute.xlu0 %1089 }
 0x2f9   : > { %1159 = vst.msk [vmem:[#allocation3 + $0xd8] sm:$0xff] %vm1131_vm6, %v1090_v60  ;;  %1677 = vrot.lane.b32.xlu2 %v1582_v58, %s2946_s11 }
 0x2fa   : > { %v1952_v34 = vld [vmem:[#allocation3 + $0x78] sm:$0xff] }
 0x2fb   : > { %2622 = vmatmul.msk.f32.gmra.mxu0 %vm1977_vm11, %v1952_v34  ;;  %v1261_v3 = vpop.permute.xlu2 %1260 }
 0x2fd   : > { %v2161_v14 = vpop.f32.mrf.mxu3 }
 0x2fe   : > { %v2162_v31 = vadd.f32 %v3849_v49, %v2161_v14 }
 0x2ff   : > { %v1283_v22 = vpop.permute.xlu1 %1282 }
 0x300   : > { %v4200_v40 = vmax.f32 %v2162_v31, 0.0  ;;  %1352 = vst.msk [vmem:[#allocation3 + $0xd8] sm:$0xff] %vm1324_vm7, %v1283_v22  ;;  %v1068_v0 = vpop.permute.xlu0 %1067 }
 0x301   : > { %1546 = vst.msk [vmem:[#allocation3 + $0xd8] sm:$0xff] %vm1518_vm8, %v1477_v25 }
 0x302   : > { %2245 = vst [vmem:[%s3865_s22 + $0xb0] sm:$0xff] %v4200_v40 }
 0x303   : > { %1148 = vst.msk [vmem:[#allocation3 + $0x80] sm:$0xff] %vm1131_vm6, %v1068_v0  ;;  %v1648_v51 = vpop.permute.xlu2 %1647 }
 0x304   : > { %1341 = vst.msk [vmem:[#allocation3 + $0x80] sm:$0xff] %vm1324_vm7, %v1261_v3 }
 0x306   : > { %v2128_v43 = vpop.f32.mrf.mxu0 }
 0x307   : > { %v1670_v54 = vpop.permute.xlu1 %1669  ;;  %v2129_v32 = vadd.f32 %v3849_v49, %v2128_v43 }
 0x308   : > { %1739 = vst.msk [vmem:[#allocation3 + $0xd8] sm:$0xff] %vm1711_vm9, %v1670_v54  ;;  %v1863_v44 = vpop.permute.xlu0 %1862 }
 0x309   : > { %1932 = vst.msk [vmem:[#allocation3 + $0xd8] sm:$0xff] %vm1904_vm10, %v1863_v44  ;;  %v4211_v61 = vmax.f32 %v2129_v32, 0.0 }
 0x30b   : > { %v1092_v1 = vpop.permute.xlu2 %1091  ;;  %2234 = vst [vmem:[%s3865_s22 + $0x58] sm:$0xff] %v4211_v61 }
 0x30f   : > { %v1455_v26 = vpop.permute.xlu1 %1454 }
 0x310   : > { %1535 = vst.msk [vmem:[#allocation3 + $0x80] sm:$0xff] %vm1518_vm8, %v1455_v26  ;;  %v899_v9 = vpop.permute.xlu0 %898  ;;  %v1964_v37 = vld [vmem:[#allocation3 + $0xd8] sm:$0xff] }
 0x311   : > { %1728 = vst.msk [vmem:[#allocation3 + $0x80] sm:$0xff] %vm1711_vm9, %v1648_v51  ;;  %2634 = vmatmul.msk.f32.gmra.mxu3 %vm1977_vm11, %v1964_v37 }
 0x312   : > { %967 = vst.msk [vmem:[#allocation3 + $0xe0] sm:$0xff] %vm938_vm4, %v899_v9 }
 0x313   : > { %1160 = vst.msk [vmem:[#allocation3 + $0xe0] sm:$0xff] %vm1131_vm6, %v1092_v1  ;;  %v1479_v16 = vpop.permute.xlu2 %1478 }
 0x317   : > { %v1841_v5 = vpop.permute.xlu1 %1840 }
 0x318   : > { %1921 = vst.msk [vmem:[#allocation3 + $0x80] sm:$0xff] %vm1904_vm10, %v1841_v5  ;;  %v1285_v10 = vpop.permute.xlu0 %1284 }
 0x319   : > { %1353 = vst.msk [vmem:[#allocation3 + $0xe0] sm:$0xff] %vm1324_vm7, %v1285_v10 }
 0x31a   : > { %1547 = vst.msk [vmem:[#allocation3 + $0xe0] sm:$0xff] %vm1518_vm8, %v1479_v16 }
 0x31b   : > { %v1263_v63 = vpop.permute.xlu2 %1262 }
 0x31f   : > { %v877_v38 = vpop.permute.xlu1 %876  ;;  %v1953_v27 = vld [vmem:[#allocation3 + $0x80] sm:$0xff] }
 0x320   : > { %956 = vst.msk [vmem:[#allocation3 + $0x88] sm:$0xff] %vm938_vm4, %v877_v38  ;;  %2623 = vmatmul.msk.f32.gmra.mxu0 %vm1977_vm11, %v1953_v27  ;;  %v1070_v62 = vpop.permute.xlu0 %1069  ;;  %v2131_v41 = vpop.f32.mrf.mxu0 }
 0x321   : > { %1149 = vst.msk [vmem:[#allocation3 + $0x88] sm:$0xff] %vm1131_vm6, %v1070_v62  ;;  %v2132_v52 = vadd.f32 %v3849_v49, %v2131_v41 }
 0x322   : > { %1342 = vst.msk [vmem:[#allocation3 + $0x88] sm:$0xff] %vm1324_vm7, %v1263_v63 }
 0x323   : > { %v2164_v6 = vpop.f32.mrf.mxu3  ;;  %v4228_v48 = vmax.f32 %v2132_v52, 0.0  ;;  %v1650_v15 = vpop.permute.xlu2 %1649 }
 0x324   : > { %v2165_v57 = vadd.f32 %v3849_v49, %v2164_v6 }
 0x325   : > { %2235 = vst [vmem:[%s3865_s22 + $0x60] sm:$0xff] %v4228_v48 }
 0x326   : > { %v4233_v21 = vmax.f32 %v2165_v57, 0.0 }
 0x327   : > { %v1672_v11 = vpop.permute.xlu1 %1671 }
 0x328   : > { %2246 = vst [vmem:[%s3865_s22 + $0xb8] sm:$0xff] %v4233_v21  ;;  %v1865_v45 = vpop.permute.xlu0 %1864 }
 0x329   : > { %1740 = vst.msk [vmem:[#allocation3 + $0xe0] sm:$0xff] %vm1711_vm9, %v1672_v11 }
 0x32a   : > { %1933 = vst.msk [vmem:[#allocation3 + $0xe0] sm:$0xff] %vm1904_vm10, %v1865_v45  ;;  %v2841_v45 = vld [vmem:[%s4450_s2] ss:$0 sm:$0xff] }
 0x32b   : > { %v1094_v56 = vpop.permute.xlu2 %1093 }
 0x32f   : > { %v1457_v23 = vpop.permute.xlu1 %1456 }
 0x330   : > { %1536 = vst.msk [vmem:[#allocation3 + $0x88] sm:$0xff] %vm1518_vm8, %v1457_v23  ;;  %v901_v33 = vpop.permute.xlu0 %900 }
 0x331   : > { %1729 = vst.msk [vmem:[#allocation3 + $0x88] sm:$0xff] %vm1711_vm9, %v1650_v15  ;;  %v1965_v28 = vld [vmem:[#allocation3 + $0xe0] sm:$0xff] }
 0x332   : > { %968 = vst.msk [vmem:[#allocation3 + $0xe8] sm:$0xff] %vm938_vm4, %v901_v33  ;;  %2635 = vmatmul.msk.f32.gmra.mxu3 %vm1977_vm11, %v1965_v28  ;;  %v2842_v33 = vld [vmem:[%s3865_s22 + $0x8] sm:$0xff]  ;;  %v2843_v28 = vld [vmem:[%s3865_s22] sm:$0xff] }
 0x333   : > { %1161 = vst.msk [vmem:[#allocation3 + $0xe8] sm:$0xff] %vm1131_vm6, %v1094_v56  ;;  %v1674_v13 = vpop.permute.xlu2 %1673 }
 0x337   : > { %v1843_v46 = vpop.permute.xlu1 %1842 }
 0x338   : > { %1922 = vst.msk [vmem:[#allocation3 + $0x88] sm:$0xff] %vm1904_vm10, %v1843_v46  ;;  %v1287_v30 = vpop.permute.xlu0 %1286 }
 0x339   : > { %1354 = vst.msk [vmem:[#allocation3 + $0xe8] sm:$0xff] %vm1324_vm7, %v1287_v30 }
 0x33b   : > { %v1096_v19 = vpop.permute.xlu2 %1095 }
 0x33c   : > { %v2167_v4 = vpop.f32.mrf.mxu3 }
 0x33d   : > { %v2168_v18 = vadd.f32 %v3849_v49, %v2167_v4 }
 0x33f   : > { %v4247_v47 = vmax.f32 %v2168_v18, 0.0  ;;  %v1481_v25 = vpop.permute.xlu1 %1480  ;;  %v1954_v58 = vld [vmem:[#allocation3 + $0x88] sm:$0xff] }
 0x340   : > { %1548 = vst.msk [vmem:[#allocation3 + $0xe8] sm:$0xff] %vm1518_vm8, %v1481_v25  ;;  %2624 = vmatmul.msk.f32.gmra.mxu0 %vm1977_vm11, %v1954_v58  ;;  %v1867_v24 = vpop.permute.xlu0 %1866 }
 0x341   : > { %2247 = vst [vmem:[%s3865_s22 + $0xc0] sm:$0xff] %v4247_v47 }
 0x342   : > { %1741 = vst.msk [vmem:[#allocation3 + $0xe8] sm:$0xff] %vm1711_vm9, %v1674_v13 }
 0x343   : > { %1934 = vst.msk [vmem:[#allocation3 + $0xe8] sm:$0xff] %vm1904_vm10, %v1867_v24  ;;  %v1676_v0 = vpop.permute.xlu2 %1675 }
 0x345   : > { %v2134_v60 = vpop.f32.mrf.mxu0 }
 0x346   : > { %v2135_v34 = vadd.f32 %v3849_v49, %v2134_v60  ;;  %v2732_v60 = vpack.i.bf16 %v3908_v42, %v4048_v35 }
 0x347   : > { %v903_v3 = vpop.permute.xlu1 %902 }
 0x348   : > { %v4256_v14 = vmax.f32 %v2135_v34, 0.0  ;;  %969 = vst.msk [vmem:[#allocation3 + $0xf0] sm:$0xff] %vm938_vm4, %v903_v3  ;;  %v1289_v31 = vpop.permute.xlu0 %1288 }
 0x349   : > { %1162 = vst.msk [vmem:[#allocation3 + $0xf0] sm:$0xff] %vm1131_vm6, %v1096_v19 }
 0x34a   : > { %2236 = vst [vmem:[%s3865_s22 + $0x68] sm:$0xff] %v4256_v14  ;;  %v1966_v22 = vld [vmem:[#allocation3 + $0xe8] sm:$0xff] }
 0x34b   : > { %1355 = vst.msk [vmem:[#allocation3 + $0xf0] sm:$0xff] %vm1324_vm7, %v1289_v31  ;;  %2636 = vmatmul.msk.f32.gmra.mxu3 %vm1977_vm11, %v1966_v22  ;;  %v1098_v54 = vpop.permute.xlu2 %1097  ;;  %v2734_v22 = vpack.i.bf16 %v3931_v20, %v4091_v8 }
 0x34f   : > { %v1483_v51 = vpop.permute.xlu1 %1482 }
 0x350   : > { %1549 = vst.msk [vmem:[#allocation3 + $0xf0] sm:$0xff] %vm1518_vm8, %v1483_v51  ;;  %v1869_v43 = vpop.permute.xlu0 %1868 }
 0x351   : > { %1742 = vst.msk [vmem:[#allocation3 + $0xf0] sm:$0xff] %vm1711_vm9, %v1676_v0  ;;  %v2736_v0 = vpack.i.bf16 %v3954_v29, %v4148_v50 }
 0x352   : > { %1935 = vst.msk [vmem:[#allocation3 + $0xf0] sm:$0xff] %vm1904_vm10, %v1869_v43 }
 0x353   : > { %v1678_v16 = vpop.permute.xlu2 %1677 }
 0x355   : > { %v2170_v32 = vpop.f32.mrf.mxu3 }
 0x356   : > { %v2171_v44 = vadd.f32 %v3849_v49, %v2170_v32  ;;  %v2740_v32 = vpack.i.bf16 %v3998_v36, %v4200_v40 }
 0x357   : > { %v905_v1 = vpop.permute.xlu1 %904 }
 0x358   : > { %v4268_v26 = vmax.f32 %v2171_v44, 0.0  ;;  %970 = vst.msk [vmem:[#allocation3 + $0xf8] sm:$0xff] %vm938_vm4, %v905_v1  ;;  %v1291_v9 = vpop.permute.xlu0 %1290 }
 0x359   : > { %1163 = vst.msk [vmem:[#allocation3 + $0xf8] sm:$0xff] %vm1131_vm6, %v1098_v54  ;;  %v1967_v37 = vld [vmem:[#allocation3 + $0xf0] sm:$0xff] }
 0x35a   : > { %2248 = vst [vmem:[%s3865_s22 + $0xc8] sm:$0xff] %v4268_v26  ;;  %2637 = vmatmul.msk.f32.gmra.mxu3 %vm1977_vm11, %v1967_v37 }
 0x35b   : > { %1356 = vst.msk [vmem:[#allocation3 + $0xf8] sm:$0xff] %vm1324_vm7, %v1291_v9 }
 0x35e   : > { %v2137_v5 = vpop.f32.mrf.mxu0 }
 0x35f   : > { %v1485_v10 = vpop.permute.xlu1 %1484  ;;  %v2138_v63 = vadd.f32 %v3849_v49, %v2137_v5 }
 0x360   : > { %1550 = vst.msk [vmem:[#allocation3 + $0xf8] sm:$0xff] %vm1518_vm8, %v1485_v10  ;;  %v1871_v38 = vpop.permute.xlu0 %1870 }
 0x361   : > { %1743 = vst.msk [vmem:[#allocation3 + $0xf8] sm:$0xff] %vm1711_vm9, %v1678_v16  ;;  %v4279_v27 = vmax.f32 %v2138_v63, 0.0 }
 0x362   : > { %1936 = vst.msk [vmem:[#allocation3 + $0xf8] sm:$0xff] %vm1904_vm10, %v1871_v38 }
 0x363   : > { %2237 = vst [vmem:[%s3865_s22 + $0x70] sm:$0xff] %v4279_v27 }
 0x369   : > { %v1968_v62 = vld [vmem:[#allocation3 + $0xf8] sm:$0xff] }
 0x36a   : > { %2638 = vmatmul.msk.f32.gmra.mxu3 %vm1977_vm11, %v1968_v62 }
 0x378   : > { %v2140_v41 = vpop.f32.mrf.mxu0 }
 0x379   : > { %v2141_v52 = vadd.f32 %v3849_v49, %v2140_v41 }
 0x37b   : > { %v4286_v6 = vmax.f32 %v2141_v52, 0.0  ;;  %v2173_v15 = vpop.f32.mrf.mxu3 }
 0x37c   : > { %v2174_v57 = vadd.f32 %v3849_v49, %v2173_v15 }
 0x37d   : > { %2238 = vst [vmem:[%s3865_s22 + $0x78] sm:$0xff] %v4286_v6  ;;  %2319 = vmatpush.msra.mxu1 %v4286_v6  ;;  %2654 = vmatpush.msrb.mxu3 %v4286_v6 }
 0x37e   : > { %v4293_v11 = vmax.f32 %v2174_v57, 0.0 }
 0x37f   : > { %2320 = vmatpush.msra.mxu1 %v4279_v27  ;;  %2655 = vmatpush.msrb.mxu3 %v4279_v27 }
 0x380   : > { %2249 = vst [vmem:[%s3865_s22 + $0xd0] sm:$0xff] %v4293_v11 }
 0x381   : > { %2321 = vmatpush.msra.mxu1 %v4256_v14  ;;  %2656 = vmatpush.msrb.mxu3 %v4256_v14 }
 0x383   : > { %2322 = vmatpush.msra.mxu1 %v4228_v48  ;;  %2657 = vmatpush.msrb.mxu3 %v4228_v48 }
 0x385   : > { %2323 = vmatpush.msra.mxu1 %v4211_v61  ;;  %2658 = vmatpush.msrb.mxu3 %v4211_v61 }
 0x387   : > { %2324 = vmatpush.msra.mxu1 %v4186_v12  ;;  %2659 = vmatpush.msrb.mxu3 %v4186_v12 }
 0x389   : > { %2325 = vmatpush.msra.mxu1 %v4141_v7  ;;  %2660 = vmatpush.msrb.mxu3 %v4141_v7 }
 0x38b   : > { %2326 = vmatpush.msra.mxu1 %v4109_v59  ;;  %2661 = vmatpush.msrb.mxu3 %v4109_v59 }
 0x38d   : > { %2327 = vmatpush.msra.mxu1 %v4069_v39  ;;  %2662 = vmatpush.msrb.mxu3 %v4069_v39 }
 0x38f   : > { %2328 = vmatpush.msra.mxu1 %v3998_v36  ;;  %2663 = vmatpush.msrb.mxu3 %v3998_v36  ;;  %v2746_v36 = vpack.i.bf16 %v4141_v7, %v4268_v26 }
 0x391   : > { %2329 = vmatpush.msra.mxu1 %v3980_v55  ;;  %2664 = vmatpush.msrb.mxu3 %v3980_v55 }
 0x393   : > { %2330 = vmatpush.msra.mxu1 %v3954_v29  ;;  %2665 = vmatpush.msrb.mxu3 %v3954_v29  ;;  %v2742_v29 = vpack.i.bf16 %v4069_v39, %v4233_v21  ;;  %v2748_v39 = vpack.i.bf16 %v4186_v12, %v4293_v11 }
 0x394   : > { %v2176_v49 = vpop.f32.mrf.mxu3 }
 0x395   : > { %v2177_v56 = vadd.f32 %v2841_v45, %v2176_v49  ;;  %2331 = vmatpush.msra.mxu1 %v3931_v20  ;;  %2666 = vmatpush.msrb.mxu3 %v3931_v20 }
 0x397   : > { %v4324_v23 = vmax.f32 %v2177_v56, 0.0  ;;  %2332 = vmatpush.msra.mxu1 %v3908_v42  ;;  %2667 = vmatpush.msrb.mxu3 %v3908_v42  ;;  %v2738_v42 = vpack.i.bf16 %v3980_v55, %v4175_v53  ;;  %v2744_v55 = vpack.i.bf16 %v4109_v59, %v4247_v47 }
 0x399   : > { %2250 = vst [vmem:[%s3865_s22 + $0xd8] sm:$0xff] %v4324_v23  ;;  %2333 = vmatpush.msra.mxu1 %v2192_v2  ;;  %2668 = vmatpush.msrb.mxu3 %v2842_v33  ;;  %v2750_v59 = vpack.i.bf16 %v4211_v61, %v4324_v23 }
 0x39b   : > { %2334 = vmatpush.msra.mxu1 %v2843_v28  ;;  %2669 = vmatpush.msrb.mxu3 %v2843_v28 }
 0x39d   : > { %v2143_v13 = vpop.f32.mrf.mxu0 }
 0x39e   : > { %v2144_v46 = vadd.f32 %v2841_v45, %v2143_v13 }
 0x3a0   : > { %v2207_v30 = vmax.f32 %v2144_v46, 0.0 }
 0x3a2   : > { %2239 = vst [vmem:[%s3865_s22 + $0x80] sm:$0xff] %v2207_v30  ;;  %v2728_v4 = vpack.i.bf16 %v2843_v28, %v2207_v30 }
 0x3a4   : > { %2729 = vxpose.xlu1.b32.start [1/16] %v2728_v4, 128 }
 0x3b5   : > { %v2179_v18 = vpop.f32.mrf.mxu3 }
 0x3b6   : > { %v2180_v25 = vadd.f32 %v2841_v45, %v2179_v18 }
 0x3b8   : > { %v2219_v58 = vmax.f32 %v2180_v25, 0.0 }
 0x3ba   : > { %2251 = vst [vmem:[%s3865_s22 + $0xe0] sm:$0xff] %v2219_v58  ;;  %v2752_v7 = vpack.i.bf16 %v4228_v48, %v2219_v58 }
 0x3bd   : > { %v2146_v17 = vpop.f32.mrf.mxu0 }
 0x3be   : > { %v2147_v24 = vadd.f32 %v2841_v45, %v2146_v17 }
 0x3c0   : > { %v2208_v2 = vmax.f32 %v2147_v24, 0.0 }
 0x3c2   : > { %2240 = vst [vmem:[%s3865_s22 + $0x88] sm:$0xff] %v2208_v2  ;;  %v2730_v19 = vpack.i.bf16 %v2842_v33, %v2208_v2 }
 0x3c4   : > { %2731 = vxpose.xlu1.b32.cont [2/16] %v2730_v19, 128 }
 0x3cc   : > { %2733 = vxpose.xlu1.b32.cont [3/16] %v2732_v60, 128 }
 0x3ce   : > { %v2182_v34 = vpop.f32.mrf.mxu3 }
 0x3cf   : > { %v2183_v3 = vadd.f32 %v2841_v45, %v2182_v34 }
 0x3d1   : > { %v2220_v31 = vmax.f32 %v2183_v3, 0.0 }
 0x3d3   : > { %2252 = vst [vmem:[%s3865_s22 + $0xe8] sm:$0xff] %v2220_v31 }
 0x3d4   : > { %2735 = vxpose.xlu1.b32.cont [4/16] %v2734_v22, 128 }
 0x3dc   : > { %2737 = vxpose.xlu1.b32.cont [5/16] %v2736_v0, 128 }
 0x3dd   : > { %v2185_v51 = vpop.f32.mrf.mxu3 }
 0x3de   : > { %v2186_v43 = vadd.f32 %v2841_v45, %v2185_v51 }
 0x3e0   : > { %v2221_v54 = vmax.f32 %v2186_v43, 0.0 }
 0x3e2   : > { %2253 = vst [vmem:[%s3865_s22 + $0xf0] sm:$0xff] %v2221_v54 }
 0x3e4   : > { %2739 = vxpose.xlu1.b32.cont [6/16] %v2738_v42, 128 }
 0x3ec   : > { %2741 = vxpose.xlu1.b32.cont [7/16] %v2740_v32, 128 }
 0x3ed   : > { %v2188_v20 = vpop.f32.mrf.mxu3 }
 0x3ee   : > { %v2189_v44 = vadd.f32 %v2841_v45, %v2188_v20 }
 0x3f0   : > { %v2222_v1 = vmax.f32 %v2189_v44, 0.0 }
 0x3f2   : > { %2254 = vst [vmem:[%s3865_s22 + $0xf8] sm:$0xff] %v2222_v1  ;;  %2384 = vmatpush.msra.mxu2 %v2222_v1 }
 0x3f4   : > { %2385 = vmatpush.msra.mxu2 %v2221_v54  ;;  %2743 = vxpose.xlu1.b32.cont [8/16] %v2742_v29, 128 }
 0x3f6   : > { %2386 = vmatpush.msra.mxu2 %v2220_v31 }
 0x3f8   : > { %2387 = vmatpush.msra.mxu2 %v2219_v58 }
 0x3fa   : > { %2388 = vmatpush.msra.mxu2 %v4324_v23 }
 0x3fc   : > { %2389 = vmatpush.msra.mxu2 %v4293_v11  ;;  %2745 = vxpose.xlu1.b32.cont [9/16] %v2744_v55, 128 }
 0x3fe   : > { %2390 = vmatpush.msra.mxu2 %v4268_v26 }
 0x400   : > { %2391 = vmatpush.msra.mxu2 %v4247_v47 }
 0x402   : > { %2392 = vmatpush.msra.mxu2 %v4233_v21 }
 0x404   : > { %2393 = vmatpush.msra.mxu2 %v4200_v40  ;;  %2747 = vxpose.xlu1.b32.cont [10/16] %v2746_v36, 128 }
 0x406   : > { %2394 = vmatpush.msra.mxu2 %v4175_v53  ;;  %v2754_v53 = vpack.i.bf16 %v4256_v14, %v2220_v31 }
 0x408   : > { %2395 = vmatpush.msra.mxu2 %v4148_v50  ;;  %v2758_v50 = vpack.i.bf16 %v4286_v6, %v2222_v1 }
 0x40a   : > { %2396 = vmatpush.msra.mxu2 %v4091_v8  ;;  %v2756_v8 = vpack.i.bf16 %v4279_v27, %v2221_v54 }
 0x40c   : > { %2397 = vmatpush.msra.mxu2 %v4048_v35  ;;  %2749 = vxpose.xlu1.b32.cont [11/16] %v2748_v39, 128 }
 0x40e   : > { %2398 = vmatpush.msra.mxu2 %v2208_v2 }
 0x410   : > { %2399 = vmatpush.msra.mxu2 %v2207_v30 }
 0x414   : > { %2751 = vxpose.xlu1.b32.cont [12/16] %v2750_v59, 128 }
 0x41c   : > { %2753 = vxpose.xlu1.b32.cont [13/16] %v2752_v7, 128 }
 0x424   : > { %2755 = vxpose.xlu1.b32.cont [14/16] %v2754_v53, 128 }
 0x42c   : > { %2757 = vxpose.xlu1.b32.cont [15/16] %v2756_v8, 128 }
 0x434   : > { %2759 = vxpose.xlu1.b32.end [16/16] %v2758_v50, 128 }
 0x460   : > { %v2760_v35 = vpop.trf.xlu1 }
 0x461   : > { %v2764_v12 = vunpack.i.h.bf16 %v2760_v35  ;;  %v2761_v40 = vunpack.i.l.bf16 %v2760_v35 }
 0x463   : > { %2335 = vmatmul.f32.vlgmr.msra.gmra.mxu1 %v2764_v12  ;;  %2400 = vmatmul.f32.vlgmr.msra.gmra.mxu2 %v2761_v40 }
 0x468   : > { %v2765_v21 = vpop.trf.xlu1 }
 0x469   : > { %v2769_v61 = vunpack.i.h.bf16 %v2765_v21  ;;  %v2766_v47 = vunpack.i.l.bf16 %v2765_v21 }
 0x46b   : > { %2338 = vmatmul.f32.gmra.mxu1 %v2769_v61  ;;  %2403 = vmatmul.f32.gmra.mxu2 %v2766_v47 }
 0x470   : > { %v2770_v48 = vpop.trf.xlu1 }
 0x471   : > { %v2774_v26 = vunpack.i.h.bf16 %v2770_v48  ;;  %v2771_v14 = vunpack.i.l.bf16 %v2770_v48 }
 0x473   : > { %2341 = vmatmul.f32.gmra.mxu1 %v2774_v26  ;;  %2406 = vmatmul.f32.gmra.mxu2 %v2771_v14 }
 0x478   : > { %v2775_v9 = vpop.trf.xlu1 }
 0x479   : > { %v2779_v37 = vunpack.i.h.bf16 %v2775_v9  ;;  %v2776_v16 = vunpack.i.l.bf16 %v2775_v9 }
 0x47b   : > { %2344 = vmatmul.f32.gmra.mxu1 %v2779_v37  ;;  %2409 = vmatmul.f32.gmra.mxu2 %v2776_v16 }
 0x480   : > { %v2780_v5 = vpop.trf.xlu1 }
 0x481   : > { %v2784_v10 = vunpack.i.h.bf16 %v2780_v5  ;;  %v2781_v63 = vunpack.i.l.bf16 %v2780_v5 }
 0x483   : > { %2347 = vmatmul.f32.gmra.mxu1 %v2784_v10  ;;  %2412 = vmatmul.f32.gmra.mxu2 %v2781_v63 }
 0x488   : > { %v2785_v38 = vpop.trf.xlu1 }
 0x489   : > { %v2789_v27 = vunpack.i.h.bf16 %v2785_v38  ;;  %v2786_v62 = vunpack.i.l.bf16 %v2785_v38 }
 0x48b   : > { %2350 = vmatmul.f32.gmra.mxu1 %v2789_v27  ;;  %2415 = vmatmul.f32.gmra.mxu2 %v2786_v62 }
 0x490   : > { %v2790_v41 = vpop.trf.xlu1 }
 0x491   : > { %v2794_v52 = vunpack.i.h.bf16 %v2790_v41  ;;  %v2791_v6 = vunpack.i.l.bf16 %v2790_v41 }
 0x493   : > { %2353 = vmatmul.f32.gmra.mxu1 %v2794_v52  ;;  %2418 = vmatmul.f32.gmra.mxu2 %v2791_v6 }
 0x498   : > { %v2795_v15 = vpop.trf.xlu1 }
 0x499   : > { %v2799_v57 = vunpack.i.h.bf16 %v2795_v15  ;;  %v2796_v11 = vunpack.i.l.bf16 %v2795_v15 }
 0x49b   : > { %2356 = vmatmul.f32.gmra.mxu1 %v2799_v57  ;;  %2421 = vmatmul.f32.gmra.mxu2 %v2796_v11 }
 0x4a0   : > { %v2800_v49 = vpop.trf.xlu1 }
 0x4a1   : > { %v2804_v45 = vunpack.i.h.bf16 %v2800_v49  ;;  %v2801_v56 = vunpack.i.l.bf16 %v2800_v49 }
 0x4a3   : > { %2359 = vmatmul.f32.gmra.mxu1 %v2804_v45  ;;  %2424 = vmatmul.f32.gmra.mxu2 %v2801_v56 }
 0x4a8   : > { %v2805_v23 = vpop.trf.xlu1 }
 0x4a9   : > { %v2809_v33 = vunpack.i.h.bf16 %v2805_v23  ;;  %v2806_v28 = vunpack.i.l.bf16 %v2805_v23 }
 0x4ab   : > { %2362 = vmatmul.f32.gmra.mxu1 %v2809_v33  ;;  %2427 = vmatmul.f32.gmra.mxu2 %v2806_v28 }
 0x4b0   : > { %v2810_v13 = vpop.trf.xlu1 }
 0x4b1   : > { %v2814_v46 = vunpack.i.h.bf16 %v2810_v13  ;;  %v2811_v30 = vunpack.i.l.bf16 %v2810_v13 }
 0x4b3   : > { %2365 = vmatmul.f32.gmra.mxu1 %v2814_v46  ;;  %2430 = vmatmul.f32.gmra.mxu2 %v2811_v30 }
 0x4b8   : > { %v2815_v4 = vpop.trf.xlu1 }
 0x4b9   : > { %v2819_v18 = vunpack.i.h.bf16 %v2815_v4  ;;  %v2816_v25 = vunpack.i.l.bf16 %v2815_v4 }
 0x4bb   : > { %2368 = vmatmul.f32.gmra.mxu1 %v2819_v18  ;;  %2433 = vmatmul.f32.gmra.mxu2 %v2816_v25 }
 0x4c0   : > { %v2820_v58 = vpop.trf.xlu1 }
 0x4c1   : > { %v2824_v17 = vunpack.i.h.bf16 %v2820_v58  ;;  %v2821_v24 = vunpack.i.l.bf16 %v2820_v58 }
 0x4c3   : > { %2371 = vmatmul.f32.gmra.mxu1 %v2824_v17  ;;  %2436 = vmatmul.f32.gmra.mxu2 %v2821_v24 }
 0x4c8   : > { %v2825_v2 = vpop.trf.xlu1 }
 0x4c9   : > { %v2829_v19 = vunpack.i.h.bf16 %v2825_v2  ;;  %v2826_v60 = vunpack.i.l.bf16 %v2825_v2 }
 0x4cb   : > { %2374 = vmatmul.f32.gmra.mxu1 %v2829_v19  ;;  %2439 = vmatmul.f32.gmra.mxu2 %v2826_v60 }
 0x4d0   : > { %v2830_v34 = vpop.trf.xlu1 }
 0x4d1   : > { %v2834_v3 = vunpack.i.h.bf16 %v2830_v34  ;;  %v2831_v31 = vunpack.i.l.bf16 %v2830_v34 }
 0x4d3   : > { %2377 = vmatmul.f32.gmra.mxu1 %v2834_v3  ;;  %2442 = vmatmul.f32.gmra.mxu2 %v2831_v31 }
 0x4d8   : > { %v2835_v22 = vpop.trf.xlu1 }
 0x4d9   : > { %v2839_v0 = vunpack.i.h.bf16 %v2835_v22  ;;  %v2836_v51 = vunpack.i.l.bf16 %v2835_v22 }
 0x4db   : > { %2380 = vmatmul.f32.vlgmr.msrb.gmra.mxu3 %v2839_v0  ;;  %2445 = vmatmul.f32.gmra.mxu2 %v2836_v51 }
 0x4e0   : > { %v2336_v43 = vpop.f32.mrf.mxu1 }
 0x4e1   : > { %2871 = shalt.err (!%p2868_p3)
}
 0x4e2   : > { %s2949_s22 = smov 128   ;;  %s2950_s10 = smov 8  }
 0x4e3   : > { %2673 = dma.vmem_to_hbm [thread:$0]  (%p3014_p5), %s2484_s23, 4096, %s2486_s27, %s2466_s28, %s2949_s22, %s2949_s22, %s2950_s10  }
 0x4e4   : > { %s4394_s11 = scalar_lea.vmem [#allocation6], %s2603_s9  ;;  %s2649_s9 = sshll.u32 %s2997_s19, 7 }
 0x4e5   : > { %s2499_s23 = scalar_lea.hbm %s4452_s4, %s2649_s9  ;;  %s2500_s27 = sshll.u32 %s4394_s11, 4  ;;  %s2501_s27 = int_to_ptr.vmem [resolvable:$true] %s2500_s27 }
 0x4e6   : > { %v2401_v54 = vpop.f32.mrf.mxu2  ;;  %s2502_s28 = sshll.u32 %s2499_s23, 4  ;;  %s2471_s29 = scalar_lea.sflag [#allocation7], %s3842_s5  ;;  %s2503_s28 = int_to_ptr.hbm [resolvable:$true] %s2502_s28 }
 0x4e7   : > { %v2402_v42 = vadd.f32 %v2401_v54, %v2336_v43  ;;  %s2886_s30 = sshra.s32 %s2503_s28, 4  ;;  %s2892_s20 = scalar_lea.hbm %s4452_s4, 256  ;;  %s2887_s30 = int_to_ptr.hbm [resolvable:$true] %s2886_s30 }
 0x4e8   : > { %v2339_v32 = vpop.f32.mrf.mxu1  ;;  %s2888_s7 = scalar_lea.hbm %s2887_s30, 128  ;;  %p2893_p9 = scmp.lt.s32.totalorder %s2887_s30, %s4452_s4 }
 0x4e9   : > { %2449 = vst [vmem:[%s4394_s11] sm:$0xff] %v2402_v42  ;;  %p2889_p4 = scmp.ne.s32.totalorder %s2887_s30, %s2888_s7  ;;  %p2894_p10 = scmp.lt.s32.totalorder %s2892_s20, %s2888_s7 }
 0x4eb   : > { %p2890_p7 = pnand %p2889_p4, %p3014_p5  ;;  %p2895_p11 = por %p2894_p10, %p2893_p9 }
 0x4ed   : > { %p2891_p8 = pneg %p2890_p7 }
 0x4ee   : > { %v2404_v20 = vpop.f32.mrf.mxu2 }
 0x4ef   : > { %v2405_v44 = vadd.f32 %v2404_v20, %v2339_v32  ;;  %p2896_p12 = pnand %p2895_p11, %p2891_p8 }
 0x4f0   : > { %v2342_v1 = vpop.f32.mrf.mxu1 }
 0x4f1   : > { %2450 = vst [vmem:[%s4394_s11 + $0x8] sm:$0xff] %v2405_v44 }
 0x4f6   : > { %v2407_v29 = vpop.f32.mrf.mxu2 }
 0x4f7   : > { %v2408_v55 = vadd.f32 %v2407_v29, %v2342_v1 }
 0x4f8   : > { %v2345_v36 = vpop.f32.mrf.mxu1 }
 0x4f9   : > { %2451 = vst [vmem:[%s4394_s11 + $0x10] sm:$0xff] %v2408_v55 }
 0x4fe   : > { %v2410_v39 = vpop.f32.mrf.mxu2 }
 0x4ff   : > { %v2411_v59 = vadd.f32 %v2410_v39, %v2345_v36 }
 0x500   : > { %v2348_v7 = vpop.f32.mrf.mxu1 }
 0x501   : > { %2452 = vst [vmem:[%s4394_s11 + $0x18] sm:$0xff] %v2411_v59 }
 0x506   : > { %v2413_v53 = vpop.f32.mrf.mxu2 }
 0x507   : > { %v2414_v8 = vadd.f32 %v2413_v53, %v2348_v7 }
 0x508   : > { %v2351_v50 = vpop.f32.mrf.mxu1 }
 0x509   : > { %2453 = vst [vmem:[%s4394_s11 + $0x20] sm:$0xff] %v2414_v8 }
 0x50e   : > { %v2416_v35 = vpop.f32.mrf.mxu2 }
 0x50f   : > { %v2417_v12 = vadd.f32 %v2416_v35, %v2351_v50 }
 0x510   : > { %v2354_v40 = vpop.f32.mrf.mxu1 }
 0x511   : > { %2454 = vst [vmem:[%s4394_s11 + $0x28] sm:$0xff] %v2417_v12 }
 0x516   : > { %v2419_v21 = vpop.f32.mrf.mxu2 }
 0x517   : > { %v2420_v61 = vadd.f32 %v2419_v21, %v2354_v40 }
 0x518   : > { %v2357_v47 = vpop.f32.mrf.mxu1 }
 0x519   : > { %2455 = vst [vmem:[%s4394_s11 + $0x30] sm:$0xff] %v2420_v61 }
 0x51e   : > { %v2422_v48 = vpop.f32.mrf.mxu2 }
 0x51f   : > { %v2423_v26 = vadd.f32 %v2422_v48, %v2357_v47 }
 0x520   : > { %v2360_v14 = vpop.f32.mrf.mxu1 }
 0x521   : > { %2456 = vst [vmem:[%s4394_s11 + $0x38] sm:$0xff] %v2423_v26 }
 0x526   : > { %v2425_v9 = vpop.f32.mrf.mxu2 }
 0x527   : > { %v2426_v37 = vadd.f32 %v2425_v9, %v2360_v14 }
 0x528   : > { %v2363_v16 = vpop.f32.mrf.mxu1 }
 0x529   : > { %2457 = vst [vmem:[%s4394_s11 + $0x40] sm:$0xff] %v2426_v37 }
 0x52e   : > { %v2428_v5 = vpop.f32.mrf.mxu2 }
 0x52f   : > { %v2429_v10 = vadd.f32 %v2428_v5, %v2363_v16 }
 0x530   : > { %v2366_v63 = vpop.f32.mrf.mxu1 }
 0x531   : > { %2458 = vst [vmem:[%s4394_s11 + $0x48] sm:$0xff] %v2429_v10 }
 0x536   : > { %v2431_v38 = vpop.f32.mrf.mxu2 }
 0x537   : > { %v2432_v27 = vadd.f32 %v2431_v38, %v2366_v63 }
 0x538   : > { %v2369_v62 = vpop.f32.mrf.mxu1 }
 0x539   : > { %2459 = vst [vmem:[%s4394_s11 + $0x50] sm:$0xff] %v2432_v27 }
 0x53e   : > { %v2434_v41 = vpop.f32.mrf.mxu2 }
 0x53f   : > { %v2435_v52 = vadd.f32 %v2434_v41, %v2369_v62 }
 0x540   : > { %v2372_v6 = vpop.f32.mrf.mxu1 }
 0x541   : > { %2460 = vst [vmem:[%s4394_s11 + $0x58] sm:$0xff] %v2435_v52 }
 0x546   : > { %v2437_v15 = vpop.f32.mrf.mxu2 }
 0x547   : > { %v2438_v57 = vadd.f32 %v2437_v15, %v2372_v6 }
 0x548   : > { %v2375_v11 = vpop.f32.mrf.mxu1 }
 0x549   : > { %2461 = vst [vmem:[%s4394_s11 + $0x60] sm:$0xff] %v2438_v57 }
 0x54e   : > { %v2440_v49 = vpop.f32.mrf.mxu2 }
 0x54f   : > { %v2441_v45 = vadd.f32 %v2440_v49, %v2375_v11 }
 0x550   : > { %v2378_v56 = vpop.f32.mrf.mxu1 }
 0x551   : > { %2462 = vst [vmem:[%s4394_s11 + $0x68] sm:$0xff] %v2441_v45 }
 0x556   : > { %v2443_v23 = vpop.f32.mrf.mxu2 }
 0x557   : > { %v2444_v33 = vadd.f32 %v2443_v23, %v2378_v56 }
 0x559   : > { %2463 = vst [vmem:[%s4394_s11 + $0x70] sm:$0xff] %v2444_v33 }
 0x55e   : > { %v2381_v28 = vpop.f32.mrf.mxu3  ;;  %v2446_v13 = vpop.f32.mrf.mxu2 }
 0x55f   : > { %v2447_v46 = vadd.f32 %v2446_v13, %v2381_v28 }
 0x561   : > { %2464 = vst [vmem:[%s4394_s11 + $0x78] sm:$0xff] %v2447_v46 }
 0x562   : > { %2899 = shalt.err (!%p2896_p12)
}
 0x563   : > { %2674 = dma.vmem_to_hbm [thread:$0]  (%p3014_p5), %s2501_s27, 2048, %s2503_s28, %s2471_s29, %s2949_s22, %s2949_s22, %s2950_s10  }
 0x564 PF: > { %p2684_p13 = scmp.ge.s32.totalorder %s2938_s18, 2  ;;  %s2517_s5 = sand.u32 1, %s2926_s15  }
 0x565   : > { %s2518_s11 = scalar_lea.sflag [#allocation5], %s2517_s5 }
 0x566   : > { %p2678_p0 = pnand %p2684_p13, %p3018_p6 }
 0x568   : > { %p2679_p1 = pneg %p2678_p0 }
 0x56a   : > { %2917 = dma.done.wait (%p2679_p1), %s2518_s11, 4096  }
 0x56b   : > { %2919 = vsyncadd (%p2679_p1), %s2518_s11, 4294963200  ;;  %s2528_s9 = scalar_lea.sflag [#allocation7], %s2517_s5 }
 0x56c   : > { %2921 = dma.done.wait (%p2679_p1), %s2528_s9, 2048  }
 0x56d   : > { %2923 = vsyncadd (%p2679_p1), %s2528_s9, 4294965248  ;;  %p18_p5 = scmp.ge.s32.totalorder %s3001_s21, 4   ;;  %s4455_s15 = smov %s2930_s16 }
 0x56e   : > { %s4456_s16 = smov %s2934_s17  ;;  %s4457_s17 = smov %s3012_s24 }
 0x56f   : > { %s4458_s18 = smov %s3001_s21  ;;  %20 = sbr.rel (!%p18_p5) target bundleno = 5 (0x5), region = 86 }
 0x574   :  { %2534 = vsyncpa [#allocation5], 1 }
 0x575   :  { %2536 = vsyncpa [#allocation5 + $0x1], 1 }
 0x576   :  { %2537 = vsyncpa [#allocation7], 1 }
 0x577   :  { %2539 = vsyncpa [#allocation7 + $0x1], 1 }

</bundles_post_ra>
